<compile_context>
chip_gen: v7x
topology: tpu7x:2x2x1
jax: 0.10.0
libtpu: 0.0.40
codegen_flags: <defaults>
</compile_context>

<pallas_src>
import math
import functools
import numpy as np
import jax
import jax.numpy as jnp
from jax import lax
from jax.experimental import pallas as pl
from jax.experimental.pallas import tpu as pltpu

# ---------------- model hyper-parameters (small, consistent with the module) ----------
DIM = 32             # dim
GROUP_SIZE = 16      # group_size
QUERY_DIM = 16       # query_dim
KEY_DIM = 16         # key_dim
QUERY_KEY_DIM = 16   # query_key_dim (only used for rel-pos-bias scale)
EXPANSION = 2.0
HIDDEN = int(DIM * EXPANSION)   # 64
NUM_BUCKETS = 32
MAX_DISTANCE = 128
LN_EPS = 1e-5
CHUNK_BATCH = 8      # chunks per grid step -> M = CHUNK_BATCH * GROUP_SIZE = 128 rows
                     # (use 16 on v6e/v7x if desired; 8 keeps v5e's EUP comfortable)


def t5_rel_pos_bias(emb, g, scale, num_buckets=NUM_BUCKETS, max_distance=MAX_DISTANCE):
    """Non-causal T5 relative position bias, shape (g, g), float32.
    Mirrors T5RelativePositionBias.forward for a (g, g) sim matrix."""
    q_pos = jnp.arange(g, dtype=jnp.int32)
    k_pos = jnp.arange(g, dtype=jnp.int32)
    rel_pos = k_pos[None, :] - q_pos[:, None]
    n = -rel_pos
    nb = num_buckets // 2
    ret = (n < 0).astype(jnp.int32) * nb
    n = jnp.abs(n)
    max_exact = nb // 2
    is_small = n < max_exact
    val_if_large = max_exact + (
        jnp.log(jnp.maximum(n, 1).astype(jnp.float32) / max_exact)
        / math.log(max_distance / max_exact) * (nb - max_exact)
    ).astype(jnp.int32)
    val_if_large = jnp.minimum(val_if_large, nb - 1)
    bucket = ret + jnp.where(is_small, n, val_if_large)
    return emb[bucket, 0] * scale


# --------------------------------- Pallas kernel ---------------------------------------
def _mca_kernel(q_ref, k_ref, x_ref, bias_ref,
                Wh_ref, bh_ref, Wq_ref, Wk_ref, Wo_ref,
                p16_ref, p32_ref,
                out_ref, *, tn):
    """One grid step processes TB chunks.  Row-wise ops are done on a flattened
    (TB*g, ·) operand; the quadratic / linear attentions stay per-chunk einsums.

    Invariant (documented, matches the validated v1 kernel): padded rows of the
    inputs produce non-zero v/gate/kp, but every consumer is masked (attn key-column
    mask, zeroed lin_k rows) or sliced away in the wrapper ([:sn]); the raw attn
    output contains unmasked query rows past sn that the wrapper slices off."""
    f32 = jnp.float32
    tb, g, dim = x_ref.shape
    rows = tb * g
    H = HIDDEN

    x = x_ref[...].reshape(rows, dim)      # "v" argument of the torch forward (padded)
    qin = q_ref[...].reshape(rows, dim)
    kin = k_ref[...].reshape(rows, dim)

    # packed small params
    ln_w = p32_ref[0:1, :]
    ln_b = p32_ref[1:2, :]
    bo = p32_ref[2:3, :]
    bq = p16_ref[0:1, :]
    bk = p16_ref[1:2, :]
    gq0 = p16_ref[2:3, :]
    gq1 = p16_ref[3:4, :]
    bq0 = p16_ref[4:5, :]
    bq1 = p16_ref[5:6, :]
    gk0 = p16_ref[6:7, :]
    gk1 = p16_ref[7:8, :]
    bk0 = p16_ref[8:9, :]
    bk1 = p16_ref[9:10, :]

    # ---- LayerNorm(v) (torch default: biased variance, eps=1e-5) ----
    mu = jnp.mean(x, axis=-1, keepdims=True)
    xc = x - mu
    var = jnp.mean(xc * xc, axis=-1, keepdims=True)
    xn = xc * lax.rsqrt(var + LN_EPS)
    xn = xn * ln_w + ln_b

    # ---- to_hidden: single lane-dense 128-wide matmul + SiLU, then split v/gate ----
    h = jnp.dot(xn, Wh_ref[...], preferred_element_type=f32) + bh_ref[...]
    h = h * jax.nn.sigmoid(h)              # (rows, 2H)
    v = h[:, :H].reshape(tb, g, H)         # (TB, g, H)
    gate = h[:, H:].reshape(tb, g, H)

    # ---- to_q / to_k, SiLU ----
    qp = jnp.dot(qin, Wq_ref[...], preferred_element_type=f32) + bq
    qp = qp * jax.nn.sigmoid(qp)           # (rows, QUERY_DIM)
    kp = jnp.dot(kin, Wk_ref[...], preferred_element_type=f32) + bk
    kp = kp * jax.nn.sigmoid(kp)           # (rows, KEY_DIM)

    # ---- OffsetScale heads; the q-side gammas/betas carry 1/g and 1/tn (folded in wrapper)
    quad_q = (qp * gq0 + bq0).reshape(tb, g, QUERY_DIM)
    lin_q = (qp * gq1 + bq1).reshape(tb, g, QUERY_DIM)
    quad_k = (kp * gk0 + bk0).reshape(tb, g, KEY_DIM)
    lin_k = (kp * gk1 + bk1).reshape(tb, g, KEY_DIM)
    kp3 = kp.reshape(tb, g, KEY_DIM)

    # padding semantics: lin_k rows past the true key length must be zero
    if tn < g:
        row_ids = lax.broadcasted_iota(jnp.int32, lin_k.shape, 1)
        lin_k = jnp.where(row_ids < tn, lin_k, 0.0)

    # ---- quadratic (in-chunk) attention: relu(sim)^2 with T5 rel-pos bias ----
    sim = jnp.einsum('bid,bjd->bij', quad_q, quad_k, preferred_element_type=f32)
    sim = sim + bias_ref[...]
    attn = jnp.square(jnp.maximum(sim, 0.0))
    if tn < g:
        col_ids = lax.broadcasted_iota(jnp.int32, attn.shape, 2)
        attn = jnp.where(col_ids < tn, attn, 0.0)          # key-padding mask
    quad_out = jnp.einsum('bij,bjd->bid', attn, v, preferred_element_type=f32)

    # ---- linear (cross-chunk) attention, non-causal; leading-axis contraction ----
    lin_kv = jnp.einsum('bnd,bne->bde', lin_k, v, preferred_element_type=f32)
    lin_out = jnp.einsum('bnd,bde->bne', lin_q, lin_kv, preferred_element_type=f32)

    # ---- gate, residual, output projection ----
    out = (gate * (quad_out + lin_out) + v).reshape(rows, H)
    proj = (jnp.dot(out, Wo_ref[...], preferred_element_type=f32) + bo).reshape(tb, g, DIM)

    # ---- phoneme_out ----
    phoneme = jnp.einsum('bij,bjd->bid', attn, kp3, preferred_element_type=f32)

    # ---- single lane-packed store: [phoneme(16) | to_out(32) | attn(16)] ----
    out_ref[...] = jnp.concatenate([phoneme, proj, attn], axis=-1)


# --------------------------------- wrapper ---------------------------------------------
def mixed_chunk_attention(q, k, x, params, *, group_size=GROUP_SIZE, chunk_batch=CHUNK_BATCH):
    """Forward pass of MixedChunkAttention (causal=False, dropout=0, no rotary,
    shift_tokens=False, residual=True, mask=None).
    q, k, x: (B, N, DIM) float32 with N <= group_size (one chunk; the torch
    forward itself requires key-length <= group_size for the phoneme_out einsum).
    Returns (out: (B, N, KEY_DIM+DIM), quad_attn: (B, N, N))."""
    B, sn, dim = q.shape
    tn = k.shape[1]
    vn = x.shape[1]
    g = group_size
    assert sn == tn == vn, "kernel implements the aligned-length case"
    assert tn <= g, "torch forward requires key length <= group_size"

    tb = max(1, int(chunk_batch))
    Bp = ((B + tb - 1) // tb) * tb          # pad batch to a multiple of TB
    pad_b = Bp - B
    pad_s = g - sn
    padf = lambda t: jnp.pad(t, ((0, pad_b), (0, pad_s), (0, 0)))
    q_p, k_p, x_p = map(padf, (q, k, x))

    scale = QUERY_KEY_DIM ** 0.5
    bias = t5_rel_pos_bias(params["rel_emb"], g, scale).astype(jnp.float32)

    row = lambda a: a.reshape(1, -1)

    # Fold the 1/g (quadratic) and 1/tn (linear) scales into the q-side OffsetScale.
    q_scale = jnp.array([[1.0 / g], [1.0 / tn]], jnp.float32)
    gam_q_s = params["gam_q"] * q_scale
    bet_q_s = params["bet_q"] * q_scale

    # Pack the small per-feature parameters into two aligned arrays.
    p16 = jnp.concatenate(
        [row(params["bq"]), row(params["bk"]),
         gam_q_s, bet_q_s,
         params["gam_k"], params["bet_k"]], axis=0)                    # (10, 16)
    p32 = jnp.stack([params["ln_w"], params["ln_b"], params["bo"]], 0)  # (3, 32)

    W_PACK = KEY_DIM + DIM + g                                          # 64 packed lanes

    batched = lambda s: pl.BlockSpec((tb,) + s, lambda b: (b, 0, 0))
    full = lambda s: pl.BlockSpec(s, lambda b: tuple(0 for _ in s))

    kernel = functools.partial(_mca_kernel, tn=tn)
    packed = pl.pallas_call(
        kernel,
        grid=(Bp // tb,),
        in_specs=[
            batched((g, dim)), batched((g, dim)), batched((g, dim)),
            full((g, g)),
            full((dim, 2 * HIDDEN)), full((1, 2 * HIDDEN)),
            full((dim, QUERY_DIM)), full((dim, KEY_DIM)),
            full((HIDDEN, dim)),
            full((10, QUERY_DIM)), full((3, dim)),
        ],
        out_specs=batched((g, W_PACK)),
        out_shape=jax.ShapeDtypeStruct((Bp, g, W_PACK), jnp.float32),
        compiler_params=pltpu.CompilerParams(dimension_semantics=("parallel",)),
    )(q_p, k_p, x_p, bias,
      params["Wh"], row(params["bh"]),
      params["Wq"], params["Wk"],
      params["Wo"],
      p16, p32)

    # The packed store already has [phoneme | to_out] contiguous -> the torch concat is a slice.
    out = packed[:B, :sn, :KEY_DIM + DIM]
    quad_attn = packed[:B, :sn, KEY_DIM + DIM:KEY_DIM + DIM + tn]
    return out, quad_attn


# ------------------------------- pure-JAX reference ------------------------------------
def reference_forward(q, k, x, params, *, group_size=GROUP_SIZE):
    b, sn, dim = q.shape
    tn = k.shape[1]
    g = group_size
    H = HIDDEN
    silu = lambda t: t * jax.nn.sigmoid(t)

    mu = x.mean(-1, keepdims=True)
    var = ((x - mu) ** 2).mean(-1, keepdims=True)
    xn = (x - mu) / jnp.sqrt(var + LN_EPS) * params["ln_w"] + params["ln_b"]
    h = silu(xn @ params["Wh"] + params["bh"])
    v, gate = h[..., :H], h[..., H:]
    qp = silu(q @ params["Wq"] + params["bq"])
    kp = silu(k @ params["Wk"] + params["bk"])
    quad_q = qp * params["gam_q"][0] + params["bet_q"][0]
    lin_q = qp * params["gam_q"][1] + params["bet_q"][1]
    quad_k = kp * params["gam_k"][0] + params["bet_k"][0]
    lin_k = kp * params["gam_k"][1] + params["bet_k"][1]

    padf = lambda t: jnp.pad(t, ((0, 0), (0, (-t.shape[1]) % g), (0, 0)))
    quad_q, quad_k, lin_q, lin_k, vpad = map(padf, (quad_q, quad_k, lin_q, lin_k, v))
    mask = jnp.pad(jnp.ones((b, tn), bool), ((0, 0), (0, (-tn) % g)))

    grp = lambda t: t.reshape(b, -1, g, t.shape[-1])
    qqg, qkg, lqg, lkg, vg = map(grp, (quad_q, quad_k, lin_q, lin_k, vpad))
    maskg = mask.reshape(b, -1, 1, g)

    bias = t5_rel_pos_bias(params["rel_emb"], g, QUERY_KEY_DIM ** 0.5)
    sim = jnp.einsum("bgid,bgjd->bgij", qqg, qkg) / g + bias
    attn = jnp.maximum(sim, 0.0) ** 2
    attn = jnp.where(maskg, attn, 0.0)
    quad_out = jnp.einsum("bgij,bgjd->bgid", attn, vg)

    lin_kv = jnp.einsum("bgnd,bgne->bde", lkg, vg) / tn
    lin_out = jnp.einsum("bgnd,bde->bgne", lqg, lin_kv)

    quad_attn_out = quad_out.reshape(b, -1, H)[:, :sn]
    lin_attn_out = lin_out.reshape(b, -1, H)[:, :sn]
    out = gate * (quad_attn_out + lin_attn_out)
    out = out + vpad[:, :sn]
    out = out @ params["Wo"] + params["bo"]

    quad_attn = attn.reshape(b, -1, g)[:, :sn, :tn]
    phoneme = jnp.einsum("bst,btd->bsd", quad_attn, kp)
    return jnp.concatenate([phoneme, out], -1), quad_attn


# --------------------------------------- main ------------------------------------------
if __name__ == "__main__":
    key = jax.random.PRNGKey(0)
    ks = jax.random.split(key, 15)
    init = lambda kk, shape, s=0.25: jax.random.normal(kk, shape, jnp.float32) * s

    params = {
        "ln_w": jnp.ones((DIM,), jnp.float32) + init(ks[0], (DIM,), 0.02),
        "ln_b": init(ks[1], (DIM,), 0.05),
        "Wh": init(ks[2], (DIM, 2 * HIDDEN)),
        "bh": init(ks[3], (2 * HIDDEN,), 0.05),
        "Wq": init(ks[4], (DIM, QUERY_DIM)),
        "bq": init(ks[5], (QUERY_DIM,), 0.05),
        "Wk": init(ks[6], (DIM, KEY_DIM)),
        "bk": init(ks[7], (KEY_DIM,), 0.05),
        "gam_q": jnp.ones((2, QUERY_DIM), jnp.float32) + init(ks[8], (2, QUERY_DIM), 0.02),
        "bet_q": init(ks[9], (2, QUERY_DIM), 0.02),
        "gam_k": jnp.ones((2, KEY_DIM), jnp.float32) + init(ks[10], (2, KEY_DIM), 0.02),
        "bet_k": init(ks[11], (2, KEY_DIM), 0.02),
        "Wo": init(ks[12], (HIDDEN, DIM)),
        "bo": init(ks[13], (DIM,), 0.05),
        "rel_emb": init(ks[14], (NUM_BUCKETS, 1), 0.1),
    }

    def check(B, N):
        kq, kk_, kv = jax.random.split(jax.random.fold_in(key, 1000 * B + N), 3)
        q = jax.random.normal(kq, (B, N, DIM), jnp.float32)
        k = jax.random.normal(kk_, (B, N, DIM), jnp.float32)
        v = jax.random.normal(kv, (B, N, DIM), jnp.float32)

        out, quad_attn = mixed_chunk_attention(q, k, v, params)
        jax.block_until_ready((out, quad_attn))

        out_ref, attn_ref = reference_forward(q, k, v, params)
        assert out.shape == (B, N, KEY_DIM + DIM)
        assert quad_attn.shape == (B, N, N)
        np.testing.assert_allclose(np.asarray(out), np.asarray(out_ref), rtol=1e-2, atol=1e-2)
        np.testing.assert_allclose(np.asarray(quad_attn), np.asarray(attn_ref), rtol=1e-2, atol=1e-2)

    check(2, 12)   # seq-padding / mask path + batch padded up to one TB=8 block
    check(9, 16)   # full-length chunks + multi-grid-step path (Bp=16, 2 grid steps)
    print("KERNEL_OK")
</pallas_src>

<mosaic_0001>
module attributes {stable_mosaic.version = 11 : i64} {
  func.func @_mca_kernel(%arg0: i32, %arg1: memref<8x16x32xf32, #tpu.memory_space<vmem>>, %arg2: memref<8x16x32xf32, #tpu.memory_space<vmem>>, %arg3: memref<8x16x32xf32, #tpu.memory_space<vmem>>, %arg4: memref<16x16xf32, #tpu.memory_space<vmem>>, %arg5: memref<32x128xf32, #tpu.memory_space<vmem>>, %arg6: memref<1x128xf32, #tpu.memory_space<vmem>>, %arg7: memref<32x16xf32, #tpu.memory_space<vmem>>, %arg8: memref<32x16xf32, #tpu.memory_space<vmem>>, %arg9: memref<64x32xf32, #tpu.memory_space<vmem>>, %arg10: memref<10x16xf32, #tpu.memory_space<vmem>>, %arg11: memref<3x32xf32, #tpu.memory_space<vmem>>, %arg12: memref<8x16x64xf32, #tpu.memory_space<vmem>>) attributes {dimension_semantics = [#tpu.dimension_semantics<parallel>], iteration_bounds = array<i64: 1>, scalar_prefetch = 0 : i64, scratch_operands = 0 : i64, tpu.core_type = #tpu.core_type<tc>, window_params = [{transform_indices = @transform_0, window_bounds = array<i64: 8, 16, 32>}, {transform_indices = @transform_1, window_bounds = array<i64: 8, 16, 32>}, {transform_indices = @transform_2, window_bounds = array<i64: 8, 16, 32>}, {pipeline_mode = #tpu.pipeline_mode<synchronous>, transform_indices = @transform_3, window_bounds = array<i64: 16, 16>}, {pipeline_mode = #tpu.pipeline_mode<synchronous>, transform_indices = @transform_4, window_bounds = array<i64: 32, 128>}, {pipeline_mode = #tpu.pipeline_mode<synchronous>, transform_indices = @transform_5, window_bounds = array<i64: 1, 128>}, {pipeline_mode = #tpu.pipeline_mode<synchronous>, transform_indices = @transform_6, window_bounds = array<i64: 32, 16>}, {pipeline_mode = #tpu.pipeline_mode<synchronous>, transform_indices = @transform_7, window_bounds = array<i64: 32, 16>}, {pipeline_mode = #tpu.pipeline_mode<synchronous>, transform_indices = @transform_8, window_bounds = array<i64: 64, 32>}, {pipeline_mode = #tpu.pipeline_mode<synchronous>, transform_indices = @transform_9, window_bounds = array<i64: 10, 16>}, {pipeline_mode = #tpu.pipeline_mode<synchronous>, transform_indices = @transform_10, window_bounds = array<i64: 3, 32>}, {transform_indices = @transform_11, window_bounds = array<i64: 8, 16, 64>}]} {
    %c0 = arith.constant 0 : index
    %c0_0 = arith.constant 0 : index
    %c0_1 = arith.constant 0 : index
    %0 = vector.load %arg3[%c0, %c0_0, %c0_1] : memref<8x16x32xf32, #tpu.memory_space<vmem>>, vector<8x16x32xf32>
    %1 = vector.shape_cast %0 : vector<8x16x32xf32> to vector<128x32xf32>
    %c0_2 = arith.constant 0 : index
    %c0_3 = arith.constant 0 : index
    %c0_4 = arith.constant 0 : index
    %2 = vector.load %arg1[%c0_2, %c0_3, %c0_4] : memref<8x16x32xf32, #tpu.memory_space<vmem>>, vector<8x16x32xf32>
    %3 = vector.shape_cast %2 : vector<8x16x32xf32> to vector<128x32xf32>
    %c0_5 = arith.constant 0 : index
    %c0_6 = arith.constant 0 : index
    %c0_7 = arith.constant 0 : index
    %4 = vector.load %arg2[%c0_5, %c0_6, %c0_7] : memref<8x16x32xf32, #tpu.memory_space<vmem>>, vector<8x16x32xf32>
    %5 = vector.shape_cast %4 : vector<8x16x32xf32> to vector<128x32xf32>
    %c0_8 = arith.constant 0 : index
    %c0_9 = arith.constant 0 : index
    %6 = vector.load %arg11[%c0_8, %c0_9] : memref<3x32xf32, #tpu.memory_space<vmem>>, vector<1x32xf32>
    %c1 = arith.constant 1 : index
    %c0_10 = arith.constant 0 : index
    %7 = vector.load %arg11[%c1, %c0_10] : memref<3x32xf32, #tpu.memory_space<vmem>>, vector<1x32xf32>
    %c2 = arith.constant 2 : index
    %c0_11 = arith.constant 0 : index
    %8 = vector.load %arg11[%c2, %c0_11] : memref<3x32xf32, #tpu.memory_space<vmem>>, vector<1x32xf32>
    %c0_12 = arith.constant 0 : index
    %c0_13 = arith.constant 0 : index
    %9 = vector.load %arg10[%c0_12, %c0_13] : memref<10x16xf32, #tpu.memory_space<vmem>>, vector<1x16xf32>
    %c1_14 = arith.constant 1 : index
    %c0_15 = arith.constant 0 : index
    %10 = vector.load %arg10[%c1_14, %c0_15] : memref<10x16xf32, #tpu.memory_space<vmem>>, vector<1x16xf32>
    %c2_16 = arith.constant 2 : index
    %c0_17 = arith.constant 0 : index
    %11 = vector.load %arg10[%c2_16, %c0_17] : memref<10x16xf32, #tpu.memory_space<vmem>>, vector<1x16xf32>
    %c3 = arith.constant 3 : index
    %c0_18 = arith.constant 0 : index
    %12 = vector.load %arg10[%c3, %c0_18] : memref<10x16xf32, #tpu.memory_space<vmem>>, vector<1x16xf32>
    %c4 = arith.constant 4 : index
    %c0_19 = arith.constant 0 : index
    %13 = vector.load %arg10[%c4, %c0_19] : memref<10x16xf32, #tpu.memory_space<vmem>>, vector<1x16xf32>
    %c5 = arith.constant 5 : index
    %c0_20 = arith.constant 0 : index
    %14 = vector.load %arg10[%c5, %c0_20] : memref<10x16xf32, #tpu.memory_space<vmem>>, vector<1x16xf32>
    %c6 = arith.constant 6 : index
    %c0_21 = arith.constant 0 : index
    %15 = vector.load %arg10[%c6, %c0_21] : memref<10x16xf32, #tpu.memory_space<vmem>>, vector<1x16xf32>
    %c7 = arith.constant 7 : index
    %c0_22 = arith.constant 0 : index
    %16 = vector.load %arg10[%c7, %c0_22] : memref<10x16xf32, #tpu.memory_space<vmem>>, vector<1x16xf32>
    %c8 = arith.constant 8 : index
    %c0_23 = arith.constant 0 : index
    %17 = vector.load %arg10[%c8, %c0_23] : memref<10x16xf32, #tpu.memory_space<vmem>>, vector<1x16xf32>
    %c9 = arith.constant 9 : index
    %c0_24 = arith.constant 0 : index
    %18 = vector.load %arg10[%c9, %c0_24] : memref<10x16xf32, #tpu.memory_space<vmem>>, vector<1x16xf32>
    %cst = arith.constant dense<0.000000e+00> : vector<128xf32>
    %19 = vector.multi_reduction <add>, %1, %cst [1] : vector<128x32xf32> to vector<128xf32>
    %20 = vector.shape_cast %19 : vector<128xf32> to vector<128x1xf32>
    %cst_25 = arith.constant 3.200000e+01 : f32
    %21 = vector.broadcast %cst_25 : f32 to vector<128x1xf32>
    %22 = arith.divf %20, %21 : vector<128x1xf32>
    %23 = vector.broadcast %22 : vector<128x1xf32> to vector<128x32xf32>
    %24 = arith.subf %1, %23 : vector<128x32xf32>
    %25 = arith.mulf %24, %24 : vector<128x32xf32>
    %cst_26 = arith.constant dense<0.000000e+00> : vector<128xf32>
    %26 = vector.multi_reduction <add>, %25, %cst_26 [1] : vector<128x32xf32> to vector<128xf32>
    %27 = vector.shape_cast %26 : vector<128xf32> to vector<128x1xf32>
    %cst_27 = arith.constant 3.200000e+01 : f32
    %28 = vector.broadcast %cst_27 : f32 to vector<128x1xf32>
    %29 = arith.divf %27, %28 : vector<128x1xf32>
    %cst_28 = arith.constant 9.99999974E-6 : f32
    %30 = vector.broadcast %cst_28 : f32 to vector<128x1xf32>
    %31 = arith.addf %29, %30 : vector<128x1xf32>
    %32 = math.rsqrt %31 : vector<128x1xf32>
    %33 = vector.broadcast %32 : vector<128x1xf32> to vector<128x32xf32>
    %34 = arith.mulf %24, %33 : vector<128x32xf32>
    %35 = vector.broadcast %6 : vector<1x32xf32> to vector<128x32xf32>
    %36 = arith.mulf %34, %35 : vector<128x32xf32>
    %37 = vector.broadcast %7 : vector<1x32xf32> to vector<128x32xf32>
    %38 = arith.addf %36, %37 : vector<128x32xf32>
    %c0_29 = arith.constant 0 : index
    %c0_30 = arith.constant 0 : index
    %39 = vector.load %arg5[%c0_29, %c0_30] : memref<32x128xf32, #tpu.memory_space<vmem>>, vector<32x128xf32>
    %cst_31 = arith.constant dense<0.000000e+00> : vector<128x128xf32>
    %40 = tpu.matmul %38, %39, %cst_31 {dimension_numbers = #tpu.dot_dimension_numbers<[1], [0], [0], [1], [0, 0, 1, 1], [], []>} : vector<128x32xf32>, vector<32x128xf32>, vector<128x128xf32> -> vector<128x128xf32>
    %c0_32 = arith.constant 0 : index
    %c0_33 = arith.constant 0 : index
    %41 = vector.load %arg6[%c0_32, %c0_33] : memref<1x128xf32, #tpu.memory_space<vmem>>, vector<1x128xf32>
    %42 = vector.broadcast %41 : vector<1x128xf32> to vector<128x128xf32>
    %43 = arith.addf %40, %42 : vector<128x128xf32>
    %44 = arith.negf %43 : vector<128x128xf32>
    %45 = math.exp %44 : vector<128x128xf32>
    %cst_34 = arith.constant 1.000000e+00 : f32
    %46 = vector.broadcast %cst_34 : f32 to vector<128x128xf32>
    %47 = arith.addf %46, %45 : vector<128x128xf32>
    %48 = arith.divf %46, %47 : vector<128x128xf32>
    %49 = arith.mulf %43, %48 : vector<128x128xf32>
    %50 = vector.extract_strided_slice %49 {offsets = [0, 0], sizes = [128, 64], strides = [1, 1]} : vector<128x128xf32> to vector<128x64xf32>
    %51 = vector.shape_cast %50 : vector<128x64xf32> to vector<8x16x64xf32>
    %52 = vector.extract_strided_slice %49 {offsets = [0, 64], sizes = [128, 64], strides = [1, 1]} : vector<128x128xf32> to vector<128x64xf32>
    %53 = vector.shape_cast %52 : vector<128x64xf32> to vector<8x16x64xf32>
    %c0_35 = arith.constant 0 : index
    %c0_36 = arith.constant 0 : index
    %54 = vector.load %arg7[%c0_35, %c0_36] : memref<32x16xf32, #tpu.memory_space<vmem>>, vector<32x16xf32>
    %cst_37 = arith.constant dense<0.000000e+00> : vector<128x16xf32>
    %55 = tpu.matmul %3, %54, %cst_37 {dimension_numbers = #tpu.dot_dimension_numbers<[1], [0], [0], [1], [0, 0, 1, 1], [], []>} : vector<128x32xf32>, vector<32x16xf32>, vector<128x16xf32> -> vector<128x16xf32>
    %56 = vector.broadcast %9 : vector<1x16xf32> to vector<128x16xf32>
    %57 = arith.addf %55, %56 : vector<128x16xf32>
    %58 = arith.negf %57 : vector<128x16xf32>
    %59 = math.exp %58 : vector<128x16xf32>
    %cst_38 = arith.constant 1.000000e+00 : f32
    %60 = vector.broadcast %cst_38 : f32 to vector<128x16xf32>
    %61 = arith.addf %60, %59 : vector<128x16xf32>
    %62 = arith.divf %60, %61 : vector<128x16xf32>
    %63 = arith.mulf %57, %62 : vector<128x16xf32>
    %c0_39 = arith.constant 0 : index
    %c0_40 = arith.constant 0 : index
    %64 = vector.load %arg8[%c0_39, %c0_40] : memref<32x16xf32, #tpu.memory_space<vmem>>, vector<32x16xf32>
    %cst_41 = arith.constant dense<0.000000e+00> : vector<128x16xf32>
    %65 = tpu.matmul %5, %64, %cst_41 {dimension_numbers = #tpu.dot_dimension_numbers<[1], [0], [0], [1], [0, 0, 1, 1], [], []>} : vector<128x32xf32>, vector<32x16xf32>, vector<128x16xf32> -> vector<128x16xf32>
    %66 = vector.broadcast %10 : vector<1x16xf32> to vector<128x16xf32>
    %67 = arith.addf %65, %66 : vector<128x16xf32>
    %68 = arith.negf %67 : vector<128x16xf32>
    %69 = math.exp %68 : vector<128x16xf32>
    %cst_42 = arith.constant 1.000000e+00 : f32
    %70 = vector.broadcast %cst_42 : f32 to vector<128x16xf32>
    %71 = arith.addf %70, %69 : vector<128x16xf32>
    %72 = arith.divf %70, %71 : vector<128x16xf32>
    %73 = arith.mulf %67, %72 : vector<128x16xf32>
    %74 = vector.broadcast %11 : vector<1x16xf32> to vector<128x16xf32>
    %75 = arith.mulf %63, %74 : vector<128x16xf32>
    %76 = vector.broadcast %13 : vector<1x16xf32> to vector<128x16xf32>
    %77 = arith.addf %75, %76 : vector<128x16xf32>
    %78 = vector.shape_cast %77 : vector<128x16xf32> to vector<8x16x16xf32>
    %79 = vector.broadcast %12 : vector<1x16xf32> to vector<128x16xf32>
    %80 = arith.mulf %63, %79 : vector<128x16xf32>
    %81 = vector.broadcast %14 : vector<1x16xf32> to vector<128x16xf32>
    %82 = arith.addf %80, %81 : vector<128x16xf32>
    %83 = vector.shape_cast %82 : vector<128x16xf32> to vector<8x16x16xf32>
    %84 = vector.broadcast %15 : vector<1x16xf32> to vector<128x16xf32>
    %85 = arith.mulf %73, %84 : vector<128x16xf32>
    %86 = vector.broadcast %17 : vector<1x16xf32> to vector<128x16xf32>
    %87 = arith.addf %85, %86 : vector<128x16xf32>
    %88 = vector.shape_cast %87 : vector<128x16xf32> to vector<8x16x16xf32>
    %89 = vector.broadcast %16 : vector<1x16xf32> to vector<128x16xf32>
    %90 = arith.mulf %73, %89 : vector<128x16xf32>
    %91 = vector.broadcast %18 : vector<1x16xf32> to vector<128x16xf32>
    %92 = arith.addf %90, %91 : vector<128x16xf32>
    %93 = vector.shape_cast %92 : vector<128x16xf32> to vector<8x16x16xf32>
    %94 = vector.shape_cast %73 : vector<128x16xf32> to vector<8x16x16xf32>
    %95 = tpu.iota {dimensions = array<i32: 1>} : vector<8x16x16xi32>
    %c12_i32 = arith.constant 12 : i32
    %96 = vector.broadcast %c12_i32 : i32 to vector<8x16x16xi32>
    %97 = arith.cmpi slt, %95, %96 : vector<8x16x16xi32>
    %cst_43 = arith.constant 0.000000e+00 : f32
    %98 = vector.broadcast %cst_43 : f32 to vector<8x16x16xf32>
    %99 = arith.select %97, %93, %98 : vector<8x16x16xi1>, vector<8x16x16xf32>
    "tpu.trace_start"() <{level = 10 : i32, message = "bid,bjd->bij"}> : () -> ()
    %cst_44 = arith.constant dense<0.000000e+00> : vector<8x16x16xf32>
    %100 = tpu.matmul %78, %88, %cst_44 {dimension_numbers = #tpu.dot_dimension_numbers<[2], [2], [1], [1], [0, 0, 0, 1, 1, 1], [0], [0]>} : vector<8x16x16xf32>, vector<8x16x16xf32>, vector<8x16x16xf32> -> vector<8x16x16xf32>
    "tpu.trace_stop"() : () -> ()
    %c0_45 = arith.constant 0 : index
    %c0_46 = arith.constant 0 : index
    %101 = vector.load %arg4[%c0_45, %c0_46] : memref<16x16xf32, #tpu.memory_space<vmem>>, vector<16x16xf32>
    %102 = vector.shape_cast %101 : vector<16x16xf32> to vector<1x16x16xf32>
    %103 = vector.broadcast %102 : vector<1x16x16xf32> to vector<8x16x16xf32>
    %104 = arith.addf %100, %103 : vector<8x16x16xf32>
    %cst_47 = arith.constant 0.000000e+00 : f32
    %105 = vector.broadcast %cst_47 : f32 to vector<8x16x16xf32>
    %106 = arith.maximumf %104, %105 : vector<8x16x16xf32>
    %107 = arith.mulf %106, %106 : vector<8x16x16xf32>
    %108 = tpu.iota {dimensions = array<i32: 2>} : vector<8x16x16xi32>
    %c12_i32_48 = arith.constant 12 : i32
    %109 = vector.broadcast %c12_i32_48 : i32 to vector<8x16x16xi32>
    %110 = arith.cmpi slt, %108, %109 : vector<8x16x16xi32>
    %cst_49 = arith.constant 0.000000e+00 : f32
    %111 = vector.broadcast %cst_49 : f32 to vector<8x16x16xf32>
    %112 = arith.select %110, %107, %111 : vector<8x16x16xi1>, vector<8x16x16xf32>
    "tpu.trace_start"() <{level = 10 : i32, message = "bij,bjd->bid"}> : () -> ()
    %cst_50 = arith.constant dense<0.000000e+00> : vector<8x16x64xf32>
    %113 = tpu.matmul %112, %51, %cst_50 {dimension_numbers = #tpu.dot_dimension_numbers<[2], [1], [1], [2], [0, 0, 0, 1, 1, 2], [0], [0]>} : vector<8x16x16xf32>, vector<8x16x64xf32>, vector<8x16x64xf32> -> vector<8x16x64xf32>
    "tpu.trace_stop"() : () -> ()
    "tpu.trace_start"() <{level = 10 : i32, message = "bnd,bne->bde"}> : () -> ()
    %cst_51 = arith.constant dense<0.000000e+00> : vector<8x16x64xf32>
    %114 = tpu.matmul %99, %51, %cst_51 {dimension_numbers = #tpu.dot_dimension_numbers<[1], [1], [2], [2], [0, 0, 0, 2, 1, 2], [0], [0]>} : vector<8x16x16xf32>, vector<8x16x64xf32>, vector<8x16x64xf32> -> vector<8x16x64xf32>
    "tpu.trace_stop"() : () -> ()
    "tpu.trace_start"() <{level = 10 : i32, message = "bnd,bde->bne"}> : () -> ()
    %cst_52 = arith.constant dense<0.000000e+00> : vector<8x16x64xf32>
    %115 = tpu.matmul %83, %114, %cst_52 {dimension_numbers = #tpu.dot_dimension_numbers<[2], [1], [1], [2], [0, 0, 0, 1, 1, 2], [0], [0]>} : vector<8x16x16xf32>, vector<8x16x64xf32>, vector<8x16x64xf32> -> vector<8x16x64xf32>
    "tpu.trace_stop"() : () -> ()
    %116 = arith.addf %113, %115 : vector<8x16x64xf32>
    %117 = arith.mulf %53, %116 : vector<8x16x64xf32>
    %118 = arith.addf %117, %51 : vector<8x16x64xf32>
    %119 = vector.shape_cast %118 : vector<8x16x64xf32> to vector<128x64xf32>
    %c0_53 = arith.constant 0 : index
    %c0_54 = arith.constant 0 : index
    %120 = vector.load %arg9[%c0_53, %c0_54] : memref<64x32xf32, #tpu.memory_space<vmem>>, vector<64x32xf32>
    %cst_55 = arith.constant dense<0.000000e+00> : vector<128x32xf32>
    %121 = tpu.matmul %119, %120, %cst_55 {dimension_numbers = #tpu.dot_dimension_numbers<[1], [0], [0], [1], [0, 0, 1, 1], [], []>} : vector<128x64xf32>, vector<64x32xf32>, vector<128x32xf32> -> vector<128x32xf32>
    %122 = vector.broadcast %8 : vector<1x32xf32> to vector<128x32xf32>
    %123 = arith.addf %121, %122 : vector<128x32xf32>
    %124 = vector.shape_cast %123 : vector<128x32xf32> to vector<8x16x32xf32>
    "tpu.trace_start"() <{level = 10 : i32, message = "bij,bjd->bid"}> : () -> ()
    %cst_56 = arith.constant dense<0.000000e+00> : vector<8x16x16xf32>
    %125 = tpu.matmul %112, %94, %cst_56 {dimension_numbers = #tpu.dot_dimension_numbers<[2], [1], [1], [2], [0, 0, 0, 1, 1, 2], [0], [0]>} : vector<8x16x16xf32>, vector<8x16x16xf32>, vector<8x16x16xf32> -> vector<8x16x16xf32>
    "tpu.trace_stop"() : () -> ()
    %126 = tpu.concatenate %125, %124, %112 in 2 : vector<8x16x16xf32>, vector<8x16x32xf32>, vector<8x16x16xf32> -> vector<8x16x64xf32>
    %c0_57 = arith.constant 0 : index
    %c0_58 = arith.constant 0 : index
    %c0_59 = arith.constant 0 : index
    %127 = vector.load %arg12[%c0_57, %c0_58, %c0_59] : memref<8x16x64xf32, #tpu.memory_space<vmem>>, vector<8x16x64xf32>
    tpu.vector_store %arg12[%c0_57, %c0_58, %c0_59], %126 {strides = array<i32>} : memref<8x16x64xf32, #tpu.memory_space<vmem>>, vector<8x16x64xf32>,
    return
  }
  func.func @transform_0(%arg0: i32) -> (i32, i32, i32) {
    %c0_i32 = arith.constant 0 : i32
    %c0_i32_0 = arith.constant 0 : i32
    %c0_i32_1 = arith.constant 0 : i32
    return %arg0, %c0_i32, %c0_i32_0 : i32, i32, i32
  }
  func.func @transform_1(%arg0: i32) -> (i32, i32, i32) {
    %c0_i32 = arith.constant 0 : i32
    %c0_i32_0 = arith.constant 0 : i32
    %c0_i32_1 = arith.constant 0 : i32
    return %arg0, %c0_i32, %c0_i32_0 : i32, i32, i32
  }
  func.func @transform_2(%arg0: i32) -> (i32, i32, i32) {
    %c0_i32 = arith.constant 0 : i32
    %c0_i32_0 = arith.constant 0 : i32
    %c0_i32_1 = arith.constant 0 : i32
    return %arg0, %c0_i32, %c0_i32_0 : i32, i32, i32
  }
  func.func @transform_3(%arg0: i32) -> (i32, i32) {
    %c0_i32 = arith.constant 0 : i32
    %c0_i32_0 = arith.constant 0 : i32
    %c0_i32_1 = arith.constant 0 : i32
    return %c0_i32, %c0_i32_0 : i32, i32
  }
  func.func @transform_4(%arg0: i32) -> (i32, i32) {
    %c0_i32 = arith.constant 0 : i32
    %c0_i32_0 = arith.constant 0 : i32
    %c0_i32_1 = arith.constant 0 : i32
    return %c0_i32, %c0_i32_0 : i32, i32
  }
  func.func @transform_5(%arg0: i32) -> (i32, i32) {
    %c0_i32 = arith.constant 0 : i32
    %c0_i32_0 = arith.constant 0 : i32
    %c0_i32_1 = arith.constant 0 : i32
    return %c0_i32, %c0_i32_0 : i32, i32
  }
  func.func @transform_6(%arg0: i32) -> (i32, i32) {
    %c0_i32 = arith.constant 0 : i32
    %c0_i32_0 = arith.constant 0 : i32
    %c0_i32_1 = arith.constant 0 : i32
    return %c0_i32, %c0_i32_0 : i32, i32
  }
  func.func @transform_7(%arg0: i32) -> (i32, i32) {
    %c0_i32 = arith.constant 0 : i32
    %c0_i32_0 = arith.constant 0 : i32
    %c0_i32_1 = arith.constant 0 : i32
    return %c0_i32, %c0_i32_0 : i32, i32
  }
  func.func @transform_8(%arg0: i32) -> (i32, i32) {
    %c0_i32 = arith.constant 0 : i32
    %c0_i32_0 = arith.constant 0 : i32
    %c0_i32_1 = arith.constant 0 : i32
    return %c0_i32, %c0_i32_0 : i32, i32
  }
  func.func @transform_9(%arg0: i32) -> (i32, i32) {
    %c0_i32 = arith.constant 0 : i32
    %c0_i32_0 = arith.constant 0 : i32
    %c0_i32_1 = arith.constant 0 : i32
    return %c0_i32, %c0_i32_0 : i32, i32
  }
  func.func @transform_10(%arg0: i32) -> (i32, i32) {
    %c0_i32 = arith.constant 0 : i32
    %c0_i32_0 = arith.constant 0 : i32
    %c0_i32_1 = arith.constant 0 : i32
    return %c0_i32, %c0_i32_0 : i32, i32
  }
  func.func @transform_11(%arg0: i32) -> (i32, i32, i32) {
    %c0_i32 = arith.constant 0 : i32
    %c0_i32_0 = arith.constant 0 : i32
    %c0_i32_1 = arith.constant 0 : i32
    return %arg0, %c0_i32, %c0_i32_0 : i32, i32, i32
  }
}

</mosaic_0001>

<bundles_post_ra>
// kernel: tpu_custom_call.1
= control target key start
LH: loop header
LB: loop body
LE: loop exit
PB: predicated region body
PF: predicated region fallthrough
CT: control target
= control target key end

     0   :  { %16 = vsyncpa [#allocation3], 0  ;;  %s8800_s0 = inlined_call_operand.vmem [shape: f32[8,16,32], index: 0, kind: input, shape index: {}]   ;;  %s8801_s1 = inlined_call_operand.hbm [shape: f32[8,16,32], index: 1, kind: input, shape index: {}]   ;;  %s8802_s2 = inlined_call_operand.hbm [shape: f32[8,16,32], index: 2, kind: input, shape index: {}]   ;;  %s8803_s3 = inlined_call_operand.hbm [shape: f32[16,16], index: 3, kind: input, shape index: {}]   ;;  %s8804_s4 = inlined_call_operand.vmem [shape: f32[32,128], index: 4, kind: input, shape index: {}]   ;;  %s8805_s5 = inlined_call_operand.vmem [shape: f32[1,128], index: 5, kind: input, shape index: {}]   ;;  %s8806_s6 = inlined_call_operand.vmem [shape: f32[32,16], index: 6, kind: input, shape index: {}]   ;;  %s8807_s7 = inlined_call_operand.vmem [shape: f32[32,16], index: 7, kind: input, shape index: {}]   ;;  %s8808_s8 = inlined_call_operand.vmem [shape: f32[64,32], index: 8, kind: input, shape index: {}]   ;;  %s8809_s9 = inlined_call_operand.vmem [shape: f32[10,16], index: 9, kind: input, shape index: {}]   ;;  %s8810_s10 = inlined_call_operand.vmem [shape: f32[3,32], index: 10, kind: input, shape index: {}]   ;;  %s8811_s11 = inlined_call_operand.hbm [shape: f32[8,16,64], index: 11, kind: output, shape index: {}]  }
   0x1   :  { %17 = vsyncpa [#allocation6], 0 }
   0x2   :  { %18 = vsyncpa [#allocation4], 0  ;;  %s7085_s17 = smov [#allocation5]   ;;  %s7086_s19 = smov [#allocation2]  }
   0x3   :  { %s38_s18 = sshll.u32 %s7085_s17, 4  ;;  %s26_s20 = sshll.u32 %s7086_s19, 4  ;;  %s39_s18 = int_to_ptr.vmem [resolvable:$true] %s38_s18  ;;  %s7154_s20 = int_to_ptr.vmem [resolvable:$true] %s26_s20 }
   0x4   :  { %s6991_s23 = scalar_lea.hbm %s8802_s2, 2048 }
   0x5   :  { %p6992_p0 = scmp.ne.s32.totalorder %s8802_s2, %s6991_s23  ;;  %p6995_p1 = scmp.lt.u32.totalorder %s6991_s23, %s8802_s2 }
   0x7   :  { %p6997_p2 = pnand %p6995_p1, %p6992_p0 }
   0x9   :  { %7000 = shalt.err (!%p6997_p2)
}
   0xa   :  { %s7001_s28 = scalar_lea.vmem %s39_s18, 2048  ;;  %p7006_p4 = scmp.lt.s32.totalorder %s39_s18, %s39_s18 }
   0xb   :  { %p7002_p3 = scmp.ne.s32.totalorder %s39_s18, %s7001_s28  ;;  %p7007_p5 = scmp.lt.s32.totalorder %s7001_s28, %s7001_s28 }
   0xd   :  { %p7008_p6 = por %p7007_p5, %p7006_p4 }
   0xf   :  { %p7009_p7 = pnand %p7008_p6, %p7002_p3 }
  0x11   :  { %7012 = shalt.err (!%p7009_p7)
}
  0x12   :  { %s7087_s29 = smov 128   ;;  %s7088_s30 = smov 8  }
  0x13   :  { %44 = dma.hbm_to_vmem [thread:$0]  %s8802_s2, 2048, %s39_s18, [#allocation6], %s7087_s29, %s7087_s29, %s7088_s30  }
  0x14   :  { %s7013_s16 = scalar_lea.hbm %s8801_s1, 2048 }
  0x15   :  { %p7014_p8 = scmp.ne.s32.totalorder %s8801_s1, %s7013_s16  ;;  %p7017_p9 = scmp.lt.u32.totalorder %s7013_s16, %s8801_s1 }
  0x17   :  { %p7019_p10 = pnand %p7017_p9, %p7014_p8 }
  0x19   :  { %7022 = shalt.err (!%p7019_p10)
}
  0x1a   :  { %s7023_s23 = scalar_lea.vmem %s7154_s20, 2048  ;;  %p7028_p12 = scmp.lt.s32.totalorder %s7154_s20, %s7154_s20 }
  0x1b   :  { %p7024_p11 = scmp.ne.s32.totalorder %s7154_s20, %s7023_s23  ;;  %p7029_p13 = scmp.lt.s32.totalorder %s7023_s23, %s7023_s23 }
  0x1d   :  { %p7030_p0 = por %p7029_p13, %p7028_p12 }
  0x1f   :  { %p7031_p1 = pnand %p7030_p0, %p7024_p11 }
  0x21   :  { %7034 = shalt.err (!%p7031_p1)
}
  0x22   :  { %32 = dma.hbm_to_vmem [thread:$0]  %s8801_s1, 2048, %s7154_s20, [#allocation3], %s7087_s29, %s7087_s29, %s7088_s30  }
  0x23   :  { %s7089_s24 = smov [#allocation7]   ;;  %s7035_s28 = scalar_lea.hbm %s8803_s3, 256 }
  0x24   :  { %s50_s25 = sshll.u32 %s7089_s24, 4  ;;  %p7036_p2 = scmp.ne.s32.totalorder %s8803_s3, %s7035_s28  ;;  %s51_s25 = int_to_ptr.vmem [resolvable:$true] %s50_s25 }
  0x25   :  { %p7039_p3 = scmp.lt.u32.totalorder %s7035_s28, %s8803_s3 }
  0x27   :  { %p7041_p4 = pnand %p7039_p3, %p7036_p2 }
  0x29   :  { %7044 = shalt.err (!%p7041_p4)
}
  0x2a   :  { %s7045_s16 = scalar_lea.vmem %s51_s25, 256  ;;  %p7050_p6 = scmp.lt.s32.totalorder %s51_s25, %s51_s25 }
  0x2b   :  { %p7046_p5 = scmp.ne.s32.totalorder %s51_s25, %s7045_s16  ;;  %p7051_p7 = scmp.lt.s32.totalorder %s7045_s16, %s7045_s16 }
  0x2d   :  { %p7052_p8 = por %p7051_p7, %p7050_p6 }
  0x2f   :  { %p7053_p9 = pnand %p7052_p8, %p7046_p5 }
  0x31   :  { %7056 = shalt.err (!%p7053_p9)
}
  0x32   :  { %56 = dma.hbm_to_vmem [thread:$0]  %s8803_s3, 256, %s51_s25, [#allocation6], %s7087_s29, %s7087_s29, %s7088_s30  }
  0x33   :  { %7079 = dma.done.wait [#allocation3], 2048  }
  0x34   :  { %7080 = vsyncadd [#allocation3], 4294965248 }
  0x35   :  { %7081 = dma.done.wait [#allocation6], 2304  }
  0x36   :  { %7082 = vsyncadd [#allocation6], 4294964992  ;;  %vm141_vm0 = vcmask 261120   ;;  %v80_v0 = vld [vmem:[#allocation5] sm:$0xff]  ;;  %v82_v1 = vld [vmem:[#allocation5 + $0x10] sm:$0xff]  ;;  %vm1516_vm1 = vcmask 130048  }
  0x37   :  { %v81_v2 = vld [vmem:[#allocation5 + $0x8] sm:$0xff]  ;;  %v142_v3 = vsel %vm141_vm0, %v80_v0, 0.0  ;;  %v148_v4 = vsel %vm141_vm0, %v82_v1, 0.0  ;;  %v83_v5 = vld [vmem:[#allocation5 + $0x18] sm:$0xff]  ;;  %v84_v8 = vld [vmem:[#allocation5 + $0x20] sm:$0xff]  ;;  %s7090_s28 = smov 64  }
  0x38   :  { %143 = vadd.xlane.f32.xlu0 %v142_v3  ;;  %149 = vadd.xlane.f32.xlu1 %v148_v4  ;;  %v145_v6 = vsel %vm141_vm0, %v81_v2, 0.0  ;;  %v151_v7 = vsel %vm141_vm0, %v83_v5, 0.0  ;;  %v85_v9 = vld [vmem:[#allocation5 + $0x28] sm:$0xff]  ;;  %v154_v10 = vsel %vm141_vm0, %v84_v8, 0.0  ;;  %v7212_v12 = vld [vmem:[#allocation5 + $0x30] sm:$0xff]  ;;  %v7214_v13 = vld [vmem:[#allocation5 + $0x38] sm:$0xff] }
  0x39   :  { %v157_v11 = vsel %vm141_vm0, %v85_v9, 0.0  ;;  %v160_v14 = vsel %vm141_vm0, %v7212_v12, 0.0  ;;  %v163_v15 = vsel %vm141_vm0, %v7214_v13, 0.0  ;;  %v7220_v16 = vld [vmem:[#allocation5 + $0x40] sm:$0xff]  ;;  %v7222_v17 = vld [vmem:[#allocation5 + $0x48] sm:$0xff]  ;;  %v7228_v20 = vld [vmem:[#allocation5 + $0x50] sm:$0xff] }
  0x3a   :  { %v166_v18 = vsel %vm141_vm0, %v7220_v16, 0.0  ;;  %v169_v19 = vsel %vm141_vm0, %v7222_v17, 0.0  ;;  %v7230_v21 = vld [vmem:[#allocation5 + $0x58] sm:$0xff]  ;;  %v172_v22 = vsel %vm141_vm0, %v7228_v20, 0.0  ;;  %v7236_v24 = vld [vmem:[#allocation5 + $0x60] sm:$0xff]  ;;  %v7238_v25 = vld [vmem:[#allocation5 + $0x68] sm:$0xff] }
  0x3b   :  { %v175_v23 = vsel %vm141_vm0, %v7230_v21, 0.0  ;;  %v178_v26 = vsel %vm141_vm0, %v7236_v24, 0.0  ;;  %v181_v27 = vsel %vm141_vm0, %v7238_v25, 0.0  ;;  %v7244_v28 = vld [vmem:[#allocation5 + $0x70] sm:$0xff]  ;;  %v7246_v29 = vld [vmem:[#allocation5 + $0x78] sm:$0xff]  ;;  %vm7954_vm3 = vmpackc.low %vm1516_vm1, %vm1516_vm1  ;;  %vm4684_vm5 = vcmask 523264  }
  0x3c   :  { %146 = vadd.xlane.f32.xlu0 %v145_v6  ;;  %152 = vadd.xlane.f32.xlu1 %v151_v7  ;;  %v184_v30 = vsel %vm141_vm0, %v7244_v28, 0.0  ;;  %v187_v31 = vsel %vm141_vm0, %v7246_v29, 0.0  ;;  %s7092_s25 = smov 16   ;;  %vm5590_vm6 = vcmask 392192  }
  0x40   :  { %155 = vadd.xlane.f32.xlu0 %v154_v10  ;;  %158 = vadd.xlane.f32.xlu1 %v157_v11 }
  0x44   :  { %161 = vadd.xlane.f32.xlu0 %v160_v14  ;;  %164 = vadd.xlane.f32.xlu1 %v163_v15 }
  0x48   :  { %167 = vadd.xlane.f32.xlu0 %v166_v18  ;;  %170 = vadd.xlane.f32.xlu1 %v169_v19 }
  0x4c   :  { %173 = vadd.xlane.f32.xlu0 %v172_v22  ;;  %176 = vadd.xlane.f32.xlu1 %v175_v23 }
  0x50   :  { %179 = vadd.xlane.f32.xlu0 %v178_v26  ;;  %182 = vadd.xlane.f32.xlu1 %v181_v27 }
  0x54   :  { %185 = vadd.xlane.f32.xlu0 %v184_v30  ;;  %188 = vadd.xlane.f32.xlu1 %v187_v31 }
  0xc5   :  { %v144_v32 = vpop.xlane.xlu0 %143  ;;  %v150_v33 = vpop.xlane.xlu1 %149 }
  0xc6   :  { %v191_v34 = vmul.f32 0.03125, %v144_v32  ;;  %v193_v35 = vmul.f32 0.03125, %v150_v33 }
  0xc8   :  { %v7252_v36 = vsub.f32 %v80_v0, %v191_v34  ;;  %v7254_v37 = vsub.f32 %v82_v1, %v193_v35 }
  0xc9   :  { %v147_v38 = vpop.xlane.xlu0 %146  ;;  %v153_v39 = vpop.xlane.xlu1 %152 }
  0xca   :  { %v192_v40 = vmul.f32 0.03125, %v147_v38  ;;  %v194_v41 = vmul.f32 0.03125, %v153_v39  ;;  %v223_v42 = vmul.f32 %v7252_v36, %v7252_v36  ;;  %v225_v43 = vmul.f32 %v7254_v37, %v7254_v37 }
  0xcc   :  { %v7260_v44 = vsub.f32 %v81_v2, %v192_v40  ;;  %v7262_v45 = vsub.f32 %v83_v5, %v194_v41  ;;  %v239_v46 = vsel %vm141_vm0, %v223_v42, 0.0  ;;  %v245_v49 = vsel %vm141_vm0, %v225_v43, 0.0 }
  0xcd   :  { %240 = vadd.xlane.f32.xlu0 %v239_v46  ;;  %v156_v47 = vpop.xlane.xlu0 %155  ;;  %v159_v48 = vpop.xlane.xlu1 %158 }
  0xce   :  { %v195_v50 = vmul.f32 0.03125, %v156_v47  ;;  %v196_v51 = vmul.f32 0.03125, %v159_v48  ;;  %v224_v52 = vmul.f32 %v7260_v44, %v7260_v44  ;;  %v226_v53 = vmul.f32 %v7262_v45, %v7262_v45 }
  0xd0   :  { %v7270_v54 = vsub.f32 %v84_v8, %v195_v50  ;;  %v7272_v55 = vsub.f32 %v85_v9, %v196_v51  ;;  %v242_v56 = vsel %vm141_vm0, %v224_v52, 0.0  ;;  %v248_v59 = vsel %vm141_vm0, %v226_v53, 0.0  ;;  %v392_v53 = vld [vmem:[%s8804_s4 + $0x8] sm:$0xff] }
  0xd1   :  { %246 = vadd.xlane.f32.xlu0 %v245_v49  ;;  %243 = vadd.xlane.f32.xlu1 %v242_v56  ;;  %v162_v57 = vpop.xlane.xlu0 %161  ;;  %v165_v58 = vpop.xlane.xlu1 %164 }
  0xd2   :  { %v197_v60 = vmul.f32 0.03125, %v162_v57  ;;  %v198_v61 = vmul.f32 0.03125, %v165_v58  ;;  %v227_v62 = vmul.f32 %v7270_v54, %v7270_v54  ;;  %v228_v63 = vmul.f32 %v7272_v55, %v7272_v55  ;;  %v393_v57 = vld [vmem:[%s8804_s4 + $0x10] sm:$0xff]  ;;  %v394_v58 = vld [vmem:[%s8804_s4 + $0x18] sm:$0xff] }
  0xd4   :  { %v7281_v0 = vsub.f32 %v7212_v12, %v197_v60  ;;  %v7284_v1 = vsub.f32 %v7214_v13, %v198_v61  ;;  %v251_v2 = vsel %vm141_vm0, %v227_v62, 0.0  ;;  %v254_v5 = vsel %vm141_vm0, %v228_v63, 0.0  ;;  %v1020_v60 = vld [vmem:[%s8807_s7] sm:$0xff]  ;;  %v1021_v61 = vld [vmem:[%s8807_s7 + $0x8] sm:$0xff] }
  0xd5   :  { %249 = vadd.xlane.f32.xlu1 %v248_v59  ;;  %252 = vadd.xlane.f32.xlu0 %v251_v2  ;;  %v168_v3 = vpop.xlane.xlu0 %167  ;;  %v171_v4 = vpop.xlane.xlu1 %170  ;;  %v6527_v59 = vpack.c.bf16 %v394_v58, %v393_v57  ;;  %v7360_v62 = vpack.c.bf16 %v1021_v61, %v1020_v60  ;;  %v707_v63 = vld [vmem:[%s8806_s6] sm:$0xff]  ;;  %v708_v2 = vld [vmem:[%s8806_s6 + $0x8] sm:$0xff] }
  0xd6   :  { %v199_v6 = vmul.f32 0.03125, %v168_v3  ;;  %v200_v7 = vmul.f32 0.03125, %v171_v4  ;;  %v229_v8 = vmul.f32 %v7281_v0, %v7281_v0  ;;  %v230_v9 = vmul.f32 %v7284_v1, %v7284_v1  ;;  %v709_v4 = vld [vmem:[%s8806_s6 + $0x10] sm:$0xff] }
  0xd7   :  { %v6531_v3 = vpack.c.bf16 %v708_v2, %v707_v63 }
  0xd8   :  { %v7293_v10 = vsub.f32 %v7220_v16, %v199_v6  ;;  %v7296_v11 = vsub.f32 %v7222_v17, %v200_v7  ;;  %v257_v12 = vsel %vm141_vm0, %v229_v8, 0.0  ;;  %v260_v15 = vsel %vm141_vm0, %v230_v9, 0.0  ;;  %v96_v7 = vld [vmem:[%s8800_s0] sm:$0xff]  ;;  %v97_v8 = vld [vmem:[%s8800_s0 + $0x8] sm:$0xff]  ;;  %v98_v9 = vld [vmem:[%s8800_s0 + $0x10] sm:$0xff] }
  0xd9   :  { %255 = vadd.xlane.f32.xlu1 %v254_v5  ;;  %258 = vadd.xlane.f32.xlu0 %v257_v12  ;;  %v174_v13 = vpop.xlane.xlu0 %173  ;;  %v177_v14 = vpop.xlane.xlu1 %176  ;;  %v710_v5 = vld [vmem:[%s8806_s6 + $0x18] sm:$0xff] }
  0xda   :  { %v201_v18 = vmul.f32 0.03125, %v174_v13  ;;  %v202_v19 = vmul.f32 0.03125, %v177_v14  ;;  %v231_v22 = vmul.f32 %v7293_v10, %v7293_v10  ;;  %v232_v16 = vmul.f32 %v7296_v11, %v7296_v11  ;;  %6532 = vmatprep.subr.bf16.mxu1 %v6531_v3  ;;  %6147 = vmatprep.mubr.msk.f32.mxu1 %vm141_vm0, %v96_v7  ;;  %v99_v12 = vld [vmem:[%s8800_s0 + $0x18] sm:$0xff]  ;;  %v100_v13 = vld [vmem:[%s8800_s0 + $0x20] sm:$0xff]  ;;  %v101_v14 = vld [vmem:[%s8800_s0 + $0x28] sm:$0xff] }
  0xdb   :  { %6534 = vmatpush3.bf16.msra.mxu1 %v6531_v3  ;;  %v6535_v6 = vpack.c.bf16 %v710_v5, %v709_v4  ;;  %v7448_v4 = vld [vmem:[%s8810_s10 + $0x1] ss:$0 sm:$0xff] }
  0xdc   :  { %v7305_v23 = vsub.f32 %v7228_v20, %v201_v18  ;;  %v7308_v17 = vsub.f32 %v7230_v21, %v202_v19  ;;  %v263_v26 = vsel %vm141_vm0, %v231_v22, 0.0  ;;  %v266_v31 = vsel %vm141_vm0, %v232_v16, 0.0  ;;  %v103_v18 = vld [vmem:[%s8800_s0 + $0x38] sm:$0xff]  ;;  %v104_v19 = vld [vmem:[%s8800_s0 + $0x40] sm:$0xff]  ;;  %v105_v22 = vld [vmem:[%s8800_s0 + $0x48] sm:$0xff] }
  0xdd   :  { %261 = vadd.xlane.f32.xlu1 %v260_v15  ;;  %264 = vadd.xlane.f32.xlu0 %v263_v26  ;;  %v180_v27 = vpop.xlane.xlu0 %179  ;;  %v183_v30 = vpop.xlane.xlu1 %182  ;;  %v102_v15 = vld [vmem:[%s8800_s0 + $0x30] sm:$0xff]  ;;  %v107_v26 = vld [vmem:[%s8800_s0 + $0x58] sm:$0xff] }
  0xde   :  { %v203_v32 = vmul.f32 0.03125, %v180_v27  ;;  %v204_v33 = vmul.f32 0.03125, %v183_v30  ;;  %v233_v34 = vmul.f32 %v7305_v23, %v7305_v23  ;;  %v234_v20 = vmul.f32 %v7308_v17, %v7308_v17  ;;  %6536 = vmatprep.subr.bf16.mxu1 %v6535_v6  ;;  %v106_v16 = vld [vmem:[%s8800_s0 + $0x50] sm:$0xff]  ;;  %v108_v27 = vld [vmem:[%s8800_s0 + $0x60] sm:$0xff]  ;;  %v109_v30 = vld [vmem:[%s8800_s0 + $0x68] sm:$0xff] }
  0xdf   :  { %6538 = vmatpush3.bf16.msra.mxu1 %v6535_v6 }
  0xe0   :  { %v7317_v35 = vsub.f32 %v7236_v24, %v203_v32  ;;  %v7320_v21 = vsub.f32 %v7238_v25, %v204_v33  ;;  %v269_v38 = vsel %vm141_vm0, %v233_v34, 0.0  ;;  %v272_v41 = vsel %vm141_vm0, %v234_v20, 0.0  ;;  %v111_v32 = vld [vmem:[%s8800_s0 + $0x78] sm:$0xff] }
  0xe1   :  { %267 = vadd.xlane.f32.xlu1 %v266_v31  ;;  %270 = vadd.xlane.f32.xlu0 %v269_v38  ;;  %v186_v39 = vpop.xlane.xlu0 %185  ;;  %v189_v40 = vpop.xlane.xlu1 %188  ;;  %v110_v31 = vld [vmem:[%s8800_s0 + $0x70] sm:$0xff] }
  0xe2   :  { %v205_v42 = vmul.f32 0.03125, %v186_v39  ;;  %v206_v43 = vmul.f32 0.03125, %v189_v40  ;;  %v235_v46 = vmul.f32 %v7317_v35, %v7317_v35  ;;  %v236_v24 = vmul.f32 %v7320_v21, %v7320_v21  ;;  %6148 = vmatmul.mubr.msk.f32.vlgmr.msra.gmra.mrb[0].mxu1 %vm141_vm0, %v97_v8 }
  0xe3   :  { %6150 = vmatprep.mubr.msk.f32.mxu1 %vm141_vm0, %v98_v9 }
  0xe4   :  { %v7329_v47 = vsub.f32 %v7244_v28, %v205_v42  ;;  %v7332_v25 = vsub.f32 %v7246_v29, %v206_v43  ;;  %v275_v48 = vsel %vm141_vm0, %v235_v46, 0.0  ;;  %v278_v49 = vsel %vm141_vm0, %v236_v24, 0.0  ;;  %v391_v29 = vld [vmem:[%s8804_s4] sm:$0xff] }
  0xe5   :  { %273 = vadd.xlane.f32.xlu1 %v272_v41  ;;  %276 = vadd.xlane.f32.xlu0 %v275_v48  ;;  %v6523_v56 = vpack.c.bf16 %v392_v53, %v391_v29 }
  0xe6   :  { %v237_v50 = vmul.f32 %v7329_v47, %v7329_v47  ;;  %v238_v51 = vmul.f32 %v7332_v25, %v7332_v25  ;;  %6151 = vmatmul.mubr.msk.f32.gmra.mrb[2].mxu1 %vm141_vm0, %v99_v12 }
  0xe7   :  { %6524 = vmatprep.subr.bf16.mxu0 %v6523_v56  ;;  %6153 = vmatprep.mubr.msk.f32.mxu1 %vm141_vm0, %v100_v13 }
  0xe8   :  { %v281_v52 = vsel %vm141_vm0, %v237_v50, 0.0  ;;  %v284_v28 = vsel %vm141_vm0, %v238_v51, 0.0  ;;  %6526 = vmatpush3.bf16.msra.mxu0 %v6523_v56 }
  0xe9   :  { %279 = vadd.xlane.f32.xlu1 %v278_v49  ;;  %282 = vadd.xlane.f32.xlu0 %v281_v52 }
  0xea   :  { %6528 = vmatprep.subr.bf16.mxu0 %v6527_v59  ;;  %6154 = vmatmul.mubr.msk.f32.gmra.mrb[4].mxu1 %vm141_vm0, %v101_v14 }
  0xeb   :  { %6156 = vmatprep.mubr.msk.f32.mxu1 %vm141_vm0, %v102_v15 }
  0xec   :  { %6530 = vmatpush3.bf16.msra.mxu0 %v6527_v59  ;;  %v7442_v59 = vld [vmem:[%s8810_s10] ss:$0 sm:$0xff] }
  0xed   :  { %285 = vadd.xlane.f32.xlu1 %v284_v28  ;;  %6540 = vmatprep.subr.bf16.mxu0 %v7360_v62 }
  0xee   :  { %6157 = vmatmul.mubr.msk.f32.gmra.mrb[6].mxu1 %vm141_vm0, %v103_v18 }
  0xef   :  { %6159 = vmatprep.mubr.msk.f32.mxu1 %vm141_vm0, %v104_v19 }
  0xf2   :  { %6160 = vmatmul.mubr.msk.f32.gmra.mrb[8].mxu1 %vm141_vm0, %v105_v22  ;;  %v1022_v22 = vld [vmem:[%s8807_s7 + $0x10] sm:$0xff] }
  0xf3   :  { %6162 = vmatprep.mubr.msk.f32.mxu1 %vm141_vm0, %v106_v16  ;;  %v1023_v16 = vld [vmem:[%s8807_s7 + $0x18] sm:$0xff] }
  0xf6   :  { %6163 = vmatmul.mubr.msk.f32.gmra.mrb[10].mxu1 %vm141_vm0, %v107_v26 }
  0xf7   :  { %6165 = vmatprep.mubr.msk.f32.mxu1 %vm141_vm0, %v108_v27 }
  0xfa   :  { %6166 = vmatmul.mubr.msk.f32.gmra.mrb[12].mxu1 %vm141_vm0, %v109_v30 }
  0xfb   :  { %6168 = vmatprep.mubr.msk.f32.mxu1 %vm141_vm0, %v110_v31 }
  0xfe   :  { %6169 = vmatmul.mubr.msk.f32.gmra.mrb[14].mxu1 %vm141_vm0, %v111_v32 }
 0x15a   :  { %v241_v33 = vpop.xlane.xlu0 %240 }
 0x15b   :  { %v287_v34 = vmul.f32 0.03125, %v241_v33 }
 0x15d   :  { %v303_v20 = vadd.f32 1e-05, %v287_v34 }
 0x15e   :  { %v244_v38 = vpop.xlane.xlu1 %243  ;;  %v247_v39 = vpop.xlane.xlu0 %246 }
 0x15f   :  { %6765 = vrsqrt.f32 %v303_v20  ;;  %v288_v40 = vmul.f32 0.03125, %v244_v38  ;;  %v289_v41 = vmul.f32 0.03125, %v247_v39  ;;  %v6543_v38 = vpack.c.bf16 %v1023_v16, %v1022_v22 }
 0x161   :  { %v304_v42 = vadd.f32 1e-05, %v288_v40  ;;  %v305_v43 = vadd.f32 1e-05, %v289_v41 }
 0x162   :  { %v250_v46 = vpop.xlane.xlu1 %249  ;;  %v253_v24 = vpop.xlane.xlu0 %252 }
 0x163   :  { %6767 = vrsqrt.f32 %v304_v42  ;;  %v290_v48 = vmul.f32 0.03125, %v250_v46  ;;  %v291_v49 = vmul.f32 0.03125, %v253_v24 }
 0x164   :  { %6769 = vrsqrt.f32 %v305_v43 }
 0x165   :  { %v306_v50 = vadd.f32 1e-05, %v290_v48  ;;  %v307_v51 = vadd.f32 1e-05, %v291_v49 }
 0x166   :  { %v256_v52 = vpop.xlane.xlu1 %255  ;;  %v259_v28 = vpop.xlane.xlu0 %258 }
 0x167   :  { %6771 = vrsqrt.f32 %v306_v50  ;;  %v292_v29 = vmul.f32 0.03125, %v256_v52  ;;  %v293_v53 = vmul.f32 0.03125, %v259_v28 }
 0x168   :  { %6773 = vrsqrt.f32 %v307_v51 }
 0x169   :  { %v6766_v56 = vpop.eup %6765  ;;  %v308_v57 = vadd.f32 1e-05, %v292_v29  ;;  %v309_v58 = vadd.f32 1e-05, %v293_v53 }
 0x16a   :  { %v262_v60 = vpop.xlane.xlu1 %261  ;;  %v265_v61 = vpop.xlane.xlu0 %264  ;;  %v335_v63 = vmul.f32 %v6766_v56, %v7252_v36 }
 0x16b   :  { %6775 = vrsqrt.f32 %v308_v57  ;;  %v294_v2 = vmul.f32 0.03125, %v262_v60  ;;  %v295_v3 = vmul.f32 0.03125, %v265_v61 }
 0x16c   :  { %6777 = vrsqrt.f32 %v309_v58  ;;  %v355_v5 = vmul.f32 %v7442_v59, %v335_v63 }
 0x16d   :  { %v6768_v6 = vpop.eup %6767  ;;  %v310_v7 = vadd.f32 1e-05, %v294_v2  ;;  %v311_v8 = vadd.f32 1e-05, %v295_v3 }
 0x16e   :  { %v6770_v9 = vpop.eup %6769  ;;  %v268_v12 = vpop.xlane.xlu1 %267  ;;  %v375_v14 = vadd.f32 %v7448_v4, %v355_v5  ;;  %v336_v36 = vmul.f32 %v6768_v6, %v7260_v44 }
 0x16f   :  { %v271_v13 = vpop.xlane.xlu0 %270  ;;  %6779 = vrsqrt.f32 %v310_v7  ;;  %v296_v15 = vmul.f32 0.03125, %v268_v12  ;;  %v337_v19 = vmul.f32 %v6770_v9, %v7254_v37 }
 0x170   :  { %v297_v18 = vmul.f32 0.03125, %v271_v13  ;;  %6781 = vrsqrt.f32 %v311_v8  ;;  %6115 = vmatprep.mubr.msk.f32.mxu0 %vm141_vm0, %v375_v14  ;;  %v356_v26 = vmul.f32 %v7442_v59, %v336_v36 }
 0x171   :  { %v6772_v27 = vpop.eup %6771  ;;  %v312_v44 = vadd.f32 1e-05, %v296_v15  ;;  %v357_v31 = vmul.f32 %v7442_v59, %v337_v19 }
 0x172   :  { %v313_v30 = vadd.f32 1e-05, %v297_v18  ;;  %v6774_v32 = vpop.eup %6773  ;;  %v274_v37 = vpop.xlane.xlu1 %273  ;;  %v376_v34 = vadd.f32 %v7448_v4, %v356_v26  ;;  %v338_v20 = vmul.f32 %v6772_v27, %v7262_v45 }
 0x173   :  { %v277_v33 = vpop.xlane.xlu0 %276  ;;  %6783 = vrsqrt.f32 %v312_v44  ;;  %v298_v39 = vmul.f32 0.03125, %v274_v37  ;;  %v377_v41 = vadd.f32 %v7448_v4, %v357_v31  ;;  %v339_v43 = vmul.f32 %v6774_v32, %v7270_v54 }
 0x174   :  { %v299_v40 = vmul.f32 0.03125, %v277_v33  ;;  %6785 = vrsqrt.f32 %v313_v30  ;;  %6116 = vmatmul.mubr.msk.f32.vlgmr.msra.gmra.mrb[0].mxu0 %vm141_vm0, %v376_v34  ;;  %v358_v42 = vmul.f32 %v7442_v59, %v338_v20 }
 0x175   :  { %v6776_v46 = vpop.eup %6775  ;;  %v314_v24 = vadd.f32 1e-05, %v298_v39  ;;  %6118 = vmatprep.mubr.msk.f32.mxu0 %vm141_vm0, %v377_v41  ;;  %6542 = vmatpush3.bf16.msra.mxu0 %v7360_v62  ;;  %v359_v52 = vmul.f32 %v7442_v59, %v339_v43  ;;  %v112_v41 = vld [vmem:[#allocation2] sm:$0xff]  ;;  %v114_v43 = vld [vmem:[#allocation2 + $0x10] sm:$0xff] }
 0x176   :  { %v315_v48 = vadd.f32 1e-05, %v299_v40  ;;  %v6778_v45 = vpop.eup %6777  ;;  %v280_v49 = vpop.xlane.xlu1 %279  ;;  %v378_v51 = vadd.f32 %v7448_v4, %v358_v42  ;;  %v340_v28 = vmul.f32 %v6776_v46, %v7272_v55  ;;  %6544 = vmatprep.subr.bf16.mxu0 %v6543_v38  ;;  %v113_v42 = vld [vmem:[#allocation2 + $0x8] sm:$0xff]  ;;  %v116_v46 = vld [vmem:[#allocation2 + $0x20] sm:$0xff] }
 0x177   :  { %v283_v50 = vpop.xlane.xlu0 %282  ;;  %6787 = vrsqrt.f32 %v314_v24  ;;  %v300_v29 = vmul.f32 0.03125, %v280_v49  ;;  %v341_v53 = vmul.f32 %v6778_v45, %v7281_v0  ;;  %v379_v62 = vadd.f32 %v7448_v4, %v359_v52  ;;  %v118_v24 = vld [vmem:[#allocation2 + $0x30] sm:$0xff]  ;;  %v121_v45 = vld [vmem:[#allocation2 + $0x48] sm:$0xff] }
 0x178   :  { %v301_v54 = vmul.f32 0.03125, %v283_v50  ;;  %6789 = vrsqrt.f32 %v315_v48  ;;  %6119 = vmatmul.mubr.msk.f32.gmra.mrb[2].mxu0 %vm141_vm0, %v378_v51  ;;  %v360_v56 = vmul.f32 %v7442_v59, %v340_v28  ;;  %v120_v48 = vld [vmem:[#allocation2 + $0x40] sm:$0xff]  ;;  %v122_v49 = vld [vmem:[#allocation2 + $0x50] sm:$0xff]  ;;  %v123_v50 = vld [vmem:[#allocation2 + $0x58] sm:$0xff] }
 0x179   :  { %v6780_v57 = vpop.eup %6779  ;;  %v316_v58 = vadd.f32 1e-05, %v300_v29  ;;  %v361_v61 = vmul.f32 %v7442_v59, %v341_v53  ;;  %6546 = vmatpush3.bf16.msra.mxu0 %v6543_v38  ;;  %6121 = vmatprep.mubr.msk.f32.mxu0 %vm141_vm0, %v379_v62  ;;  %v124_v51 = vld [vmem:[#allocation2 + $0x60] sm:$0xff]  ;;  %v125_v52 = vld [vmem:[#allocation2 + $0x68] sm:$0xff]  ;;  %v126_v28 = vld [vmem:[#allocation2 + $0x70] sm:$0xff] }
 0x17a   :  { %v317_v60 = vadd.f32 1e-05, %v301_v54  ;;  %v6782_v55 = vpop.eup %6781  ;;  %v286_v63 = vpop.xlane.xlu1 %285  ;;  %v380_v2 = vadd.f32 %v7448_v4, %v360_v56  ;;  %v342_v0 = vmul.f32 %v6780_v57, %v7284_v1  ;;  %v127_v29 = vld [vmem:[#allocation2 + $0x78] sm:$0xff]  ;;  %v7539_v53 = vld [vmem:[%s8809_s9] ss:$0 sm:$0xff] }
 0x17b   :  { %6791 = vrsqrt.f32 %v316_v58  ;;  %v302_v3 = vmul.f32 0.03125, %v286_v63  ;;  %v381_v5 = vadd.f32 %v7448_v4, %v361_v61  ;;  %v343_v6 = vmul.f32 %v6782_v55, %v7293_v10 }
 0x17c   :  { %6793 = vrsqrt.f32 %v317_v60  ;;  %6122 = vmatmul.mubr.msk.f32.gmra.mrb[4].mxu0 %vm141_vm0, %v380_v2  ;;  %v362_v7 = vmul.f32 %v7442_v59, %v342_v0 }
 0x17d   :  { %v6784_v8 = vpop.eup %6783  ;;  %v318_v9 = vadd.f32 1e-05, %v302_v3  ;;  %6124 = vmatprep.mubr.msk.f32.mxu0 %vm141_vm0, %v381_v5  ;;  %v363_v12 = vmul.f32 %v7442_v59, %v343_v6 }
 0x17e   :  { %v6786_v13 = vpop.eup %6785  ;;  %v382_v1 = vadd.f32 %v7448_v4, %v362_v7  ;;  %v344_v14 = vmul.f32 %v6784_v8, %v7296_v11 }
 0x17f   :  { %6795 = vrsqrt.f32 %v318_v9  ;;  %v383_v36 = vadd.f32 %v7448_v4, %v363_v12  ;;  %v345_v10 = vmul.f32 %v6786_v13, %v7305_v23 }
 0x180   :  { %6125 = vmatmul.mubr.msk.f32.gmra.mrb[6].mxu0 %vm141_vm0, %v382_v1  ;;  %v364_v15 = vmul.f32 %v7442_v59, %v344_v14 }
 0x181   :  { %v6788_v18 = vpop.eup %6787  ;;  %6127 = vmatprep.mubr.msk.f32.mxu0 %vm141_vm0, %v383_v36  ;;  %v365_v19 = vmul.f32 %v7442_v59, %v345_v10 }
 0x182   :  { %v6790_v22 = vpop.eup %6789  ;;  %v384_v16 = vadd.f32 %v7448_v4, %v364_v15  ;;  %v346_v26 = vmul.f32 %v6788_v18, %v7308_v17 }
 0x183   :  { %v385_v11 = vadd.f32 %v7448_v4, %v365_v19  ;;  %v347_v27 = vmul.f32 %v6790_v22, %v7317_v35 }
 0x184   :  { %6128 = vmatmul.mubr.msk.f32.gmra.mrb[8].mxu0 %vm141_vm0, %v384_v16  ;;  %v366_v23 = vmul.f32 %v7442_v59, %v346_v26 }
 0x185   :  { %v6792_v44 = vpop.eup %6791  ;;  %6130 = vmatprep.mubr.msk.f32.mxu0 %vm141_vm0, %v385_v11  ;;  %v367_v30 = vmul.f32 %v7442_v59, %v347_v27 }
 0x186   :  { %v6794_v31 = vpop.eup %6793  ;;  %v386_v32 = vadd.f32 %v7448_v4, %v366_v23  ;;  %v348_v37 = vmul.f32 %v6792_v44, %v7320_v21 }
 0x187   :  { %v387_v17 = vadd.f32 %v7448_v4, %v367_v30  ;;  %v349_v33 = vmul.f32 %v6794_v31, %v7329_v47 }
 0x188   :  { %6131 = vmatmul.mubr.msk.f32.gmra.mrb[10].mxu0 %vm141_vm0, %v386_v32  ;;  %v368_v35 = vmul.f32 %v7442_v59, %v348_v37 }
 0x189   :  { %v6796_v34 = vpop.eup %6795  ;;  %6133 = vmatprep.mubr.msk.f32.mxu0 %vm141_vm0, %v387_v17  ;;  %v369_v20 = vmul.f32 %v7442_v59, %v349_v33 }
 0x18a   :  { %v388_v38 = vadd.f32 %v7448_v4, %v368_v35  ;;  %v350_v39 = vmul.f32 %v6796_v34, %v7332_v25  ;;  %v115_v25 = vld [vmem:[#allocation2 + $0x18] sm:$0xff] }
 0x18b   :  { %v389_v40 = vadd.f32 %v7448_v4, %v369_v20 }
 0x18c   :  { %6134 = vmatmul.mubr.msk.f32.gmra.mrb[12].mxu0 %vm141_vm0, %v388_v38  ;;  %v370_v21 = vmul.f32 %v7442_v59, %v350_v39  ;;  %v117_v59 = vld [vmem:[#allocation2 + $0x28] sm:$0xff] }
 0x18d   :  { %6136 = vmatprep.mubr.msk.f32.mxu0 %vm141_vm0, %v389_v40  ;;  %v7580_v40 = vld [vmem:[%s8809_s9 + $0x2] ss:$0 sm:$0xff] }
 0x18e   :  { %v390_v47 = vadd.f32 %v7448_v4, %v370_v21  ;;  %v119_v4 = vld [vmem:[#allocation2 + $0x38] sm:$0xff]  ;;  %v7585_v21 = vld [vmem:[%s8809_s9 + $0x3] ss:$0 sm:$0xff] }
 0x190   :  { %6137 = vmatmul.mubr.msk.f32.gmra.mrb[14].mxu0 %vm141_vm0, %v390_v47 }
 0x191   :  { %6179 = vmatprep.mubr.msk.f32.mxu0 %vm141_vm0, %v112_v41  ;;  %v7592_v41 = vld [vmem:[%s8809_s9 + $0x4] ss:$0 sm:$0xff] }
 0x194   :  { %6180 = vmatmul.mubr.msk.f32.vlgmr.msra.gmra.mrb[16].mxu0 %vm141_vm0, %v113_v42 }
 0x195   :  { %6182 = vmatprep.mubr.msk.f32.mxu0 %vm141_vm0, %v114_v43 }
 0x198   :  { %6183 = vmatmul.mubr.msk.f32.gmra.mrb[18].mxu0 %vm141_vm0, %v115_v25  ;;  %v7597_v25 = vld [vmem:[%s8809_s9 + $0x5] ss:$0 sm:$0xff] }
 0x199   :  { %6185 = vmatprep.mubr.msk.f32.mxu0 %vm141_vm0, %v116_v46 }
 0x19c   :  { %6186 = vmatmul.mubr.msk.f32.gmra.mrb[20].mxu0 %vm141_vm0, %v117_v59 }
 0x19d   :  { %6188 = vmatprep.mubr.msk.f32.mxu0 %vm141_vm0, %v118_v24 }
 0x1a0   :  { %6189 = vmatmul.mubr.msk.f32.gmra.mrb[22].mxu0 %vm141_vm0, %v119_v4 }
 0x1a1   :  { %6191 = vmatprep.mubr.msk.f32.mxu0 %vm141_vm0, %v120_v48 }
 0x1a4   :  { %6192 = vmatmul.mubr.msk.f32.gmra.mrb[24].mxu0 %vm141_vm0, %v121_v45 }
 0x1a5   :  { %6194 = vmatprep.mubr.msk.f32.mxu0 %vm141_vm0, %v122_v49 }
 0x1a8   :  { %6195 = vmatmul.mubr.msk.f32.gmra.mrb[26].mxu0 %vm141_vm0, %v123_v50 }
 0x1a9   :  { %6197 = vmatprep.mubr.msk.f32.mxu0 %vm141_vm0, %v124_v51 }
 0x1ac   :  { %6198 = vmatmul.mubr.msk.f32.gmra.mrb[28].mxu0 %vm141_vm0, %v125_v52 }
 0x1ad   :  { %6200 = vmatprep.mubr.msk.f32.mxu0 %vm141_vm0, %v126_v28 }
 0x1b0   :  { %6201 = vmatmul.mubr.msk.f32.gmra.mrb[30].mxu0 %vm141_vm0, %v127_v29 }
 0x1b5   :  { %v6149_v54 = vpop.f32.mrb[0].mxu1 }
 0x1b6   :  { %v829_v62 = vpop.f32.mrb[1].mxu1  ;;  %v835_v57 = vadd.f32 %v6149_v54, %v7539_v53 }
 0x1b7   :  { %v830_v56 = vadd.f32 %v7539_v53, %v829_v62 }
 0x1b8   :  { %v5694_v60 = vmul.f32 -1.442695, %v835_v57 }
 0x1b9   :  { %v5693_v58 = vmul.f32 -1.442695, %v830_v56  ;;  %v6152_v61 = vpop.f32.mrb[2].mxu1 }
 0x1ba   :  { %v839_v55 = vpop.f32.mrb[3].mxu1  ;;  %v7547_v2 = vadd.f32 %v6152_v61, %v7539_v53 }
 0x1bb   :  { %6797 = vpow2.f32 %v5693_v58  ;;  %v7544_v63 = vadd.f32 %v7539_v53, %v839_v55 }
 0x1bc   :  { %6799 = vpow2.f32 %v5694_v60  ;;  %v5696_v3 = vmul.f32 -1.442695, %v7547_v2 }
 0x1bd   :  { %v5695_v0 = vmul.f32 -1.442695, %v7544_v63  ;;  %v6155_v6 = vpop.f32.mrb[4].mxu1 }
 0x1be   :  { %v849_v9 = vpop.f32.mrb[5].mxu1  ;;  %v7555_v14 = vadd.f32 %v6155_v6, %v7539_v53 }
 0x1bf   :  { %6801 = vpow2.f32 %v5695_v0  ;;  %v7552_v13 = vadd.f32 %v7539_v53, %v849_v9 }
 0x1c0   :  { %6803 = vpow2.f32 %v5696_v3  ;;  %v5698_v18 = vmul.f32 -1.442695, %v7555_v14 }
 0x1c1   :  { %v6158_v1 = vpop.f32.mrb[6].mxu1  ;;  %v5697_v10 = vmul.f32 -1.442695, %v7552_v13 }
 0x1c2   :  { %v859_v36 = vpop.f32.mrb[7].mxu1  ;;  %v7568_v37 = vadd.f32 %v6158_v1, %v7539_v53 }
 0x1c3   :  { %v7562_v31 = vadd.f32 %v7539_v53, %v859_v36 }
 0x1c4   :  { %v5700_v34 = vmul.f32 -1.442695, %v7568_v37 }
 0x1c5   :  { %v6798_v5 = vpop.eup %6797  ;;  %v6161_v15 = vpop.f32.mrb[8].mxu1  ;;  %v5699_v33 = vmul.f32 -1.442695, %v7562_v31 }
 0x1c6   :  { %v6800_v7 = vpop.eup %6799  ;;  %v956_v8 = vadd.f32 1.0, %v6798_v5  ;;  %v869_v19 = vpop.f32.mrb[9].mxu1  ;;  %v7614_v28 = vadd.f32 %v6161_v15, %v7539_v53 }
 0x1c7   :  { %v957_v12 = vadd.f32 1.0, %v6800_v7  ;;  %v7605_v50 = vadd.f32 %v7539_v53, %v869_v19 }
 0x1c8   :  { %6805 = vrcp.f32 %v956_v8  ;;  %v5702_v62 = vmul.f32 -1.442695, %v7614_v28 }
 0x1c9   :  { %6807 = vrcp.f32 %v957_v12  ;;  %v7559_v22 = vpop.f32.mrb[10].mxu1  ;;  %v6802_v26 = vpop.eup %6801  ;;  %v5701_v29 = vmul.f32 -1.442695, %v7605_v50 }
 0x1ca   :  { %6809 = vpow2.f32 %v5697_v10  ;;  %v879_v16 = vpop.f32.mrb[11].mxu1  ;;  %v6804_v27 = vpop.eup %6803  ;;  %v958_v23 = vadd.f32 1.0, %v6802_v26  ;;  %v7641_v1 = vadd.f32 %v7559_v22, %v7539_v53 }
 0x1cb   :  { %6811 = vpow2.f32 %v5698_v18  ;;  %v959_v30 = vadd.f32 1.0, %v6804_v27  ;;  %v7631_v8 = vadd.f32 %v7539_v53, %v879_v16 }
 0x1cc   :  { %6813 = vrcp.f32 %v958_v23  ;;  %v5704_v18 = vmul.f32 -1.442695, %v7641_v1 }
 0x1cd   :  { %v6167_v11 = vpop.f32.mrb[12].mxu1  ;;  %6815 = vrcp.f32 %v959_v30  ;;  %v5703_v36 = vmul.f32 -1.442695, %v7631_v8 }
 0x1ce   :  { %v889_v44 = vpop.f32.mrb[13].mxu1  ;;  %v7571_v17 = vadd.f32 %v6167_v11, %v7539_v53  ;;  %6817 = vpow2.f32 %v5699_v33 }
 0x1cf   :  { %v7565_v32 = vadd.f32 %v7539_v53, %v889_v44  ;;  %6819 = vpow2.f32 %v5700_v34 }
 0x1d0   :  { %v5706_v20 = vmul.f32 -1.442695, %v7571_v17 }
 0x1d1   :  { %v5705_v38 = vmul.f32 -1.442695, %v7565_v32 }
 0x1d2   :  { %v6806_v35 = vpop.eup %6805  ;;  %6821 = vpow2.f32 %v5706_v20  ;;  %v6170_v20 = vpop.f32.mrb[14].mxu1 }
 0x1d3   :  { %v6808_v39 = vpop.eup %6807  ;;  %v7587_v47 = vmul.f32 %v6806_v35, %v830_v56  ;;  %6823 = vpow2.f32 %v5705_v38 }
 0x1d4   :  { %v1005_v42 = vmul.f32 %v6808_v39, %v835_v57  ;;  %v6810_v43 = vpop.eup %6809 }
 0x1d5   :  { %8824 = vst [vmem:[#allocation12_spill] sm:$0xff] %v7587_v47  ;;  %v1337_v46 = vmul.f32 %v7580_v40, %v7587_v47  ;;  %v6812_v59 = vpop.eup %6811  ;;  %v960_v48 = vadd.f32 1.0, %v6810_v43  ;;  %v7664_v43 = vadd.f32 %v6170_v20, %v7539_v53 }
 0x1d6   :  { %v1338_v24 = vmul.f32 %v7580_v40, %v1005_v42  ;;  %v1378_v4 = vmul.f32 %v7585_v21, %v1005_v42  ;;  %v961_v49 = vadd.f32 1.0, %v6812_v59  ;;  %v6814_v54 = vpop.eup %6813  ;;  %v899_v42 = vpop.f32.mrb[15].mxu1 }
 0x1d7   :  { %v1357_v45 = vadd.f32 %v7592_v41, %v1337_v46  ;;  %6825 = vrcp.f32 %v960_v48  ;;  %v6816_v56 = vpop.eup %6815  ;;  %v7620_v57 = vmul.f32 %v6814_v54, %v7544_v63  ;;  %v7667_v46 = vadd.f32 %v7539_v53, %v899_v42 }
 0x1d8   :  { %v7608_v51 = vadd.f32 %v7592_v41, %v1338_v24  ;;  %v7611_v52 = vadd.f32 %v7597_v25, %v1378_v4  ;;  %6827 = vrcp.f32 %v961_v49  ;;  %v1007_v58 = vmul.f32 %v6816_v56, %v7547_v2  ;;  %v6818_v60 = vpop.eup %6817 }
 0x1d9   :  { %6207 = vmatprep.mubr.msk.f32.mxu1 %vm1516_vm1, %v1357_v45  ;;  %8826 = vst [vmem:[#allocation14_spill] sm:$0xff] %v7620_v57  ;;  %6829 = vpow2.f32 %v5701_v29  ;;  %v1339_v61 = vmul.f32 %v7580_v40, %v7620_v57  ;;  %v6820_v55 = vpop.eup %6819  ;;  %v962_v5 = vadd.f32 1.0, %v6818_v60  ;;  %v5708_v48 = vmul.f32 -1.442695, %v7664_v43 }
 0x1da   :  { %8825 = vst [vmem:[#allocation13_spill] sm:$0xff] %v7611_v52  ;;  %6831 = vpow2.f32 %v5702_v62  ;;  %v1340_v0 = vmul.f32 %v7580_v40, %v1007_v58  ;;  %v1380_v3 = vmul.f32 %v7585_v21, %v1007_v58  ;;  %v963_v63 = vadd.f32 1.0, %v6820_v55 }
 0x1db   :  { %v7628_v7 = vadd.f32 %v7592_v41, %v1339_v61  ;;  %6833 = vrcp.f32 %v962_v5  ;;  %v5707_v45 = vmul.f32 -1.442695, %v7667_v46 }
 0x1dc   :  { %v6822_v6 = vpop.eup %6821  ;;  %v7634_v9 = vadd.f32 %v7592_v41, %v1340_v0  ;;  %v7637_v12 = vadd.f32 %v7597_v25, %v1380_v3  ;;  %6835 = vrcp.f32 %v963_v63 }
 0x1dd   :  { %v6824_v2 = vpop.eup %6823  ;;  %v969_v10 = vadd.f32 1.0, %v6822_v6  ;;  %6837 = vpow2.f32 %v5703_v36 }
 0x1de   :  { %8827 = vst [vmem:[#allocation15_spill] sm:$0xff] %v7637_v12  ;;  %v968_v19 = vadd.f32 1.0, %v6824_v2  ;;  %6839 = vpow2.f32 %v5704_v18 }
 0x1df   :  { %6841 = vrcp.f32 %v969_v10 }
 0x1e0   :  { %6843 = vrcp.f32 %v968_v19 }
 0x1e1   :  { %v6826_v15 = vpop.eup %6825 }
 0x1e2   :  { %v6828_v16 = vpop.eup %6827  ;;  %v1008_v26 = vmul.f32 %v6826_v15, %v7552_v13 }
 0x1e3   :  { %v1009_v11 = vmul.f32 %v6828_v16, %v7555_v14  ;;  %v6830_v27 = vpop.eup %6829 }
 0x1e4   :  { %v1341_v23 = vmul.f32 %v7580_v40, %v1008_v26  ;;  %v1381_v22 = vmul.f32 %v7585_v21, %v1008_v26  ;;  %v6832_v44 = vpop.eup %6831  ;;  %v964_v35 = vadd.f32 1.0, %v6830_v27 }
 0x1e5   :  { %v1342_v30 = vmul.f32 %v7580_v40, %v1009_v11  ;;  %v1382_v33 = vmul.f32 %v7585_v21, %v1009_v11  ;;  %v965_v14 = vadd.f32 1.0, %v6832_v44  ;;  %v6834_v59 = vpop.eup %6833 }
 0x1e6   :  { %v7652_v34 = vadd.f32 %v7592_v41, %v1341_v23  ;;  %v7655_v13 = vadd.f32 %v7597_v25, %v1381_v22  ;;  %6845 = vrcp.f32 %v964_v35  ;;  %v6836_v24 = vpop.eup %6835  ;;  %v1010_v4 = vmul.f32 %v6834_v59, %v7562_v31 }
 0x1e7   :  { %v7658_v38 = vadd.f32 %v7592_v41, %v1342_v30  ;;  %v7661_v39 = vadd.f32 %v7597_v25, %v1382_v33  ;;  %6847 = vrcp.f32 %v965_v14  ;;  %v1011_v49 = vmul.f32 %v6836_v24, %v7568_v37  ;;  %v6838_v29 = vpop.eup %6837 }
 0x1e8   :  { %8828 = vst [vmem:[#allocation16_spill] sm:$0xff] %v7655_v13  ;;  %v1343_v54 = vmul.f32 %v7580_v40, %v1010_v4  ;;  %v1383_v62 = vmul.f32 %v7585_v21, %v1010_v4  ;;  %6849 = vpow2.f32 %v5708_v48  ;;  %v6840_v56 = vpop.eup %6839  ;;  %v966_v60 = vadd.f32 1.0, %v6838_v29 }
 0x1e9   :  { %8829 = vst [vmem:[#allocation17_spill] sm:$0xff] %v7661_v39  ;;  %v1344_v53 = vmul.f32 %v7580_v40, %v1011_v49  ;;  %v1384_v58 = vmul.f32 %v7585_v21, %v1011_v49  ;;  %6851 = vpow2.f32 %v5707_v45  ;;  %v6842_v31 = vpop.eup %6841  ;;  %v967_v37 = vadd.f32 1.0, %v6840_v56 }
 0x1ea   :  { %v7678_v61 = vadd.f32 %v7592_v41, %v1343_v54  ;;  %v7681_v55 = vadd.f32 %v7597_v25, %v1383_v62  ;;  %v6844_v0 = vpop.eup %6843  ;;  %6853 = vrcp.f32 %v966_v60  ;;  %v1017_v6 = vmul.f32 %v6842_v31, %v7571_v17 }
 0x1eb   :  { %v7684_v3 = vadd.f32 %v7592_v41, %v1344_v53  ;;  %v7687_v5 = vadd.f32 %v7597_v25, %v1384_v58  ;;  %6855 = vrcp.f32 %v967_v37  ;;  %v1016_v63 = vmul.f32 %v6844_v0, %v7565_v32 }
 0x1ec   :  { %8830 = vst [vmem:[#allocation18_spill] sm:$0xff] %v7681_v55  ;;  %v1350_v36 = vmul.f32 %v7580_v40, %v1017_v6  ;;  %v1390_v10 = vmul.f32 %v7585_v21, %v1017_v6 }
 0x1ed   :  { %8831 = vst [vmem:[#allocation19_spill] sm:$0xff] %v7687_v5  ;;  %v1349_v19 = vmul.f32 %v7580_v40, %v1016_v63  ;;  %v1389_v16 = vmul.f32 %v7585_v21, %v1016_v63  ;;  %v8815_v5 = vlaneseq }
 0x1ee   :  { %v7698_v11 = vadd.f32 %v7592_v41, %v1350_v36  ;;  %v7701_v17 = vadd.f32 %v7597_v25, %v1390_v10 }
 0x1ef   :  { %v1369_v23 = vadd.f32 %v7592_v41, %v1349_v19  ;;  %v1494_v12 = vshrl.u32 %v8815_v5, 7 }
 0x1f0   :  { %v6846_v2 = vpop.eup %6845  ;;  %8832 = vst [vmem:[#allocation20_spill] sm:$0xff] %v7701_v17 }
 0x1f1   :  { %v6848_v15 = vpop.eup %6847  ;;  %v1012_v18 = vmul.f32 %v6846_v2, %v7605_v50  ;;  %v7707_v50 = vadd.f32 %v7597_v25, %v1389_v16  ;;  %6249 = vmatprep.mubr.msk.f32.mxu0 %vm1516_vm1, %v1369_v23 }
 0x1f2   :  { %v1013_v26 = vmul.f32 %v6848_v15, %v7614_v28  ;;  %v6850_v28 = vpop.eup %6849 }
 0x1f3   :  { %v1345_v32 = vmul.f32 %v7580_v40, %v1012_v18  ;;  %v1385_v27 = vmul.f32 %v7585_v21, %v1012_v18  ;;  %8833 = vst [vmem:[#allocation21_spill] sm:$0xff] %v7707_v50  ;;  %v6852_v35 = vpop.eup %6851  ;;  %v971_v42 = vadd.f32 1.0, %v6850_v28 }
 0x1f4   :  { %v1346_v22 = vmul.f32 %v7580_v40, %v1013_v26  ;;  %v1386_v44 = vmul.f32 %v7585_v21, %v1013_v26  ;;  %v970_v59 = vadd.f32 1.0, %v6852_v35  ;;  %v6854_v24 = vpop.eup %6853 }
 0x1f5   :  { %v7712_v30 = vadd.f32 %v7592_v41, %v1345_v32  ;;  %v7715_v33 = vadd.f32 %v7597_v25, %v1385_v27  ;;  %6857 = vrcp.f32 %v971_v42  ;;  %v6856_v4 = vpop.eup %6855  ;;  %v1014_v48 = vmul.f32 %v6854_v24, %v7631_v8 }
 0x1f6   :  { %v7719_v14 = vadd.f32 %v7592_v41, %v1346_v22  ;;  %v7722_v20 = vadd.f32 %v7597_v25, %v1386_v44  ;;  %6859 = vrcp.f32 %v970_v59  ;;  %v1015_v45 = vmul.f32 %v6856_v4, %v7641_v1  ;;  %v7769_v22 = vld [vmem:[%s8805_s5] ss:$0 sm:$0xff] }
 0x1f7   :  { %8834 = vst [vmem:[#allocation22_spill] sm:$0xff] %v7712_v30  ;;  %8835 = vst [vmem:[#allocation23_spill] sm:$0xff] %v7715_v33  ;;  %v1347_v49 = vmul.f32 %v7580_v40, %v1014_v48  ;;  %v1387_v29 = vmul.f32 %v7585_v21, %v1014_v48 }
 0x1f8   :  { %8836 = vst [vmem:[#allocation24_spill] sm:$0xff] %v7719_v14  ;;  %8837 = vst [vmem:[#allocation25_spill] sm:$0xff] %v7722_v20  ;;  %v1348_v54 = vmul.f32 %v7580_v40, %v1015_v45  ;;  %v1388_v62 = vmul.f32 %v7585_v21, %v1015_v45 }
 0x1f9   :  { %v7731_v56 = vadd.f32 %v7592_v41, %v1347_v49  ;;  %v7734_v53 = vadd.f32 %v7597_v25, %v1387_v29  ;;  %8848 = vst [vmem:[#allocation36_spill] sm:$0xff] %v7769_v22 }
 0x1fa   :  { %v7737_v58 = vadd.f32 %v7592_v41, %v1348_v54  ;;  %v7740_v8 = vadd.f32 %v7597_v25, %v1388_v62 }
 0x1fb   :  { %8838 = vst [vmem:[#allocation26_spill] sm:$0xff] %v7731_v56  ;;  %8839 = vst [vmem:[#allocation27_spill] sm:$0xff] %v7734_v53 }
 0x1fc   :  { %8840 = vst [vmem:[#allocation28_spill] sm:$0xff] %v7737_v58  ;;  %8841 = vst [vmem:[#allocation29_spill] sm:$0xff] %v7740_v8 }
 0x1ff   :  { %v6858_v1 = vpop.eup %6857 }
 0x200   :  { %v6860_v60 = vpop.eup %6859  ;;  %v1019_v31 = vmul.f32 %v6858_v1, %v7664_v43 }
 0x201   :  { %v1018_v37 = vmul.f32 %v6860_v60, %v7667_v46  ;;  %v7804_v60 = vld [vmem:[%s8809_s9 + $0x1] ss:$0 sm:$0xff] }
 0x202   :  { %v1352_v0 = vmul.f32 %v7580_v40, %v1019_v31  ;;  %v1392_v6 = vmul.f32 %v7585_v21, %v1019_v31 }
 0x203   :  { %v1351_v2 = vmul.f32 %v7580_v40, %v1018_v37  ;;  %v1391_v36 = vmul.f32 %v7585_v21, %v1018_v37 }
 0x204   :  { %v7749_v15 = vadd.f32 %v7592_v41, %v1352_v0  ;;  %v7752_v18 = vadd.f32 %v7597_v25, %v1392_v6 }
 0x205   :  { %v7755_v43 = vadd.f32 %v7592_v41, %v1351_v2  ;;  %v7758_v46 = vadd.f32 %v7597_v25, %v1391_v36 }
 0x206   :  { %8842 = vst [vmem:[#allocation30_spill] sm:$0xff] %v7749_v15  ;;  %8843 = vst [vmem:[#allocation31_spill] sm:$0xff] %v7752_v18 }
 0x207   :  { %8844 = vst [vmem:[#allocation32_spill] sm:$0xff] %v7755_v43  ;;  %8845 = vst [vmem:[#allocation33_spill] sm:$0xff] %v7758_v46 }
 0x247   :  { %v6117_v63 = vpop.f32.mrb[0].mxu0 }
 0x248   :  { %v516_v10 = vpop.f32.mrb[1].mxu0  ;;  %v7776_v44 = vadd.f32 %v6117_v63, %v7769_v22 }
 0x249   :  { %v7779_v28 = vadd.f32 %v7769_v22, %v516_v10 }
 0x24a   :  { %v5661_v4 = vmul.f32 -1.442695, %v7776_v44 }
 0x24b   :  { %v6120_v19 = vpop.f32.mrb[2].mxu0  ;;  %v5660_v48 = vmul.f32 -1.442695, %v7779_v28 }
 0x24c   :  { %v526_v16 = vpop.f32.mrb[3].mxu0  ;;  %v7790_v49 = vadd.f32 %v6120_v19, %v7769_v22  ;;  %6861 = vpow2.f32 %v5661_v4 }
 0x24d   :  { %v7796_v62 = vadd.f32 %v7769_v22, %v526_v16  ;;  %6863 = vpow2.f32 %v5660_v48 }
 0x24e   :  { %8853 = vst [vmem:[#allocation41_spill] sm:$0xff] %v7790_v49  ;;  %v5663_v37 = vmul.f32 -1.442695, %v7790_v49 }
 0x24f   :  { %v6123_v26 = vpop.f32.mrb[4].mxu0  ;;  %8855 = vst [vmem:[#allocation43_spill] sm:$0xff] %v7796_v62  ;;  %v5662_v2 = vmul.f32 -1.442695, %v7796_v62 }
 0x250   :  { %v536_v32 = vpop.f32.mrb[5].mxu0  ;;  %v7808_v0 = vadd.f32 %v6123_v26, %v7769_v22  ;;  %6865 = vpow2.f32 %v5663_v37 }
 0x251   :  { %v7815_v36 = vadd.f32 %v7769_v22, %v536_v32  ;;  %6867 = vpow2.f32 %v5662_v2 }
 0x253   :  { %v6126_v40 = vpop.f32.mrb[6].mxu0  ;;  %v5664_v32 = vmul.f32 -1.442695, %v7815_v36 }
 0x254   :  { %v7760_v27 = vpop.f32.mrb[7].mxu0  ;;  %v7822_v16 = vadd.f32 %v6126_v40, %v7769_v22 }
 0x256   :  { %8857 = vst [vmem:[#allocation45_spill] sm:$0xff] %v7822_v16  ;;  %v6862_v37 = vpop.eup %6861 }
 0x257   :  { %v7762_v21 = vpop.f32.mrb[8].mxu0  ;;  %v6864_v18 = vpop.eup %6863  ;;  %v644_v17 = vadd.f32 1.0, %v6862_v37 }
 0x258   :  { %8846 = vst [vmem:[#allocation34_spill] sm:$0xff] %v7762_v21  ;;  %v7764_v23 = vpop.f32.mrb[9].mxu0 }
 0x259   :  { %8847 = vst [vmem:[#allocation35_spill] sm:$0xff] %v7764_v23 }
 0x25b   :  { %v7771_v41 = vpop.f32.mrb[10].mxu0 }
 0x25c   :  { %8849 = vst [vmem:[#allocation37_spill] sm:$0xff] %v7771_v41  ;;  %v7773_v25 = vpop.f32.mrb[11].mxu0 }
 0x25d   :  { %8850 = vst [vmem:[#allocation38_spill] sm:$0xff] %v7773_v25 }
 0x25f   :  { %v6135_v35 = vpop.f32.mrb[12].mxu0 }
 0x260   :  { %v7782_v42 = vadd.f32 %v6135_v35, %v7769_v22  ;;  %v576_v59 = vpop.f32.mrb[13].mxu0 }
 0x261   :  { %v7785_v24 = vadd.f32 %v7769_v22, %v576_v59  ;;  %v5665_v59 = vmul.f32 -1.442695, %v7808_v0 }
 0x262   :  { %8851 = vst [vmem:[#allocation39_spill] sm:$0xff] %v7782_v42 }
 0x263   :  { %8852 = vst [vmem:[#allocation40_spill] sm:$0xff] %v7785_v24  ;;  %v6138_v45 = vpop.f32.mrb[14].mxu0 }
 0x264   :  { %v7793_v29 = vadd.f32 %v6138_v45, %v7769_v22  ;;  %v586_v54 = vpop.f32.mrb[15].mxu0 }
 0x265   :  { %v7799_v1 = vadd.f32 %v7769_v22, %v586_v54  ;;  %v5667_v54 = vmul.f32 -1.442695, %v7822_v16 }
 0x266   :  { %8854 = vst [vmem:[#allocation42_spill] sm:$0xff] %v7793_v29 }
 0x267   :  { %8856 = vst [vmem:[#allocation44_spill] sm:$0xff] %v7799_v1  ;;  %v6181_v31 = vpop.f32.mrb[16].mxu0 }
 0x268   :  { %v7811_v6 = vadd.f32 %v6181_v31, %v7804_v60  ;;  %v1142_v63 = vpop.f32.mrb[17].mxu0 }
 0x269   :  { %v7818_v10 = vadd.f32 %v7804_v60, %v1142_v63 }
 0x26a   :  { %v5727_v19 = vmul.f32 -1.442695, %v7811_v6 }
 0x26b   :  { %v5726_v26 = vmul.f32 -1.442695, %v7818_v10  ;;  %v6184_v35 = vpop.f32.mrb[18].mxu0 }
 0x26c   :  { %v7827_v4 = vadd.f32 %v6184_v35, %v7804_v60  ;;  %v1152_v48 = vpop.f32.mrb[19].mxu0  ;;  %6869 = vpow2.f32 %v5727_v19 }
 0x26d   :  { %v7831_v45 = vadd.f32 %v7804_v60, %v1152_v48  ;;  %6871 = vpow2.f32 %v5726_v26 }
 0x26e   :  { %v5729_v40 = vmul.f32 -1.442695, %v7827_v4  ;;  %6873 = vpow2.f32 %v5665_v59  ;;  %v643_v59 = vadd.f32 1.0, %v6864_v18 }
 0x26f   :  { %v6187_v31 = vpop.f32.mrb[20].mxu0  ;;  %v5728_v63 = vmul.f32 -1.442695, %v7831_v45  ;;  %6875 = vpow2.f32 %v5664_v32 }
 0x270   :  { %v7837_v35 = vadd.f32 %v6187_v31, %v7804_v60  ;;  %v1162_v2 = vpop.f32.mrb[21].mxu0  ;;  %6877 = vpow2.f32 %v5729_v40 }
 0x271   :  { %v7840_v48 = vadd.f32 %v7804_v60, %v1162_v2  ;;  %6879 = vpow2.f32 %v5667_v54  ;;  %v7850_v2 = vpop.eup %6865 }
 0x272   :  { %v5731_v19 = vmul.f32 -1.442695, %v7837_v35  ;;  %6881 = vpow2.f32 %v5728_v63  ;;  %v7853_v37 = vpop.eup %6867 }
 0x273   :  { %v5730_v26 = vmul.f32 -1.442695, %v7840_v48  ;;  %v6190_v46 = vpop.f32.mrb[22].mxu0 }
 0x274   :  { %v7845_v8 = vadd.f32 %v6190_v46, %v7804_v60  ;;  %v1172_v31 = vpop.f32.mrb[23].mxu0  ;;  %6883 = vpow2.f32 %v5731_v19 }
 0x275   :  { %v7848_v32 = vadd.f32 %v7804_v60, %v1172_v31  ;;  %6885 = vpow2.f32 %v5730_v26 }
 0x276   :  { %v5733_v40 = vmul.f32 -1.442695, %v7845_v8  ;;  %6887 = vrcp.f32 %v644_v17  ;;  %v6870_v63 = vpop.eup %6869 }
 0x277   :  { %v5732_v54 = vmul.f32 -1.442695, %v7848_v32  ;;  %v6193_v18 = vpop.f32.mrb[24].mxu0  ;;  %6889 = vrcp.f32 %v643_v59  ;;  %v6872_v50 = vpop.eup %6871  ;;  %v1270_v31 = vadd.f32 1.0, %v6870_v63 }
 0x278   :  { %v7857_v46 = vadd.f32 %v6193_v18, %v7804_v60  ;;  %v1182_v19 = vpop.f32.mrb[25].mxu0  ;;  %6891 = vpow2.f32 %v5733_v40  ;;  %v7862_v26 = vpop.eup %6873  ;;  %v1269_v53 = vadd.f32 1.0, %v6872_v50 }
 0x279   :  { %v7860_v20 = vadd.f32 %v7804_v60, %v1182_v19  ;;  %6893 = vpow2.f32 %v5732_v54  ;;  %v7865_v33 = vpop.eup %6875 }
 0x27a   :  { %v5735_v17 = vmul.f32 -1.442695, %v7857_v46  ;;  %6895 = vrcp.f32 %v1270_v31  ;;  %v6878_v39 = vpop.eup %6877 }
 0x27b   :  { %v5734_v59 = vmul.f32 -1.442695, %v7860_v20  ;;  %v6196_v18 = vpop.f32.mrb[26].mxu0  ;;  %6897 = vrcp.f32 %v1269_v53  ;;  %v7871_v19 = vpop.eup %6879  ;;  %v1272_v55 = vadd.f32 1.0, %v6878_v39 }
 0x27c   :  { %v7869_v40 = vadd.f32 %v6196_v18, %v7804_v60  ;;  %v1192_v63 = vpop.f32.mrb[27].mxu0  ;;  %6899 = vpow2.f32 %v5735_v17  ;;  %v6882_v54 = vpop.eup %6881 }
 0x27d   :  { %v7874_v50 = vadd.f32 %v7804_v60, %v1192_v63  ;;  %6901 = vpow2.f32 %v5734_v59  ;;  %v1271_v53 = vadd.f32 1.0, %v6882_v54 }
 0x27e   :  { %v5737_v31 = vmul.f32 -1.442695, %v7869_v40  ;;  %v6884_v13 = vpop.eup %6883  ;;  %6903 = vrcp.f32 %v1272_v55 }
 0x27f   :  { %v6199_v52 = vpop.f32.mrb[28].mxu0  ;;  %v6886_v18 = vpop.eup %6885  ;;  %v1274_v57 = vadd.f32 1.0, %v6884_v13  ;;  %v5736_v47 = vmul.f32 -1.442695, %v7874_v50  ;;  %v7890_v13 = vadd.s32 8, %v1494_v12 }
 0x280   :  { %6905 = vpow2.f32 %v5737_v31  ;;  %v7880_v39 = vadd.f32 %v6199_v52, %v7804_v60  ;;  %v1202_v17 = vpop.f32.mrb[29].mxu0  ;;  %v7882_v63 = vpop.eup %6887  ;;  %v1273_v59 = vadd.f32 1.0, %v6886_v18 }
 0x281   :  { %6907 = vrcp.f32 %v1271_v53  ;;  %v7885_v1 = vadd.f32 %v7804_v60, %v1202_v17  ;;  %v7887_v5 = vpop.eup %6889  ;;  %vm1497_vm2 = vcmp.lt.s32.totalorder %v7890_v13, 12  ;;  %v8861_v13 = vld [vmem:[#allocation36_spill] sm:$0xff] }
 0x282   :  { %6909 = vrcp.f32 %v1274_v57  ;;  %v5739_v55 = vmul.f32 -1.442695, %v7880_v39  ;;  %v6892_v54 = vpop.eup %6891  ;;  %v7899_v57 = vld [vmem:[%s8809_s9 + $0x6] ss:$0 sm:$0xff] }
 0x283   :  { %6911 = vrcp.f32 %v1273_v59  ;;  %v6202_v31 = vpop.f32.mrb[30].mxu0  ;;  %v6894_v52 = vpop.eup %6893  ;;  %v1276_v29 = vadd.f32 1.0, %v6892_v54  ;;  %v5738_v15 = vmul.f32 -1.442695, %v7885_v1 }
 0x284   :  { %6913 = vpow2.f32 %v5736_v47  ;;  %v7894_v53 = vadd.f32 %v6202_v31, %v7804_v60  ;;  %v1212_v18 = vpop.f32.mrb[31].mxu0  ;;  %v6896_v17 = vpop.eup %6895  ;;  %v1275_v12 = vadd.f32 1.0, %v6894_v52  ;;  %v7907_v47 = vld [vmem:[%s8809_s9 + $0x7] ss:$0 sm:$0xff] }
 0x285   :  { %6915 = vpow2.f32 %v5739_v55  ;;  %v7902_v59 = vadd.f32 %v7804_v60, %v1212_v18  ;;  %v6898_v54 = vpop.eup %6897  ;;  %v7910_v31 = vmul.f32 %v6896_v17, %v7811_v6  ;;  %v7916_v55 = vadd.f32 %v7769_v22, %v7760_v27  ;;  %v7921_v60 = vld [vmem:[%s8809_s9 + $0x8] ss:$0 sm:$0xff]  ;;  %v7930_v6 = vld [vmem:[%s8809_s9 + $0x9] ss:$0 sm:$0xff] }
 0x286   :  { %6917 = vrcp.f32 %v1276_v29  ;;  %v5741_v24 = vmul.f32 -1.442695, %v7894_v53  ;;  %v6900_v42 = vpop.eup %6899  ;;  %v7924_v52 = vmul.f32 %v6898_v54, %v7818_v10 }
 0x287   :  { %6919 = vrcp.f32 %v1275_v12  ;;  %v5740_v29 = vmul.f32 -1.442695, %v7902_v59  ;;  %v6902_v18 = vpop.eup %6901  ;;  %v1418_v27 = vmul.f32 %v7899_v57, %v7910_v31  ;;  %v1278_v17 = vadd.f32 1.0, %v6900_v42 }
 0x288   :  { %6921 = vpow2.f32 %v5738_v15  ;;  %v1458_v16 = vmul.f32 %v7907_v47, %v7910_v31  ;;  %v6904_v43 = vpop.eup %6903  ;;  %v1417_v10 = vmul.f32 %v7899_v57, %v7924_v52  ;;  %v1277_v12 = vadd.f32 1.0, %v6902_v18 }
 0x289   :  { %6923 = vpow2.f32 %v5741_v24  ;;  %v1457_v54 = vmul.f32 %v7907_v47, %v7924_v52  ;;  %v1438_v25 = vadd.f32 %v7921_v60, %v1418_v27  ;;  %v7942_v41 = vmul.f32 %v6904_v43, %v7827_v4 }
 0x28a   :  { %v6906_v58 = vpop.eup %6905  ;;  %6925 = vrcp.f32 %v1278_v17  ;;  %v1478_v15 = vadd.f32 %v7930_v6, %v1458_v16  ;;  %v1437_v62 = vadd.f32 %v7921_v60, %v1417_v10 }
 0x28b   :  { %v6908_v42 = vpop.eup %6907  ;;  %6927 = vrcp.f32 %v1277_v12  ;;  %v1280_v49 = vadd.f32 1.0, %v6906_v58  ;;  %v1477_v18 = vadd.f32 %v7930_v6, %v1457_v54  ;;  %v1420_v56 = vmul.f32 %v7899_v57, %v7942_v41 }
 0x28c   :  { %v6910_v24 = vpop.eup %6909  ;;  %v7950_v23 = vmul.f32 %v6908_v42, %v7831_v45  ;;  %6929 = vpow2.f32 %v5740_v29  ;;  %v1499_v16 = vsel %vm1497_vm2, %v1478_v15, 0.0  ;;  %v6547_v27 = vpack.c.bf16 %v1438_v25, %v1437_v62 }
 0x28d   :  { %v6912_v58 = vpop.eup %6911  ;;  %v7961_v4 = vmul.f32 %v6910_v24, %v7837_v35  ;;  %6931 = vrcp.f32 %v1280_v49  ;;  %2264 = vxpose.xlu0.b32.start [1/2] (short) (narrow) %v1477_v18, 16  ;;  %v1460_v45 = vmul.f32 %v7907_v47, %v7942_v41  ;;  %v1440_v17 = vadd.f32 %v7921_v60, %v1420_v56 }
 0x28e   :  { %v6914_v29 = vpop.eup %6913  ;;  %v1419_v10 = vmul.f32 %v7899_v57, %v7950_v23  ;;  %v7969_v12 = vmul.f32 %v6912_v58, %v7840_v48  ;;  %v1459_v54 = vmul.f32 %v7907_v47, %v7950_v23  ;;  %6549 = vmatprep.subr.msk.bf16.mxu1 %vm7954_vm3, %v6547_v27 }
 0x28f   :  { %v6916_v35 = vpop.eup %6915  ;;  %v1422_v49 = vmul.f32 %v7899_v57, %v7961_v4  ;;  %v1279_v25 = vadd.f32 1.0, %v6914_v29  ;;  %v1480_v62 = vadd.f32 %v7930_v6, %v1460_v45  ;;  %v1462_v56 = vmul.f32 %v7907_v47, %v7961_v4  ;;  %6552 = vmatpush3.bf16.xpose.msk.msra.mxu1 %vm7954_vm3, %v6547_v27 }
 0x290   :  { %v6918_v15 = vpop.eup %6917  ;;  %v1439_v48 = vadd.f32 %v7921_v60, %v1419_v10  ;;  %v1421_v42 = vmul.f32 %v7899_v57, %v7969_v12  ;;  %v1282_v18 = vadd.f32 1.0, %v6916_v35  ;;  %v1479_v24 = vadd.f32 %v7930_v6, %v1459_v54 }
 0x291   :  { %v6920_v58 = vpop.eup %6919  ;;  %v1442_v29 = vadd.f32 %v7921_v60, %v1422_v49  ;;  %v7988_v45 = vmul.f32 %v6918_v15, %v7845_v8  ;;  %6933 = vrcp.f32 %v1279_v25  ;;  %2265 = vxpose.xlu0.b32.end [2/2] (short) (narrow) %v1499_v16, 16  ;;  %v1501_v10 = vsel %vm1497_vm2, %v1480_v62, 0.0 }
 0x292   :  { %v6922_v14 = vpop.eup %6921  ;;  %v1441_v21 = vadd.f32 %v7921_v60, %v1421_v42  ;;  %v7994_v35 = vmul.f32 %v6920_v58, %v7848_v32  ;;  %6935 = vrcp.f32 %v1282_v18  ;;  %2377 = vxpose.xlu1.b32.start [1/2] (short) (narrow) %v1479_v24, 16  ;;  %v6553_v27 = vpack.c.bf16 %v1440_v17, %v1439_v48 }
 0x293   :  { %v6924_v54 = vpop.eup %6923  ;;  %v1424_v49 = vmul.f32 %v7899_v57, %v7988_v45  ;;  %v1281_v8 = vadd.f32 1.0, %v6922_v14  ;;  %v1461_v16 = vmul.f32 %v7907_v47, %v7969_v12  ;;  %v1482_v25 = vadd.f32 %v7930_v6, %v1462_v56 }
 0x294   :  { %v6926_v62 = vpop.eup %6925  ;;  %v1423_v15 = vmul.f32 %v7899_v57, %v7994_v35  ;;  %v1284_v42 = vadd.f32 1.0, %v6924_v54  ;;  %6555 = vmatprep.subr.msk.bf16.mxu1 %vm7954_vm3, %v6553_v27  ;;  %v1463_v32 = vmul.f32 %v7907_v47, %v7994_v35  ;;  %v8007_v17 = vpack.c.bf16 %v1442_v29, %v1441_v21 }
 0x295   :  { %v6928_v48 = vpop.eup %6927  ;;  %v1444_v14 = vadd.f32 %v7921_v60, %v1424_v49  ;;  %v1326_v18 = vmul.f32 %v6926_v62, %v7857_v46  ;;  %6937 = vrcp.f32 %v1281_v8  ;;  %v1481_v56 = vadd.f32 %v7930_v6, %v1461_v16 }
 0x296   :  { %v6930_v24 = vpop.eup %6929  ;;  %v1443_v58 = vadd.f32 %v7921_v60, %v1423_v15  ;;  %v1325_v54 = vmul.f32 %v6928_v48, %v7860_v20  ;;  %6939 = vrcp.f32 %v1284_v42  ;;  %2378 = vxpose.xlu1.b32.end [2/2] (short) (narrow) %v1501_v10, 16  ;;  %v1483_v22 = vadd.f32 %v7930_v6, %v1463_v32  ;;  %6208 = vmatmul.mubr.msk.f32.vlgmr.msra.gmra.mrb[16].mxu1 %vm1516_vm1, %v7608_v51 }
 0x297   :  { %v6932_v30 = vpop.eup %6931  ;;  %v648_v21 = vadd.f32 1.0, %v7862_v26  ;;  %v1426_v29 = vmul.f32 %v7899_v57, %v1326_v18  ;;  %v1283_v49 = vadd.f32 1.0, %v6930_v24  ;;  %2490 = vxpose.xlu0.b32.start [1/2] (short) (narrow) %v1481_v56, 16  ;;  %v1464_v46 = vmul.f32 %v7907_v47, %v7988_v45  ;;  %6558 = vmatpush3.bf16.xpose.msk.msra.mxu1 %vm7954_vm3, %v6553_v27 }
 0x298   :  { %v647_v8 = vadd.f32 1.0, %v7865_v33  ;;  %v1425_v20 = vmul.f32 %v7899_v57, %v1325_v54  ;;  %v1328_v10 = vmul.f32 %v6932_v30, %v7869_v40  ;;  %v1465_v26 = vmul.f32 %v7907_v47, %v1325_v54  ;;  %6214 = vmatprep.mubr.msk.f32.mxu1 %vm1516_vm1, %v7628_v7  ;;  %6561 = vmatprep.subr.msk.bf16.mxu1 %vm7954_vm3, %v8007_v17 }
 0x299   :  { %v1446_v16 = vadd.f32 %v7921_v60, %v1426_v29  ;;  %6941 = vrcp.f32 %v1283_v49  ;;  %v1484_v51 = vadd.f32 %v7930_v6, %v1464_v46  ;;  %v1466_v33 = vmul.f32 %v7907_v47, %v1326_v18 }
 0x29a   :  { %v1445_v30 = vadd.f32 %v7921_v60, %v1425_v20  ;;  %v1428_v40 = vmul.f32 %v7899_v57, %v1328_v10  ;;  %2603 = vxpose.xlu1.b32.start [1/2] (short) (narrow) %v1483_v22, 16  ;;  %v1503_v27 = vsel %vm1497_vm2, %v1482_v25, 0.0  ;;  %v8039_v7 = vpack.c.bf16 %v1444_v14, %v1443_v58 }
 0x29b   :  { %v6934_v62 = vpop.eup %6933  ;;  %6943 = vrcp.f32 %v648_v21  ;;  %2491 = vxpose.xlu0.b32.end [2/2] (short) (narrow) %v1503_v27, 16  ;;  %v1505_v15 = vsel %vm1497_vm2, %v1484_v51, 0.0  ;;  %v1485_v42 = vadd.f32 %v7930_v6, %v1465_v26  ;;  %v8046_v32 = vpack.c.bf16 %v7910_v31, %v7924_v52 }
 0x29c   :  { %v6936_v48 = vpop.eup %6935  ;;  %v1327_v22 = vmul.f32 %v6934_v62, %v7874_v50  ;;  %v1486_v56 = vadd.f32 %v7930_v6, %v1466_v33  ;;  %v8050_v25 = vpack.c.bf16 %v1446_v16, %v1445_v30  ;;  %v8054_v14 = vpack.c.bf16 %v7942_v41, %v7950_v23 }
 0x29d   :  { %v1448_v24 = vadd.f32 %v7921_v60, %v1428_v40  ;;  %v1330_v58 = vmul.f32 %v6936_v48, %v7880_v39  ;;  %v1468_v21 = vmul.f32 %v7907_v47, %v1328_v10  ;;  %v8061_v31 = vpack.c.bf16 %v7961_v4, %v7969_v12 }
 0x29e   :  { %v1427_v50 = vmul.f32 %v7899_v57, %v1327_v22  ;;  %2604 = vxpose.xlu1.b32.end [2/2] (short) (narrow) %v1505_v15, 16  ;;  %v1467_v52 = vmul.f32 %v7907_v47, %v1327_v22  ;;  %v8067_v29 = vpack.c.bf16 %v7988_v45, %v7994_v35  ;;  %v8069_v23 = vpack.c.bf16 %v1326_v18, %v1325_v54 }
 0x29f   :  { %v6938_v41 = vpop.eup %6937  ;;  %6945 = vrcp.f32 %v647_v8  ;;  %v5666_v39 = vmul.f32 -1.442695, %v7916_v55  ;;  %v1430_v49 = vmul.f32 %v7899_v57, %v1330_v58  ;;  %2716 = vxpose.xlu0.b32.start [1/2] (short) (narrow) %v1485_v42, 16  ;;  %6215 = vmatmul.mubr.msk.f32.vlgmr.msra.gmra.mrb[18].mxu1 %vm1516_vm1, %v7634_v9  ;;  %v8075_v4 = vpack.c.bf16 %v1328_v10, %v1327_v22 }
 0x2a0   :  { %v6940_v12 = vpop.eup %6939  ;;  %v1447_v46 = vadd.f32 %v7921_v60, %v1427_v50  ;;  %v1329_v45 = vmul.f32 %v6938_v41, %v7885_v1  ;;  %6564 = vmatpush3.bf16.xpose.msk.msra.mxu1 %vm7954_vm3, %v8007_v17  ;;  %v1487_v35 = vadd.f32 %v7930_v6, %v1467_v52  ;;  %v1507_v18 = vsel %vm1497_vm2, %v1486_v56, 0.0  ;;  %6221 = vmatprep.mubr.msk.f32.mxu1 %vm1516_vm1, %v7652_v34  ;;  %v8864_v52 = vld [vmem:[#allocation35_spill] sm:$0xff] }
 0x2a1   :  { %v1450_v9 = vadd.f32 %v7921_v60, %v1430_v49  ;;  %v1332_v54 = vmul.f32 %v6940_v12, %v7894_v53  ;;  %6567 = vmatprep.subr.msk.bf16.mxu1 %vm7954_vm3, %v8039_v7  ;;  %v1488_v1 = vadd.f32 %v7930_v6, %v1468_v21  ;;  %v1470_v17 = vmul.f32 %v7907_v47, %v1330_v58  ;;  %v8866_v49 = vld [vmem:[#allocation41_spill] sm:$0xff] }
 0x2a2   :  { %v1429_v8 = vmul.f32 %v7899_v57, %v1329_v45  ;;  %2829 = vxpose.xlu1.b32.start [1/2] (short) (narrow) %v1487_v35, 16  ;;  %v1469_v20 = vmul.f32 %v7907_v47, %v1329_v45  ;;  %v8096_v10 = vpack.c.bf16 %v1448_v24, %v1447_v46  ;;  %v8098_v34 = vpack.c.bf16 %v1330_v58, %v1329_v45  ;;  %v8867_v46 = vld [vmem:[#allocation43_spill] sm:$0xff] }
 0x2a3   :  { %v6942_v26 = vpop.eup %6941  ;;  %v8102_v53 = vmul.f32 %v7882_v63, %v7776_v44  ;;  %6947 = vpow2.f32 %v5666_v39  ;;  %v1432_v16 = vmul.f32 %v7899_v57, %v1332_v54  ;;  %2717 = vxpose.xlu0.b32.end [2/2] (short) (narrow) %v1507_v18, 16  ;;  %v8107_v51 = vmul.f32 %v7887_v5, %v7779_v28  ;;  %v8865_v39 = vld [vmem:[#allocation26_spill] sm:$0xff]  ;;  %v8868_v18 = vld [vmem:[#allocation37_spill] sm:$0xff] }
 0x2a4   :  { %v1449_v33 = vadd.f32 %v7921_v60, %v1429_v8  ;;  %v1331_v30 = vmul.f32 %v6942_v26, %v7902_v59  ;;  %v1489_v40 = vadd.f32 %v7930_v6, %v1469_v20  ;;  %v1509_v44 = vsel %vm1497_vm2, %v1488_v1, 0.0  ;;  %v8869_v1 = vld [vmem:[#allocation38_spill] sm:$0xff]  ;;  %v8870_v26 = vld [vmem:[#allocation28_spill] sm:$0xff] }
 0x2a5   :  { %v6944_v27 = vpop.eup %6943  ;;  %v1452_v62 = vadd.f32 %v7921_v60, %v1432_v16  ;;  %v1490_v63 = vadd.f32 %v7930_v6, %v1470_v17  ;;  %v1472_v15 = vmul.f32 %v7907_v47, %v1332_v54  ;;  %v8125_v59 = vpack.c.bf16 %v8102_v53, %v8107_v51 }
 0x2a6   :  { %v1431_v42 = vmul.f32 %v7899_v57, %v1331_v30  ;;  %2830 = vxpose.xlu1.b32.end [2/2] (short) (narrow) %v1509_v44, 16  ;;  %v6583_v5 = vpack.c.bf16 %v1450_v9, %v1449_v33  ;;  %v1471_v28 = vmul.f32 %v7907_v47, %v1331_v30  ;;  %v8119_v48 = vpack.c.bf16 %v1332_v54, %v1331_v30  ;;  %v8871_v30 = vld [vmem:[#allocation32_spill] sm:$0xff]  ;;  %v8873_v44 = vld [vmem:[#allocation39_spill] sm:$0xff] }
 0x2a7   :  { %2942 = vxpose.xlu0.b32.start [1/2] (short) (narrow) %v1489_v40, 16  ;;  %6222 = vmatmul.mubr.msk.f32.vlgmr.msra.gmra.mrb[20].mxu1 %vm1516_vm1, %v7658_v38  ;;  %v646_v56 = vadd.f32 1.0, %v7850_v2  ;;  %v1492_v38 = vadd.f32 %v7930_v6, %v1472_v15  ;;  %v8148_v2 = vmul.f32 %v6944_v27, %v7808_v0  ;;  %v8860_v0 = vld [vmem:[#allocation22_spill] sm:$0xff]  ;;  %v8182_v41 = vadd.f32 %v8861_v13, %v8864_v52  ;;  %v8872_v40 = vld [vmem:[#allocation45_spill] sm:$0xff]  ;;  %v8874_v15 = vld [vmem:[#allocation40_spill] sm:$0xff] }
 0x2a8   :  { %v1451_v22 = vadd.f32 %v7921_v60, %v1431_v42  ;;  %6585 = vmatprep.subr.msk.bf16.mxu0 %vm7954_vm3, %v6583_v5  ;;  %6570 = vmatpush3.bf16.xpose.msk.msra.mxu1 %vm7954_vm3, %v8039_v7  ;;  %v1491_v57 = vadd.f32 %v7930_v6, %v1471_v28  ;;  %v645_v60 = vadd.f32 1.0, %v7853_v37  ;;  %v1511_v7 = vsel %vm1497_vm2, %v1490_v63, 0.0 }
 0x2a9   :  { %v6946_v47 = vpop.eup %6945  ;;  %6588 = vmatpush3.bf16.xpose.msk.msra.mxu0 %vm7954_vm3, %v6583_v5  ;;  %6573 = vmatprep.subr.msk.bf16.mxu1 %vm7954_vm3, %v8050_v25  ;;  %6949 = vrcp.f32 %v646_v56  ;;  %v1513_v37 = vsel %vm1497_vm2, %v1492_v38, 0.0  ;;  %v572_v9 = vadd.f32 %v8868_v18, %v8861_v13  ;;  %v5668_v54 = vmul.f32 -1.442695, %v8182_v41  ;;  %v8875_v5 = vld [vmem:[#allocation30_spill] sm:$0xff] }
 0x2aa   :  { %6596 = vmatprep.subr.bf16.mxu0 %v8125_v59  ;;  %3055 = vxpose.xlu1.b32.start [1/2] (short) (narrow) %v1491_v57, 16  ;;  %v6589_v24 = vpack.c.bf16 %v1452_v62, %v1451_v22  ;;  %v8151_v58 = vmul.f32 %v6946_v47, %v7815_v36  ;;  %6951 = vrcp.f32 %v645_v60  ;;  %v567_v17 = vadd.f32 %v8861_v13, %v8869_v1 }
 0x2ab   :  { %2943 = vxpose.xlu0.b32.end [2/2] (short) (narrow) %v1511_v7, 16  ;;  %6228 = vmatprep.mubr.msk.f32.mxu1 %vm1516_vm1, %v7678_v61  ;;  %v650_v61 = vadd.f32 1.0, %v7871_v19  ;;  %v8863_v19 = vld [vmem:[#allocation24_spill] sm:$0xff]  ;;  %v5673_v63 = vmul.f32 -1.442695, %v8873_v44 }
 0x2ac   :  { %v8159_v21 = vpack.c.bf16 %v8148_v2, %v8151_v58  ;;  %v5670_v33 = vmul.f32 -1.442695, %v567_v17  ;;  %v5672_v42 = vmul.f32 -1.442695, %v8874_v15 }
 0x2ad   :  { %v6948_v6 = vpop.eup %6947  ;;  %6953 = vrcp.f32 %v650_v61 }
 0x2ae   :  { %3056 = vxpose.xlu1.b32.end [2/2] (short) (narrow) %v1513_v37, 16 }
 0x2af   :  { %6229 = vmatmul.mubr.msk.f32.vlgmr.msra.gmra.mrb[22].mxu1 %vm1516_vm1, %v7684_v3  ;;  %v649_v3 = vadd.f32 1.0, %v6948_v6 }
 0x2b0   :  { %6576 = vmatpush3.bf16.xpose.msk.msra.mxu1 %vm7954_vm3, %v8050_v25  ;;  %6250 = vmatmul.mubr.msk.f32.vlgmr.msra.gmra.mrb[32].mxu0 %vm1516_vm1, %v7698_v11  ;;  %v8862_v25 = vld [vmem:[#allocation34_spill] sm:$0xff] }
 0x2b1   :  { %6598 = vmatpush3.bf16.msra.mxu0 %v8125_v59  ;;  %6579 = vmatprep.subr.msk.bf16.mxu1 %vm7954_vm3, %v8096_v10  ;;  %6955 = vrcp.f32 %v649_v3  ;;  %v8176_v11 = vadd.f32 %v8862_v25, %v8861_v13 }
 0x2b2   :  { %6604 = vmatprep.subr.bf16.mxu0 %v8159_v21  ;;  %6235 = vmatprep.mubr.msk.f32.mxu1 %vm1516_vm1, %v8860_v0 }
 0x2b3   :  { %v6950_v36 = vpop.eup %6949  ;;  %v5669_v35 = vmul.f32 -1.442695, %v8176_v11 }
 0x2b4   :  { %v6952_v50 = vpop.eup %6951  ;;  %v8192_v12 = vmul.f32 %v6950_v36, %v8866_v49  ;;  %v8876_v49 = vld [vmem:[#allocation42_spill] sm:$0xff] }
 0x2b5   :  { %v8195_v45 = vmul.f32 %v6952_v50, %v8867_v46  ;;  %6957 = vpow2.f32 %v5669_v35  ;;  %v5675_v46 = vmul.f32 -1.442695, %v8876_v49  ;;  %v8877_v35 = vld [vmem:[#allocation44_spill] sm:$0xff] }
 0x2b6   :  { %6959 = vpow2.f32 %v5668_v54  ;;  %v5674_v18 = vmul.f32 -1.442695, %v8877_v35 }
 0x2b7   :  { %6236 = vmatmul.mubr.msk.f32.vlgmr.msra.gmra.mrb[24].mxu1 %vm1516_vm1, %v8863_v19  ;;  %v6954_v8 = vpop.eup %6953  ;;  %v8205_v20 = vpack.c.bf16 %v8192_v12, %v8195_v45 }
 0x2b8   :  { %6582 = vmatpush3.bf16.xpose.msk.msra.mxu1 %vm7954_vm3, %v8096_v10  ;;  %6242 = vmatprep.mubr.msk.f32.mxu1 %vm1516_vm1, %v8865_v39  ;;  %v5671_v10 = vmul.f32 -1.442695, %v572_v9  ;;  %v8215_v27 = vmul.f32 %v6954_v8, %v8872_v40 }
 0x2b9   :  { %6591 = vmatprep.subr.msk.bf16.mxu1 %vm7954_vm3, %v6589_v24 }
 0x2ba   :  { %6961 = vpow2.f32 %v5671_v10 }
 0x2bb   :  { %v6956_v16 = vpop.eup %6955  ;;  %6963 = vpow2.f32 %v5670_v33 }
 0x2bc   :  { %v8218_v62 = vmul.f32 %v6956_v16, %v7916_v55  ;;  %6965 = vpow2.f32 %v5673_v63 }
 0x2bd   :  { %6967 = vpow2.f32 %v5672_v42 }
 0x2be   :  { %v8224_v43 = vpack.c.bf16 %v8215_v27, %v8218_v62 }
 0x2bf   :  { %6243 = vmatmul.mubr.msk.f32.vlgmr.msra.gmra.mrb[26].mxu1 %vm1516_vm1, %v8870_v26  ;;  %v6958_v28 = vpop.eup %6957 }
 0x2c0   :  { %6594 = vmatpush3.bf16.xpose.msk.msra.mxu1 %vm7954_vm3, %v6589_v24  ;;  %6256 = vmatprep.mubr.msk.f32.mxu1 %vm1516_vm1, %v8871_v30  ;;  %v6960_v55 = vpop.eup %6959  ;;  %v652_v22 = vadd.f32 1.0, %v6958_v28 }
 0x2c1   :  { %6600 = vmatprep.subr.bf16.mxu1 %v8205_v20  ;;  %v651_v47 = vadd.f32 1.0, %v6960_v55 }
 0x2c2   :  { %6969 = vrcp.f32 %v652_v22 }
 0x2c3   :  { %6971 = vrcp.f32 %v651_v47 }
 0x2c4   :  { %v6962_v57 = vpop.eup %6961 }
 0x2c5   :  { %v6964_v56 = vpop.eup %6963  ;;  %v654_v38 = vadd.f32 1.0, %v6962_v57 }
 0x2c6   :  { %v6966_v60 = vpop.eup %6965  ;;  %v653_v7 = vadd.f32 1.0, %v6964_v56 }
 0x2c7   :  { %6257 = vmatmul.mubr.msk.f32.vlgmr.msra.gmra.mrb[28].mxu1 %vm1516_vm1, %v8875_v5  ;;  %v6968_v24 = vpop.eup %6967  ;;  %6973 = vrcp.f32 %v654_v38  ;;  %v656_v6 = vadd.f32 1.0, %v6966_v60 }
 0x2c8   :  { %6602 = vmatpush3.bf16.msra.mxu1 %v8205_v20  ;;  %6975 = vrcp.f32 %v653_v7  ;;  %v655_v37 = vadd.f32 1.0, %v6968_v24  ;;  %v6989_v7 = vld [vmem:[%s8809_s9 + $0x3] ss:$0 sm:$0xff]  ;;  %v8878_v24 = vld [vmem:[#allocation12_spill] sm:$0xff] }
 0x2c9   :  { %6608 = vmatprep.subr.bf16.mxu1 %v8224_v43  ;;  %6977 = vrcp.f32 %v656_v6  ;;  %v1377_v6 = vmul.f32 %v6989_v7, %v8878_v24 }
 0x2ca   :  { %6979 = vrcp.f32 %v655_v37 }
 0x2cb   :  { %6981 = vpow2.f32 %v5675_v46 }
 0x2cc   :  { %4560 = vrot.lane.b32.xlu1 %v8107_v51, %s7090_s28  ;;  %v6970_v61 = vpop.eup %6969  ;;  %6983 = vpow2.f32 %v5674_v18  ;;  %v8336_v18 = vld [vmem:[#allocation7] sm:$0xff] }
 0x2cd   :  { %v6972_v3 = vpop.eup %6971  ;;  %v8247_v36 = vmul.f32 %v6970_v61, %v8176_v11  ;;  %v8879_v61 = vld [vmem:[#allocation14_spill] sm:$0xff] }
 0x2ce   :  { %v8250_v13 = vmul.f32 %v6972_v3, %v8182_v41  ;;  %v1379_v3 = vmul.f32 %v6989_v7, %v8879_v61 }
 0x2d0   :  { %4562 = vrot.lane.b32.xlu1 %v8102_v53, %s7090_s28  ;;  %v8279_v26 = vpack.c.bf16 %v8247_v36, %v8250_v13 }
 0x2d1   :  { %v6974_v0 = vpop.eup %6973 }
 0x2d2   :  { %v6976_v25 = vpop.eup %6975  ;;  %v8256_v50 = vmul.f32 %v6974_v0, %v572_v9 }
 0x2d3   :  { %v6978_v19 = vpop.eup %6977  ;;  %v8258_v52 = vmul.f32 %v6976_v25, %v567_v17  ;;  %v6990_v25 = vld [vmem:[%s8809_s9 + $0x5] ss:$0 sm:$0xff] }
 0x2d4   :  { %4564 = vrot.lane.b32.xlu0 %v8195_v45, %s7090_s28  ;;  %4566 = vrot.lane.b32.xlu1 %v8192_v12, %s7090_s28  ;;  %v6980_v39 = vpop.eup %6979  ;;  %v8265_v11 = vmul.f32 %v6978_v19, %v8873_v44  ;;  %v1397_v19 = vadd.f32 %v6990_v25, %v1377_v6 }
 0x2d5   :  { %v8268_v41 = vmul.f32 %v6980_v39, %v8874_v15  ;;  %v6982_v9 = vpop.eup %6981  ;;  %v8287_v40 = vpack.c.bf16 %v8256_v50, %v8258_v52 }
 0x2d6   :  { %v6984_v54 = vpop.eup %6983  ;;  %v658_v1 = vadd.f32 1.0, %v6982_v9  ;;  %v8880_v9 = vlaneseq }
 0x2d7   :  { %v657_v17 = vadd.f32 1.0, %v6984_v54  ;;  %v8302_v55 = vpack.c.bf16 %v8265_v11, %v8268_v41 }
 0x2d8   :  { %4568 = vrot.lane.b32.xlu0 %v8151_v58, %s7090_s28  ;;  %4570 = vrot.lane.b32.xlu1 %v8148_v2, %s7090_s28  ;;  %6985 = vrcp.f32 %v658_v1  ;;  %v8339_v54 = vand.u32 127, %v8880_v9 }
 0x2d9   :  { %6987 = vrcp.f32 %v657_v17 }
 0x2da   :  { %vm2247_vm4 = vcmp.lt.s32.totalorder %v8339_v54, 12 }
 0x2dc   :  { %4572 = vrot.lane.b32.xlu0 %v8218_v62, %s7090_s28  ;;  %4574 = vrot.lane.b32.xlu1 %v8215_v27, %s7090_s28 }
 0x2e0   :  { %4576 = vrot.lane.b32.xlu0 %v8250_v13, %s7090_s28  ;;  %4578 = vrot.lane.b32.xlu1 %v8247_v36, %s7090_s28 }
 0x2e2   :  { %v6986_v30 = vpop.eup %6985 }
 0x2e3   :  { %v6988_v63 = vpop.eup %6987  ;;  %v8294_v42 = vmul.f32 %v6986_v30, %v8876_v49  ;;  %v1399_v49 = vadd.f32 %v6990_v25, %v1379_v3 }
 0x2e4   :  { %4580 = vrot.lane.b32.xlu0 %v8258_v52, %s7090_s28  ;;  %4582 = vrot.lane.b32.xlu1 %v8256_v50, %s7090_s28  ;;  %v8297_v5 = vmul.f32 %v6988_v63, %v8877_v35  ;;  %v8334_v35 = vld [vmem:[#allocation7 + $0x8] sm:$0xff] }
 0x2e6   :  { %v8309_v57 = vpack.c.bf16 %v8294_v42, %v8297_v5 }
 0x2e8   :  { %4584 = vrot.lane.b32.xlu0 %v8268_v41, %s7090_s28  ;;  %4586 = vrot.lane.b32.xlu1 %v8265_v11, %s7090_s28 }
 0x30d   :  { %v2280_v8 = vpop.trf.xlu0 }
 0x30e   :  { %6263 = vmatprep.mubr.msk.f32.mxu0 %vm1516_vm1, %v2280_v8 }
 0x311   :  { %v2281_v10 = vpop.trf.xlu0 }
 0x312   :  { %v2393_v16 = vpop.trf.xlu1  ;;  %6264 = vmatmul.mubr.msk.f32.vlgmr.msra.gmra.mrb[34].mxu0 %vm1516_vm1, %v2281_v10 }
 0x313   :  { %6270 = vmatprep.mubr.msk.f32.mxu1 %vm1516_vm1, %v2393_v16  ;;  %6606 = vmatpush3.bf16.msra.mxu0 %v8159_v21 }
 0x314   :  { %6612 = vmatprep.subr.bf16.mxu0 %v8279_v26 }
 0x316   :  { %v2394_v33 = vpop.trf.xlu1 }
 0x317   :  { %v2506_v44 = vpop.trf.xlu0  ;;  %6271 = vmatmul.mubr.msk.f32.vlgmr.msra.gmra.mrb[30].mxu1 %vm1516_vm1, %v2394_v33 }
 0x318   :  { %6277 = vmatprep.mubr.msk.f32.mxu0 %vm1516_vm1, %v2506_v44  ;;  %6610 = vmatpush3.bf16.msra.mxu1 %v8224_v43 }
 0x319   :  { %6616 = vmatprep.subr.bf16.mxu1 %v8287_v40 }
 0x31a   :  { %v2619_v15 = vpop.trf.xlu1 }
 0x31b   :  { %v2507_v28 = vpop.trf.xlu0  ;;  %6284 = vmatprep.mubr.msk.f32.mxu1 %vm1516_vm1, %v2619_v15 }
 0x31c   :  { %6278 = vmatmul.mubr.msk.f32.vlgmr.msra.gmra.mrb[36].mxu0 %vm1516_vm1, %v2507_v28 }
 0x31d   :  { %6614 = vmatpush3.bf16.msra.mxu0 %v8279_v26 }
 0x31e   :  { %6620 = vmatprep.subr.bf16.mxu0 %v8302_v55  ;;  %v2620_v22 = vpop.trf.xlu1 }
 0x31f   :  { %v2732_v47 = vpop.trf.xlu0  ;;  %6285 = vmatmul.mubr.msk.f32.vlgmr.msra.gmra.mrb[32].mxu1 %vm1516_vm1, %v2620_v22 }
 0x320   :  { %6291 = vmatprep.mubr.msk.f32.mxu0 %vm1516_vm1, %v2732_v47  ;;  %6618 = vmatpush3.bf16.msra.mxu1 %v8287_v40 }
 0x321   :  { %6624 = vmatprep.subr.bf16.mxu1 %v8309_v57 }
 0x322   :  { %v2845_v56 = vpop.trf.xlu1 }
 0x323   :  { %v2733_v38 = vpop.trf.xlu0  ;;  %6298 = vmatprep.mubr.msk.f32.mxu1 %vm1516_vm1, %v2845_v56 }
 0x324   :  { %6292 = vmatmul.mubr.msk.f32.vlgmr.msra.gmra.mrb[38].mxu0 %vm1516_vm1, %v2733_v38 }
 0x325   :  { %6622 = vmatpush3.bf16.msra.mxu0 %v8302_v55 }
 0x326   :  { %v2846_v60 = vpop.trf.xlu1 }
 0x327   :  { %v2958_v37 = vpop.trf.xlu0  ;;  %6299 = vmatmul.mubr.msk.f32.vlgmr.msra.gmra.mrb[34].mxu1 %vm1516_vm1, %v2846_v60 }
 0x328   :  { %6305 = vmatprep.mubr.msk.f32.mxu0 %vm1516_vm1, %v2958_v37  ;;  %6626 = vmatpush3.bf16.msra.mxu1 %v8309_v57 }
 0x32a   :  { %v3071_v0 = vpop.trf.xlu1 }
 0x32b   :  { %v2959_v39 = vpop.trf.xlu0  ;;  %6312 = vmatprep.mubr.msk.f32.mxu1 %vm1516_vm1, %v3071_v0 }
 0x32c   :  { %6306 = vmatmul.mubr.msk.f32.vlgmr.msra.gmra.mrb[40].mxu0 %vm1516_vm1, %v2959_v39 }
 0x32d   :  { %6319 = vmatprep.mubr.msk.f32.mxu0 %vm1516_vm1, %v1397_v19 }
 0x32e   :  { %v3072_v46 = vpop.trf.xlu1 }
 0x32f   :  { %6313 = vmatmul.mubr.msk.f32.vlgmr.msra.gmra.mrb[36].mxu1 %vm1516_vm1, %v3072_v46 }
 0x330   :  { %6326 = vmatprep.mubr.msk.f32.mxu1 %vm1516_vm1, %v1399_v49 }
 0x369   :  { %v6209_v1 = vpop.f32.mrb[16].mxu1 }
 0x36a   :  { %v1601_v17 = vadd.f32 %v6209_v1, %v8334_v35  ;;  %v1595_v8 = vpop.f32.mrb[17].mxu1 }
 0x36b   :  { %v1596_v10 = vadd.f32 %v1595_v8, %v8336_v18 }
 0x36c   :  { %v2214_v16 = vmax.f32 %v1601_v17, 0.0 }
 0x36d   :  { %v2213_v33 = vmax.f32 %v1596_v10, 0.0 }
 0x36e   :  { %v2230_v30 = vmul.f32 %v2214_v16, %v2214_v16 }
 0x36f   :  { %v2229_v44 = vmul.f32 %v2213_v33, %v2213_v33 }
 0x370   :  { %v8346_v63 = vsel %vm2247_vm4, %v2230_v30, 0.0 }
 0x371   :  { %v8350_v28 = vsel %vm2247_vm4, %v2229_v44, 0.0 }
 0x372   :  { %v6216_v15 = vpop.f32.mrb[18].mxu1 }
 0x373   :  { %v1688_v22 = vadd.f32 %v6216_v15, %v8334_v35  ;;  %v1682_v47 = vpop.f32.mrb[19].mxu1 }
 0x374   :  { %v1683_v56 = vadd.f32 %v1682_v47, %v8336_v18 }
 0x375   :  { %v2216_v38 = vmax.f32 %v1688_v22, 0.0 }
 0x376   :  { %v2215_v60 = vmax.f32 %v1683_v56, 0.0 }
 0x377   :  { %v2232_v7 = vmul.f32 %v2216_v38, %v2216_v38 }
 0x378   :  { %v2231_v24 = vmul.f32 %v2215_v60, %v2215_v60 }
 0x379   :  { %v8356_v6 = vsel %vm2247_vm4, %v2232_v7, 0.0 }
 0x37a   :  { %v6223_v37 = vpop.f32.mrb[20].mxu1  ;;  %v8360_v61 = vsel %vm2247_vm4, %v2231_v24, 0.0 }
 0x37b   :  { %v1775_v3 = vadd.f32 %v6223_v37, %v8334_v35  ;;  %v1769_v0 = vpop.f32.mrb[21].mxu1 }
 0x37c   :  { %v1770_v25 = vadd.f32 %v1769_v0, %v8336_v18 }
 0x37d   :  { %v2218_v19 = vmax.f32 %v1775_v3, 0.0 }
 0x37e   :  { %v2217_v39 = vmax.f32 %v1770_v25, 0.0 }
 0x37f   :  { %v2234_v49 = vmul.f32 %v2218_v19, %v2218_v19 }
 0x380   :  { %v2233_v46 = vmul.f32 %v2217_v39, %v2217_v39 }
 0x381   :  { %v8366_v9 = vsel %vm2247_vm4, %v2234_v49, 0.0 }
 0x382   :  { %v6230_v1 = vpop.f32.mrb[22].mxu1  ;;  %v8370_v17 = vsel %vm2247_vm4, %v2233_v46, 0.0 }
 0x383   :  { %v1862_v8 = vadd.f32 %v6230_v1, %v8334_v35  ;;  %v1856_v10 = vpop.f32.mrb[23].mxu1  ;;  %v6251_v16 = vpop.f32.mrb[32].mxu0 }
 0x384   :  { %v1857_v33 = vadd.f32 %v1856_v10, %v8336_v18  ;;  %v2123_v30 = vadd.f32 %v6251_v16, %v8334_v35  ;;  %v2117_v44 = vpop.f32.mrb[33].mxu0 }
 0x385   :  { %v2220_v15 = vmax.f32 %v1862_v8, 0.0  ;;  %v2118_v22 = vadd.f32 %v2117_v44, %v8336_v18 }
 0x386   :  { %v2219_v47 = vmax.f32 %v1857_v33, 0.0  ;;  %v2226_v56 = vmax.f32 %v2123_v30, 0.0 }
 0x387   :  { %v2236_v38 = vmul.f32 %v2220_v15, %v2220_v15  ;;  %v2225_v60 = vmax.f32 %v2118_v22, 0.0 }
 0x388   :  { %v2235_v7 = vmul.f32 %v2219_v47, %v2219_v47  ;;  %v2242_v24 = vmul.f32 %v2226_v56, %v2226_v56 }
 0x389   :  { %v8378_v37 = vsel %vm2247_vm4, %v2236_v38, 0.0  ;;  %v2241_v3 = vmul.f32 %v2225_v60, %v2225_v60 }
 0x38a   :  { %v6237_v0 = vpop.f32.mrb[24].mxu1  ;;  %v8382_v25 = vsel %vm2247_vm4, %v2242_v24, 0.0  ;;  %v8386_v19 = vsel %vm2247_vm4, %v2235_v7, 0.0 }
 0x38b   :  { %v1949_v39 = vadd.f32 %v6237_v0, %v8334_v35  ;;  %v1943_v49 = vpop.f32.mrb[25].mxu1  ;;  %v8391_v46 = vsel %vm2247_vm4, %v2241_v3, 0.0 }
 0x38c   :  { %v1944_v1 = vadd.f32 %v1943_v49, %v8336_v18 }
 0x38d   :  { %v2222_v8 = vmax.f32 %v1949_v39, 0.0 }
 0x38e   :  { %v2221_v10 = vmax.f32 %v1944_v1, 0.0 }
 0x38f   :  { %v2238_v16 = vmul.f32 %v2222_v8, %v2222_v8 }
 0x390   :  { %v2237_v33 = vmul.f32 %v2221_v10, %v2221_v10 }
 0x391   :  { %v8396_v30 = vsel %vm2247_vm4, %v2238_v16, 0.0 }
 0x392   :  { %v6244_v44 = vpop.f32.mrb[26].mxu1  ;;  %v8400_v15 = vsel %vm2247_vm4, %v2237_v33, 0.0 }
 0x393   :  { %v2036_v22 = vadd.f32 %v6244_v44, %v8334_v35  ;;  %v2030_v47 = vpop.f32.mrb[27].mxu1 }
 0x394   :  { %v2031_v56 = vadd.f32 %v2030_v47, %v8336_v18 }
 0x395   :  { %v2224_v38 = vmax.f32 %v2036_v22, 0.0 }
 0x396   :  { %v2223_v60 = vmax.f32 %v2031_v56, 0.0 }
 0x397   :  { %v2240_v7 = vmul.f32 %v2224_v38, %v2224_v38 }
 0x398   :  { %v2239_v24 = vmul.f32 %v2223_v60, %v2223_v60 }
 0x399   :  { %v8406_v3 = vsel %vm2247_vm4, %v2240_v7, 0.0 }
 0x39a   :  { %v6258_v0 = vpop.f32.mrb[28].mxu1  ;;  %v8410_v39 = vsel %vm2247_vm4, %v2239_v24, 0.0  ;;  %v8881_v24 = vld [vmem:[#allocation13_spill] sm:$0xff] }
 0x39b   :  { %v2210_v49 = vadd.f32 %v6258_v0, %v8334_v35  ;;  %v2204_v1 = vpop.f32.mrb[29].mxu1  ;;  %v8882_v0 = vld [vmem:[#allocation16_spill] sm:$0xff] }
 0x39c   :  { %v2205_v8 = vadd.f32 %v2204_v1, %v8336_v18 }
 0x39d   :  { %v2228_v10 = vmax.f32 %v2210_v49, 0.0 }
 0x39e   :  { %v2227_v16 = vmax.f32 %v2205_v8, 0.0 }
 0x39f   :  { %v2244_v33 = vmul.f32 %v2228_v10, %v2228_v10  ;;  %v8883_v10 = vld [vmem:[#allocation15_spill] sm:$0xff] }
 0x3a0   :  { %v2243_v44 = vmul.f32 %v2227_v16, %v2227_v16 }
 0x3a1   :  { %v8416_v22 = vsel %vm2247_vm4, %v2244_v33, 0.0  ;;  %v8884_v33 = vld [vmem:[#allocation18_spill] sm:$0xff] }
 0x3a2   :  { %v8420_v47 = vsel %vm2247_vm4, %v2243_v44, 0.0 }
 0x3e5   :  { %v6265_v56 = vpop.f32.mrb[34].mxu0 }
 0x3e6   :  { %v2368_v38 = vpop.f32.mrb[35].mxu0 }
 0x3e7   :  { %v6627_v60 = vpack.c.bf16 %v6265_v56, %v2368_v38  ;;  %v8885_v38 = vld [vmem:[#allocation17_spill] sm:$0xff] }
 0x3e9   :  { %6628 = vmatprep.subr.bf16.mxu0 %v6627_v60 }
 0x3ea   :  { %v6272_v35 = vpop.f32.mrb[30].mxu1  ;;  %6630 = vmatpush3.bf16.msra.mxu0 %v6627_v60 }
 0x3eb   :  { %v2481_v7 = vpop.f32.mrb[31].mxu1 }
 0x3ec   :  { %v6631_v18 = vpack.c.bf16 %v6272_v35, %v2481_v7  ;;  %v8886_v35 = vld [vmem:[#allocation23_spill] sm:$0xff] }
 0x3ed   :  { %6320 = vmatmul.mubr.msk.f32.vlgmr.msra.gmra.mrb[42].mxu0 %vm1516_vm1, %v8881_v24  ;;  %v8887_v24 = vld [vmem:[#allocation19_spill] sm:$0xff] }
 0x3ee   :  { %6632 = vmatprep.subr.bf16.mxu1 %v6631_v18  ;;  %6333 = vmatprep.mubr.msk.f32.mxu0 %vm1516_vm1, %v8882_v0 }
 0x3ef   :  { %v6279_v49 = vpop.f32.mrb[36].mxu0  ;;  %6634 = vmatpush3.bf16.msra.mxu1 %v6631_v18 }
 0x3f0   :  { %v2594_v54 = vpop.f32.mrb[37].mxu0 }
 0x3f1   :  { %v6635_v1 = vpack.c.bf16 %v6279_v49, %v2594_v54  ;;  %v8888_v49 = vld [vmem:[#allocation27_spill] sm:$0xff] }
 0x3f2   :  { %v6286_v8 = vpop.f32.mrb[32].mxu1  ;;  %6327 = vmatmul.mubr.msk.f32.vlgmr.msra.gmra.mrb[38].mxu1 %vm1516_vm1, %v8883_v10 }
 0x3f3   :  { %6636 = vmatprep.subr.bf16.mxu0 %v6635_v1  ;;  %v2707_v16 = vpop.f32.mrb[33].mxu1  ;;  %6340 = vmatprep.mubr.msk.f32.mxu1 %vm1516_vm1, %v8884_v33 }
 0x3f4   :  { %v6639_v44 = vpack.c.bf16 %v6286_v8, %v2707_v16  ;;  %6638 = vmatpush3.bf16.msra.mxu0 %v6635_v1  ;;  %v8889_v8 = vld [vmem:[#allocation25_spill] sm:$0xff] }
 0x3f5   :  { %v8890_v16 = vld [vmem:[#allocation21_spill] sm:$0xff] }
 0x3f6   :  { %6640 = vmatprep.subr.bf16.mxu1 %v6639_v44 }
 0x3f7   :  { %v6293_v56 = vpop.f32.mrb[38].mxu0  ;;  %6334 = vmatmul.mubr.msk.f32.vlgmr.msra.gmra.mrb[44].mxu0 %vm1516_vm1, %v8885_v38  ;;  %6642 = vmatpush3.bf16.msra.mxu1 %v6639_v44 }
 0x3f8   :  { %v2820_v60 = vpop.f32.mrb[39].mxu0  ;;  %6347 = vmatprep.mubr.msk.f32.mxu0 %vm1516_vm1, %v8886_v35 }
 0x3f9   :  { %v6643_v7 = vpack.c.bf16 %v6293_v56, %v2820_v60  ;;  %v8891_v56 = vld [vmem:[#allocation29_spill] sm:$0xff] }
 0x3fa   :  { %v6300_v18 = vpop.f32.mrb[34].mxu1  ;;  %6341 = vmatmul.mubr.msk.f32.vlgmr.msra.gmra.mrb[40].mxu1 %vm1516_vm1, %v8887_v24  ;;  %v8892_v60 = vld [vmem:[#allocation33_spill] sm:$0xff] }
 0x3fb   :  { %6644 = vmatprep.subr.bf16.mxu0 %v6643_v7  ;;  %v2933_v0 = vpop.f32.mrb[35].mxu1  ;;  %6354 = vmatprep.mubr.msk.f32.mxu1 %vm1516_vm1, %v8888_v49 }
 0x3fc   :  { %v6647_v54 = vpack.c.bf16 %v6300_v18, %v2933_v0  ;;  %6646 = vmatpush3.bf16.msra.mxu0 %v6643_v7  ;;  %v8893_v7 = vld [vmem:[#allocation20_spill] sm:$0xff]  ;;  %v8894_v18 = vld [vmem:[#allocation31_spill] sm:$0xff] }
 0x3fe   :  { %6648 = vmatprep.subr.bf16.mxu1 %v6647_v54 }
 0x3ff   :  { %v6307_v1 = vpop.f32.mrb[40].mxu0  ;;  %6348 = vmatmul.mubr.msk.f32.vlgmr.msra.gmra.mrb[46].mxu0 %vm1516_vm1, %v8889_v8  ;;  %6650 = vmatpush3.bf16.msra.mxu1 %v6647_v54 }
 0x400   :  { %v3046_v10 = vpop.f32.mrb[41].mxu0  ;;  %6361 = vmatprep.mubr.msk.f32.mxu0 %vm1516_vm1, %v8890_v16 }
 0x401   :  { %v6651_v33 = vpack.c.bf16 %v6307_v1, %v3046_v10 }
 0x402   :  { %v6314_v44 = vpop.f32.mrb[36].mxu1  ;;  %6355 = vmatmul.mubr.msk.f32.vlgmr.msra.gmra.mrb[42].mxu1 %vm1516_vm1, %v8891_v56 }
 0x403   :  { %6652 = vmatprep.subr.bf16.mxu0 %v6651_v33  ;;  %v3159_v38 = vpop.f32.mrb[37].mxu1  ;;  %6368 = vmatprep.mubr.msk.f32.mxu1 %vm1516_vm1, %v8892_v60 }
 0x404   :  { %v6655_v35 = vpack.c.bf16 %v6314_v44, %v3159_v38  ;;  %6654 = vmatpush3.bf16.msra.mxu0 %v6651_v33 }
 0x405   :  { %6660 = vmatprep.subr.bf16.mxu0 %v8125_v59 }
 0x406   :  { %6656 = vmatprep.subr.bf16.mxu1 %v6655_v35 }
 0x407   :  { %6362 = vmatmul.mubr.msk.f32.vlgmr.msra.gmra.mrb[48].mxu0 %vm1516_vm1, %v8893_v7  ;;  %6658 = vmatpush3.bf16.msra.mxu1 %v6655_v35 }
 0x408   :  { %6662 = vmatpush3.bf16.msra.mxu0 %v8125_v59  ;;  %6375 = vmatprep.mubr.msk.f32.mxu0 %vm1516_vm1, %v8350_v28 }
 0x409   :  { %6664 = vmatprep.subr.bf16.mxu1 %v8205_v20  ;;  %6668 = vmatprep.subr.bf16.mxu0 %v8159_v21 }
 0x40a   :  { %6369 = vmatmul.mubr.msk.f32.vlgmr.msra.gmra.mrb[44].mxu1 %vm1516_vm1, %v8894_v18 }
 0x40b   :  { %6376 = vmatmul.mubr.msk.f32.vlgmr.msra.gmra.mrb[42].mxu0 %vm1516_vm1, %v8346_v63  ;;  %6666 = vmatpush3.bf16.msra.mxu1 %v8205_v20 }
 0x40c   :  { %6382 = vmatprep.mubr.msk.f32.mxu1 %vm1516_vm1, %v8360_v61  ;;  %6670 = vmatpush3.bf16.msra.mxu0 %v8159_v21 }
 0x40d   :  { %6389 = vmatprep.mubr.msk.f32.mxu0 %vm1516_vm1, %v8370_v17  ;;  %6672 = vmatprep.subr.bf16.mxu1 %v8224_v43 }
 0x40e   :  { %6676 = vmatprep.subr.bf16.mxu0 %v8279_v26  ;;  %6383 = vmatmul.mubr.msk.f32.vlgmr.msra.gmra.mrb[38].mxu1 %vm1516_vm1, %v8356_v6 }
 0x40f   :  { %6390 = vmatmul.mubr.msk.f32.vlgmr.msra.gmra.mrb[44].mxu0 %vm1516_vm1, %v8366_v9  ;;  %6674 = vmatpush3.bf16.msra.mxu1 %v8224_v43 }
 0x410   :  { %6396 = vmatprep.mubr.msk.f32.mxu1 %vm1516_vm1, %v8386_v19  ;;  %6678 = vmatpush3.bf16.msra.mxu0 %v8279_v26 }
 0x411   :  { %6403 = vmatprep.mubr.msk.f32.mxu0 %vm1516_vm1, %v8400_v15  ;;  %6680 = vmatprep.subr.bf16.mxu1 %v8287_v40 }
 0x412   :  { %6684 = vmatprep.subr.bf16.mxu0 %v8302_v55  ;;  %6397 = vmatmul.mubr.msk.f32.vlgmr.msra.gmra.mrb[40].mxu1 %vm1516_vm1, %v8378_v37 }
 0x413   :  { %6404 = vmatmul.mubr.msk.f32.vlgmr.msra.gmra.mrb[46].mxu0 %vm1516_vm1, %v8396_v30  ;;  %6682 = vmatpush3.bf16.msra.mxu1 %v8287_v40 }
 0x414   :  { %6410 = vmatprep.mubr.msk.f32.mxu1 %vm1516_vm1, %v8410_v39  ;;  %6686 = vmatpush3.bf16.msra.mxu0 %v8302_v55 }
 0x415   :  { %6417 = vmatprep.mubr.msk.f32.mxu0 %vm1516_vm1, %v8391_v46  ;;  %6688 = vmatprep.subr.bf16.mxu1 %v8309_v57 }
 0x416   :  { %6411 = vmatmul.mubr.msk.f32.vlgmr.msra.gmra.mrb[42].mxu1 %vm1516_vm1, %v8406_v3 }
 0x417   :  { %6418 = vmatmul.mubr.msk.f32.vlgmr.msra.gmra.mrb[48].mxu0 %vm1516_vm1, %v8382_v25  ;;  %6690 = vmatpush3.bf16.msra.mxu1 %v8309_v57 }
 0x418   :  { %6424 = vmatprep.mubr.msk.f32.mxu1 %vm1516_vm1, %v8420_v47  ;;  %6708 = vmatprep.subr.bf16.mxu1 %v8046_v32 }
 0x41a   :  { %6425 = vmatmul.mubr.msk.f32.vlgmr.msra.gmra.mrb[44].mxu1 %vm1516_vm1, %v8416_v22 }
 0x41b   :  { %6710 = vmatpush3.bf16.msra.mxu1 %v8046_v32  ;;  %6471 = vmatprep.mubr.msk.f32.mxu1 %vm1516_vm1, %v8350_v28 }
 0x41c   :  { %6712 = vmatprep.subr.bf16.mxu1 %v8054_v14 }
 0x41e   :  { %6472 = vmatmul.mubr.msk.f32.vlgmr.msra.gmra.mrb[46].mxu1 %vm1516_vm1, %v8346_v63 }
 0x41f   :  { %6714 = vmatpush3.bf16.msra.mxu1 %v8054_v14  ;;  %6478 = vmatprep.mubr.msk.f32.mxu1 %vm1516_vm1, %v8360_v61 }
 0x420   :  { %6716 = vmatprep.subr.bf16.mxu1 %v8061_v31 }
 0x422   :  { %6479 = vmatmul.mubr.msk.f32.vlgmr.msra.gmra.mrb[48].mxu1 %vm1516_vm1, %v8356_v6 }
 0x423   :  { %6718 = vmatpush3.bf16.msra.mxu1 %v8061_v31  ;;  %6485 = vmatprep.mubr.msk.f32.mxu1 %vm1516_vm1, %v8370_v17 }
 0x424   :  { %6720 = vmatprep.subr.bf16.mxu1 %v8067_v29 }
 0x426   :  { %6486 = vmatmul.mubr.msk.f32.vlgmr.msra.gmra.mrb[50].mxu1 %vm1516_vm1, %v8366_v9 }
 0x427   :  { %6722 = vmatpush3.bf16.msra.mxu1 %v8067_v29  ;;  %6492 = vmatprep.mubr.msk.f32.mxu1 %vm1516_vm1, %v8386_v19 }
 0x428   :  { %6724 = vmatprep.subr.bf16.mxu1 %v8069_v23 }
 0x42a   :  { %6493 = vmatmul.mubr.msk.f32.vlgmr.msra.gmra.mrb[52].mxu1 %vm1516_vm1, %v8378_v37 }
 0x42b   :  { %6726 = vmatpush3.bf16.msra.mxu1 %v8069_v23  ;;  %6499 = vmatprep.mubr.msk.f32.mxu1 %vm1516_vm1, %v8400_v15 }
 0x42c   :  { %6728 = vmatprep.subr.bf16.mxu1 %v8075_v4 }
 0x42e   :  { %6500 = vmatmul.mubr.msk.f32.vlgmr.msra.gmra.mrb[54].mxu1 %vm1516_vm1, %v8396_v30 }
 0x42f   :  { %6730 = vmatpush3.bf16.msra.mxu1 %v8075_v4  ;;  %6506 = vmatprep.mubr.msk.f32.mxu1 %vm1516_vm1, %v8410_v39 }
 0x430   :  { %6732 = vmatprep.subr.bf16.mxu1 %v8098_v34 }
 0x432   :  { %6507 = vmatmul.mubr.msk.f32.vlgmr.msra.gmra.mrb[56].mxu1 %vm1516_vm1, %v8406_v3 }
 0x433   :  { %6734 = vmatpush3.bf16.msra.mxu1 %v8098_v34  ;;  %6513 = vmatprep.mubr.msk.f32.mxu1 %vm1516_vm1, %v8391_v46 }
 0x434   :  { %6736 = vmatprep.subr.bf16.mxu1 %v8119_v48 }
 0x436   :  { %6514 = vmatmul.mubr.msk.f32.vlgmr.msra.gmra.mrb[58].mxu1 %vm1516_vm1, %v8382_v25 }
 0x437   :  { %6738 = vmatpush3.bf16.msra.mxu1 %v8119_v48  ;;  %6520 = vmatprep.mubr.msk.f32.mxu1 %vm1516_vm1, %v8420_v47 }
 0x43a   :  { %6521 = vmatmul.mubr.msk.f32.vlgmr.msra.gmra.mrb[60].mxu1 %vm1516_vm1, %v8416_v22 }
 0x4de   :  { %v6377_v32 = vpop.f32.mrb[42].mxu0 }
 0x4df   :  { %4482 = vrot.lane.b32.xlu1 %v6377_v32, %s7090_s28  ;;  %v3888_v14 = vpop.f32.mrb[43].mxu0  ;;  %v4624_v32 = vld [vmem:[%s8808_s8] sm:$0xff] }
 0x4e0   :  { %4480 = vrot.lane.b32.xlu0 %v3888_v14, %s7090_s28  ;;  %v4625_v14 = vld [vmem:[%s8808_s8 + $0x8] sm:$0xff] }
 0x4e1   :  { %v6384_v31 = vpop.f32.mrb[38].mxu1 }
 0x4e2   :  { %v6391_v29 = vpop.f32.mrb[44].mxu0  ;;  %v3969_v23 = vpop.f32.mrb[39].mxu1 }
 0x4e3   :  { %v4050_v4 = vpop.f32.mrb[45].mxu0  ;;  %4486 = vrot.lane.b32.xlu1 %v6384_v31, %s7090_s28  ;;  %v4626_v31 = vld [vmem:[%s8808_s8 + $0x10] sm:$0xff] }
 0x4e4   :  { %4484 = vrot.lane.b32.xlu0 %v3969_v23, %s7090_s28  ;;  %v4627_v23 = vld [vmem:[%s8808_s8 + $0x18] sm:$0xff] }
 0x4e5   :  { %v6398_v34 = vpop.f32.mrb[40].mxu1 }
 0x4e6   :  { %v6405_v48 = vpop.f32.mrb[46].mxu0  ;;  %v4131_v59 = vpop.f32.mrb[41].mxu1 }
 0x4e7   :  { %v4212_v21 = vpop.f32.mrb[47].mxu0  ;;  %4490 = vrot.lane.b32.xlu1 %v6391_v29, %s7090_s28  ;;  %v6691_v29 = vpack.c.bf16 %v4625_v14, %v4624_v32 }
 0x4e8   :  { %4488 = vrot.lane.b32.xlu0 %v4050_v4, %s7090_s28  ;;  %v6695_v4 = vpack.c.bf16 %v4627_v23, %v4626_v31 }
 0x4e9   :  { %v6412_v20 = vpop.f32.mrb[42].mxu1  ;;  %6692 = vmatprep.subr.bf16.mxu0 %v6691_v29 }
 0x4ea   :  { %v6419_v43 = vpop.f32.mrb[48].mxu0  ;;  %v4293_v26 = vpop.f32.mrb[43].mxu1  ;;  %6694 = vmatpush3.bf16.msra.mxu0 %v6691_v29 }
 0x4eb   :  { %v4374_v40 = vpop.f32.mrb[49].mxu0  ;;  %4494 = vrot.lane.b32.xlu1 %v6398_v34, %s7090_s28  ;;  %v4628_v34 = vld [vmem:[%s8808_s8 + $0x20] sm:$0xff]  ;;  %6696 = vmatprep.subr.bf16.mxu0 %v6695_v4 }
 0x4ec   :  { %4492 = vrot.lane.b32.xlu0 %v4131_v59, %s7090_s28 }
 0x4ed   :  { %v6426_v55 = vpop.f32.mrb[44].mxu1 }
 0x4ee   :  { %v4455_v57 = vpop.f32.mrb[45].mxu1  ;;  %6698 = vmatpush3.bf16.msra.mxu0 %v6695_v4 }
 0x4ef   :  { %4498 = vrot.lane.b32.xlu1 %v6405_v48, %s7090_s28  ;;  %v4629_v48 = vld [vmem:[%s8808_s8 + $0x28] sm:$0xff] }
 0x4f0   :  { %4496 = vrot.lane.b32.xlu0 %v4212_v21, %s7090_s28  ;;  %v6699_v59 = vpack.c.bf16 %v4629_v48, %v4628_v34  ;;  %v4630_v21 = vld [vmem:[%s8808_s8 + $0x30] sm:$0xff] }
 0x4f1   :  { %v8556_v24 = vpop.f32.mrb[46].mxu1 }
 0x4f2   :  { %v8558_v0 = vpop.f32.mrb[47].mxu1  ;;  %6700 = vmatprep.subr.bf16.mxu0 %v6699_v59 }
 0x4f3   :  { %4502 = vrot.lane.b32.xlu1 %v6412_v20, %s7090_s28  ;;  %v4631_v20 = vld [vmem:[%s8808_s8 + $0x38] sm:$0xff]  ;;  %6702 = vmatpush3.bf16.msra.mxu0 %v6699_v59  ;;  %s7091_s8 = smov 48  }
 0x4f4   :  { %4500 = vrot.lane.b32.xlu0 %v4293_v26, %s7090_s28  ;;  %v4561_v26 = vpop.permute.xlu1 %4560 }
 0x4f5   :  { %v8562_v49 = vpop.f32.mrb[48].mxu1 }
 0x4f6   :  { %v8564_v54 = vpop.f32.mrb[49].mxu1 }
 0x4f7   :  { %4506 = vrot.lane.b32.xlu1 %v6419_v43, %s7090_s28  ;;  %v6703_v43 = vpack.c.bf16 %v4631_v20, %v4630_v21 }
 0x4f8   :  { %4504 = vrot.lane.b32.xlu0 %v4374_v40, %s7090_s28  ;;  %v4563_v40 = vpop.permute.xlu1 %4562 }
 0x4f9   :  { %v8568_v1 = vpop.f32.mrb[50].mxu1  ;;  %6704 = vmatprep.subr.bf16.mxu0 %v6703_v43 }
 0x4fa   :  { %v8570_v8 = vpop.f32.mrb[51].mxu1  ;;  %6706 = vmatpush3.bf16.msra.mxu0 %v6703_v43 }
 0x4fb   :  { %8895 = vst [vmem:[#allocation22_spill] sm:$0xff] %v8570_v8  ;;  %4510 = vrot.lane.b32.xlu1 %v6426_v55, %s7090_s28 }
 0x4fc   :  { %4508 = vrot.lane.b32.xlu0 %v4455_v57, %s7090_s28  ;;  %v4567_v55 = vpop.permute.xlu1 %4566  ;;  %v4565_v57 = vpop.permute.xlu0 %4564 }
 0x4fd   :  { %v8574_v10 = vpop.f32.mrb[52].mxu1 }
 0x4fe   :  { %8896 = vst [vmem:[#allocation36_spill] sm:$0xff] %v8574_v10  ;;  %v8576_v16 = vpop.f32.mrb[53].mxu1 }
 0x4ff   :  { %8897 = vst [vmem:[#allocation34_spill] sm:$0xff] %v8576_v16  ;;  %4590 = vrot.lane.b32.xlu1 %v8294_v42, %s7090_s28 }
 0x500   :  { %4588 = vrot.lane.b32.xlu0 %v8297_v5, %s7090_s28  ;;  %v4571_v32 = vpop.permute.xlu1 %4570  ;;  %v4569_v14 = vpop.permute.xlu0 %4568 }
 0x501   :  { %v8582_v33 = vpop.f32.mrb[54].mxu1 }
 0x502   :  { %8898 = vst [vmem:[#allocation24_spill] sm:$0xff] %v8582_v33  ;;  %v8584_v44 = vpop.f32.mrb[55].mxu1 }
 0x503   :  { %8899 = vst [vmem:[#allocation35_spill] sm:$0xff] %v8584_v44 }
 0x504   :  { %v4575_v31 = vpop.permute.xlu1 %4574  ;;  %v4573_v29 = vpop.permute.xlu0 %4572 }
 0x505   :  { %v8586_v56 = vpop.f32.mrb[56].mxu1 }
 0x506   :  { %8900 = vst [vmem:[#allocation26_spill] sm:$0xff] %v8586_v56  ;;  %v8588_v38 = vpop.f32.mrb[57].mxu1 }
 0x507   :  { %8901 = vst [vmem:[#allocation41_spill] sm:$0xff] %v8588_v38 }
 0x508   :  { %v4579_v23 = vpop.permute.xlu1 %4578  ;;  %v4577_v34 = vpop.permute.xlu0 %4576 }
 0x509   :  { %v8590_v60 = vpop.f32.mrb[58].mxu1 }
 0x50a   :  { %8902 = vst [vmem:[#allocation43_spill] sm:$0xff] %v8590_v60  ;;  %v8592_v35 = vpop.f32.mrb[59].mxu1 }
 0x50b   :  { %8903 = vst [vmem:[#allocation37_spill] sm:$0xff] %v8592_v35 }
 0x50c   :  { %v4583_v48 = vpop.permute.xlu1 %4582 }
 0x50d   :  { %v8594_v7 = vpop.f32.mrb[60].mxu1 }
 0x50e   :  { %8904 = vst [vmem:[#allocation38_spill] sm:$0xff] %v8594_v7  ;;  %v8596_v18 = vpop.f32.mrb[61].mxu1 }
 0x50f   :  { %8905 = vst [vmem:[#allocation28_spill] sm:$0xff] %v8596_v18  ;;  %v4581_v18 = vpop.permute.xlu0 %4580 }
 0x510   :  { %v4587_v7 = vpop.permute.xlu1 %4586 }
 0x513   :  { %v4585_v35 = vpop.permute.xlu0 %4584 }
 0x551   :  { %v4483_v4 = vpop.permute.xlu1 %4482 }
 0x552   :  { %v4529_v21 = vmul.f32 %v4483_v4, %v8102_v53  ;;  %v4481_v59 = vpop.permute.xlu0 %4480 }
 0x553   :  { %v4528_v20 = vmul.f32 %v4481_v59, %v8107_v51 }
 0x554   :  { %v4609_v43 = vadd.f32 %v4563_v40, %v4529_v21 }
 0x555   :  { %v4608_v60 = vadd.f32 %v4561_v26, %v4528_v20  ;;  %v4487_v38 = vpop.permute.xlu1 %4486 }
 0x556   :  { %v4531_v56 = vmul.f32 %v4487_v38, %v8192_v12  ;;  %v4485_v44 = vpop.permute.xlu0 %4484  ;;  %4654 = vrot.lane.b32.xlu1 %v4609_v43, %s7090_s28 }
 0x557   :  { %v4530_v33 = vmul.f32 %v4485_v44, %v8195_v45  ;;  %4652 = vrot.lane.b32.xlu0 %v4608_v60, %s7090_s28 }
 0x558   :  { %v4611_v16 = vadd.f32 %v4567_v55, %v4531_v56 }
 0x559   :  { %v4610_v10 = vadd.f32 %v4565_v57, %v4530_v33  ;;  %v4491_v8 = vpop.permute.xlu1 %4490 }
 0x55a   :  { %v4533_v53 = vmul.f32 %v4491_v8, %v8148_v2  ;;  %v4489_v4 = vpop.permute.xlu0 %4488  ;;  %4658 = vrot.lane.b32.xlu1 %v4611_v16, %s7090_s28 }
 0x55b   :  { %v4532_v51 = vmul.f32 %v4489_v4, %v8151_v58  ;;  %4656 = vrot.lane.b32.xlu0 %v4610_v10, %s7090_s28 }
 0x55c   :  { %v4613_v12 = vadd.f32 %v4571_v32, %v4533_v53 }
 0x55d   :  { %v4612_v38 = vadd.f32 %v4569_v14, %v4532_v51  ;;  %v4495_v26 = vpop.permute.xlu1 %4494 }
 0x55e   :  { %v4535_v40 = vmul.f32 %v4495_v26, %v8215_v27  ;;  %v4493_v45 = vpop.permute.xlu0 %4492  ;;  %4662 = vrot.lane.b32.xlu1 %v4613_v12, %s7090_s28 }
 0x55f   :  { %v4534_v33 = vmul.f32 %v4493_v45, %v8218_v62  ;;  %4660 = vrot.lane.b32.xlu0 %v4612_v38, %s7090_s28 }
 0x560   :  { %v4615_v2 = vadd.f32 %v4575_v31, %v4535_v40 }
 0x561   :  { %v4614_v8 = vadd.f32 %v4573_v29, %v4534_v33  ;;  %v4499_v44 = vpop.permute.xlu1 %4498 }
 0x562   :  { %v4537_v16 = vmul.f32 %v4499_v44, %v8247_v36  ;;  %v4497_v58 = vpop.permute.xlu0 %4496  ;;  %4666 = vrot.lane.b32.xlu1 %v4615_v2, %s7090_s28 }
 0x563   :  { %v4536_v10 = vmul.f32 %v4497_v58, %v8250_v13  ;;  %4664 = vrot.lane.b32.xlu0 %v4614_v8, %s7090_s28 }
 0x564   :  { %v4617_v27 = vadd.f32 %v4579_v23, %v4537_v16 }
 0x565   :  { %v4616_v56 = vadd.f32 %v4577_v34, %v4536_v10  ;;  %v4503_v60 = vpop.permute.xlu1 %4502 }
 0x566   :  { %v4539_v55 = vmul.f32 %v4503_v60, %v8256_v50  ;;  %v4501_v62 = vpop.permute.xlu0 %4500  ;;  %4670 = vrot.lane.b32.xlu1 %v4617_v27, %s7090_s28 }
 0x567   :  { %v4538_v57 = vmul.f32 %v4501_v62, %v8258_v52  ;;  %4668 = vrot.lane.b32.xlu0 %v4616_v56, %s7090_s28 }
 0x568   :  { %v4619_v36 = vadd.f32 %v4583_v48, %v4539_v55 }
 0x569   :  { %v4618_v32 = vadd.f32 %v4581_v18, %v4538_v57  ;;  %v4507_v14 = vpop.permute.xlu1 %4506 }
 0x56a   :  { %v4541_v31 = vmul.f32 %v4507_v14, %v8265_v11  ;;  %v4505_v13 = vpop.permute.xlu0 %4504  ;;  %4674 = vrot.lane.b32.xlu1 %v4619_v36, %s7090_s28 }
 0x56b   :  { %v4540_v29 = vmul.f32 %v4505_v13, %v8268_v41  ;;  %4672 = vrot.lane.b32.xlu0 %v4618_v32, %s7090_s28 }
 0x56c   :  { %v4621_v50 = vadd.f32 %v4587_v7, %v4541_v31 }
 0x56d   :  { %v4620_v23 = vadd.f32 %v4585_v35, %v4540_v29  ;;  %v4511_v34 = vpop.permute.xlu1 %4510 }
 0x56e   :  { %4678 = vrot.lane.b32.xlu1 %v4621_v50, %s7090_s28  ;;  %v4509_v52 = vpop.permute.xlu0 %4508  ;;  %v4543_v18 = vmul.f32 %v4511_v34, %v8294_v42 }
 0x56f   :  { %4676 = vrot.lane.b32.xlu0 %v4620_v23, %s7090_s28  ;;  %v4542_v48 = vmul.f32 %v4509_v52, %v8297_v5 }
 0x571   :  { %v4591_v11 = vpop.permute.xlu1 %4590 }
 0x572   :  { %v4623_v21 = vadd.f32 %v4591_v11, %v4543_v18  ;;  %v4589_v59 = vpop.permute.xlu0 %4588 }
 0x573   :  { %v4622_v20 = vadd.f32 %v4589_v59, %v4542_v48 }
 0x574   :  { %4682 = vrot.lane.b32.xlu1 %v4623_v21, %s7090_s28 }
 0x575   :  { %4680 = vrot.lane.b32.xlu0 %v4622_v20, %s7090_s28 }
 0x578   :  { %5528 = vrot.lane.b32.xlu1 %v8346_v63, %s7091_s8 }
 0x579   :  { %5526 = vrot.lane.b32.xlu0 %v8350_v28, %s7091_s8 }
 0x57c   :  { %5532 = vrot.lane.b32.xlu1 %v8356_v6, %s7091_s8 }
 0x57d   :  { %5530 = vrot.lane.b32.xlu0 %v8360_v61, %s7091_s8 }
 0x580   :  { %5536 = vrot.lane.b32.xlu1 %v8366_v9, %s7091_s8 }
 0x581   :  { %5534 = vrot.lane.b32.xlu0 %v8370_v17, %s7091_s8 }
 0x584   :  { %5540 = vrot.lane.b32.xlu1 %v8378_v37, %s7091_s8 }
 0x585   :  { %5538 = vrot.lane.b32.xlu0 %v8386_v19, %s7091_s8 }
 0x588   :  { %5544 = vrot.lane.b32.xlu1 %v8396_v30, %s7091_s8 }
 0x589   :  { %5542 = vrot.lane.b32.xlu0 %v8400_v15, %s7091_s8 }
 0x58c   :  { %5548 = vrot.lane.b32.xlu1 %v8406_v3, %s7091_s8 }
 0x58d   :  { %5546 = vrot.lane.b32.xlu0 %v8410_v39, %s7091_s8  ;;  %v5830_v39 = vld [vmem:[%s8810_s10 + $0x2] ss:$0 sm:$0xff]  ;;  %s7093_s10 = smov [#allocation8]  }
 0x58e   :  { %s5628_s26 = sshll.u32 %s7093_s10, 4  ;;  %s5629_s26 = int_to_ptr.vmem [resolvable:$true] %s5628_s26 }
 0x58f   :  { %s7057_s27 = scalar_lea.vmem %s5629_s26, 2048  ;;  %p7062_p11 = scmp.lt.s32.totalorder %s5629_s26, %s5629_s26 }
 0x590   :  { %5552 = vrot.lane.b32.xlu1 %v8382_v25, %s7091_s8  ;;  %p7058_p10 = scmp.ne.s32.totalorder %s5629_s26, %s7057_s27  ;;  %p7063_p12 = scmp.lt.s32.totalorder %s7057_s27, %s7057_s27 }
 0x591   :  { %5550 = vrot.lane.b32.xlu0 %v8391_v46, %s7091_s8 }
 0x592   :  { %p7064_p13 = por %p7063_p12, %p7062_p11 }
 0x594   :  { %p7065_p0 = pnand %p7064_p13, %p7058_p10 }
 0x5c8   :  { %v4655_v41 = vpop.permute.xlu1 %4654 }
 0x5c9   :  { %v4653_v42 = vpop.permute.xlu0 %4652 }
 0x5ca   :  { %6443 = vmatprep.mubr.msk.f32.mxu0 %vm4684_vm5, %v4653_v42 }
 0x5cb   :  { %6444 = vmatmul.mubr.msk.f32.vlgmr.msra.gmra.mrb[50].mxu0 %vm4684_vm5, %v4655_v41 }
 0x5cc   :  { %v4659_v5 = vpop.permute.xlu1 %4658 }
 0x5cd   :  { %v4657_v63 = vpop.permute.xlu0 %4656 }
 0x5ce   :  { %6446 = vmatprep.mubr.msk.f32.mxu0 %vm4684_vm5, %v4657_v63 }
 0x5cf   :  { %6447 = vmatmul.mubr.msk.f32.gmra.mrb[52].mxu0 %vm4684_vm5, %v4659_v5 }
 0x5d0   :  { %v4663_v28 = vpop.permute.xlu1 %4662 }
 0x5d1   :  { %v4661_v6 = vpop.permute.xlu0 %4660 }
 0x5d2   :  { %6449 = vmatprep.mubr.msk.f32.mxu0 %vm4684_vm5, %v4661_v6 }
 0x5d3   :  { %6450 = vmatmul.mubr.msk.f32.gmra.mrb[54].mxu0 %vm4684_vm5, %v4663_v28 }
 0x5d4   :  { %v4667_v61 = vpop.permute.xlu1 %4666 }
 0x5d5   :  { %v4665_v9 = vpop.permute.xlu0 %4664 }
 0x5d6   :  { %6452 = vmatprep.mubr.msk.f32.mxu0 %vm4684_vm5, %v4665_v9 }
 0x5d7   :  { %6453 = vmatmul.mubr.msk.f32.gmra.mrb[56].mxu0 %vm4684_vm5, %v4667_v61 }
 0x5d8   :  { %v4671_v17 = vpop.permute.xlu1 %4670 }
 0x5d9   :  { %v4669_v37 = vpop.permute.xlu0 %4668 }
 0x5da   :  { %6455 = vmatprep.mubr.msk.f32.mxu0 %vm4684_vm5, %v4669_v37 }
 0x5db   :  { %6456 = vmatmul.mubr.msk.f32.gmra.mrb[58].mxu0 %vm4684_vm5, %v4671_v17 }
 0x5dc   :  { %v4675_v25 = vpop.permute.xlu1 %4674 }
 0x5dd   :  { %v4673_v19 = vpop.permute.xlu0 %4672 }
 0x5de   :  { %6458 = vmatprep.mubr.msk.f32.mxu0 %vm4684_vm5, %v4673_v19 }
 0x5df   :  { %6459 = vmatmul.mubr.msk.f32.gmra.mrb[60].mxu0 %vm4684_vm5, %v4675_v25 }
 0x5e0   :  { %v4679_v30 = vpop.permute.xlu1 %4678 }
 0x5e1   :  { %v4677_v46 = vpop.permute.xlu0 %4676 }
 0x5e2   :  { %6461 = vmatprep.mubr.msk.f32.mxu0 %vm4684_vm5, %v4677_v46 }
 0x5e3   :  { %6462 = vmatmul.mubr.msk.f32.gmra.mrb[62].mxu0 %vm4684_vm5, %v4679_v30 }
 0x5e6   :  { %v4683_v3 = vpop.permute.xlu1 %4682 }
 0x5e7   :  { %v4681_v15 = vpop.permute.xlu0 %4680 }
 0x5e8   :  { %6464 = vmatprep.mubr.msk.f32.mxu0 %vm4684_vm5, %v4681_v15 }
 0x5e9   :  { %6465 = vmatmul.mubr.msk.f32.gmra.mrb[64].mxu0 %vm4684_vm5, %v4683_v3 }
 0x5ea   :  { %v5529_v34 = vpop.permute.xlu1 %5528 }
 0x5eb   :  { %v5527_v52 = vpop.permute.xlu0 %5526 }
 0x5ee   :  { %v5533_v18 = vpop.permute.xlu1 %5532 }
 0x5ef   :  { %v5531_v48 = vpop.permute.xlu0 %5530 }
 0x5f2   :  { %v5537_v11 = vpop.permute.xlu1 %5536 }
 0x5f3   :  { %v5535_v21 = vpop.permute.xlu0 %5534 }
 0x5f6   :  { %v5541_v59 = vpop.permute.xlu1 %5540 }
 0x5f7   :  { %v5539_v20 = vpop.permute.xlu0 %5538 }
 0x5fa   :  { %v5545_v41 = vpop.permute.xlu1 %5544 }
 0x5fb   :  { %v5543_v42 = vpop.permute.xlu0 %5542 }
 0x5fe   :  { %v5549_v5 = vpop.permute.xlu1 %5548 }
 0x5ff   :  { %v5547_v63 = vpop.permute.xlu0 %5546 }
 0x602   :  { %v5553_v28 = vpop.permute.xlu1 %5552 }
 0x603   :  { %v5551_v6 = vpop.permute.xlu0 %5550 }
 0x69e   :  { %v6445_v35 = vpop.f32.mrb[50].mxu0 }
 0x69f   :  { %v4789_v7 = vadd.f32 %v6445_v35, %v5830_v39  ;;  %v4783_v43 = vpop.f32.mrb[51].mxu0 }
 0x6a0   :  { %v4784_v53 = vadd.f32 %v5830_v39, %v4783_v43 }
 0x6a1   :  { %5480 = vrot.lane.b32.xlu1 %v4789_v7, %s7092_s25 }
 0x6a2   :  { %5478 = vrot.lane.b32.xlu0 %v4784_v53, %s7092_s25  ;;  %v6448_v4 = vpop.f32.mrb[52].mxu0  ;;  %v8907_v53 = vld [vmem:[#allocation36_spill] sm:$0xff] }
 0x6a3   :  { %v4799_v51 = vadd.f32 %v6448_v4, %v5830_v39  ;;  %v4793_v12 = vpop.f32.mrb[53].mxu0 }
 0x6a4   :  { %v4794_v38 = vadd.f32 %v5830_v39, %v4793_v12 }
 0x6a5   :  { %5484 = vrot.lane.b32.xlu1 %v4799_v51, %s7092_s25 }
 0x6a6   :  { %5482 = vrot.lane.b32.xlu0 %v4794_v38, %s7092_s25  ;;  %v6451_v26 = vpop.f32.mrb[54].mxu0 }
 0x6a7   :  { %v4809_v40 = vadd.f32 %v6451_v26, %v5830_v39  ;;  %v4803_v45 = vpop.f32.mrb[55].mxu0 }
 0x6a8   :  { %v4804_v33 = vadd.f32 %v5830_v39, %v4803_v45  ;;  %v8909_v45 = vld [vmem:[#allocation24_spill] sm:$0xff] }
 0x6a9   :  { %5488 = vrot.lane.b32.xlu1 %v4809_v40, %s7092_s25 }
 0x6aa   :  { %5486 = vrot.lane.b32.xlu0 %v4804_v33, %s7092_s25  ;;  %v6454_v2 = vpop.f32.mrb[56].mxu0 }
 0x6ab   :  { %v4819_v8 = vadd.f32 %v6454_v2, %v5830_v39  ;;  %v4813_v44 = vpop.f32.mrb[57].mxu0 }
 0x6ac   :  { %v4814_v16 = vadd.f32 %v5830_v39, %v4813_v44  ;;  %v8910_v44 = vld [vmem:[#allocation35_spill] sm:$0xff] }
 0x6ad   :  { %5492 = vrot.lane.b32.xlu1 %v4819_v8, %s7092_s25 }
 0x6ae   :  { %5490 = vrot.lane.b32.xlu0 %v4814_v16, %s7092_s25  ;;  %v6457_v58 = vpop.f32.mrb[58].mxu0 }
 0x6af   :  { %v4829_v10 = vadd.f32 %v6457_v58, %v5830_v39  ;;  %v4823_v27 = vpop.f32.mrb[59].mxu0 }
 0x6b0   :  { %v4824_v56 = vadd.f32 %v5830_v39, %v4823_v27  ;;  %v8911_v27 = vld [vmem:[#allocation26_spill] sm:$0xff] }
 0x6b1   :  { %5496 = vrot.lane.b32.xlu1 %v4829_v10, %s7092_s25 }
 0x6b2   :  { %5494 = vrot.lane.b32.xlu0 %v4824_v56, %s7092_s25  ;;  %v6460_v60 = vpop.f32.mrb[60].mxu0 }
 0x6b3   :  { %v4839_v55 = vadd.f32 %v6460_v60, %v5830_v39  ;;  %v4833_v62 = vpop.f32.mrb[61].mxu0 }
 0x6b4   :  { %v4834_v57 = vadd.f32 %v5830_v39, %v4833_v62  ;;  %v8912_v62 = vld [vmem:[#allocation41_spill] sm:$0xff] }
 0x6b5   :  { %5500 = vrot.lane.b32.xlu1 %v4839_v55, %s7092_s25 }
 0x6b6   :  { %5498 = vrot.lane.b32.xlu0 %v4834_v57, %s7092_s25  ;;  %v6463_v36 = vpop.f32.mrb[62].mxu0 }
 0x6b7   :  { %v4849_v32 = vadd.f32 %v6463_v36, %v5830_v39  ;;  %v4843_v14 = vpop.f32.mrb[63].mxu0 }
 0x6b8   :  { %v4844_v31 = vadd.f32 %v5830_v39, %v4843_v14  ;;  %v8913_v14 = vld [vmem:[#allocation43_spill] sm:$0xff] }
 0x6b9   :  { %5504 = vrot.lane.b32.xlu1 %v4849_v32, %s7092_s25 }
 0x6ba   :  { %5502 = vrot.lane.b32.xlu0 %v4844_v31, %s7092_s25 }
 0x6bc   :  { %v6466_v13 = vpop.f32.mrb[64].mxu0 }
 0x6bd   :  { %v4859_v29 = vadd.f32 %v6466_v13, %v5830_v39  ;;  %v4853_v50 = vpop.f32.mrb[65].mxu0 }
 0x6be   :  { %v4854_v23 = vadd.f32 %v5830_v39, %v4853_v50  ;;  %v8914_v50 = vld [vmem:[#allocation37_spill] sm:$0xff] }
 0x6bf   :  { %5508 = vrot.lane.b32.xlu1 %v4859_v29, %s7092_s25 }
 0x6c0   :  { %5506 = vrot.lane.b32.xlu0 %v4854_v23, %s7092_s25 }
 0x6c3   :  { %5556 = vrot.lane.b32.xlu1 %v8416_v22, %s7091_s8 }
 0x6c4   :  { %5554 = vrot.lane.b32.xlu0 %v8420_v47, %s7091_s8 }
 0x713   :  { %v5481_v61 = vpop.permute.xlu1 %5480 }
 0x714   :  { %v5575_v22 = vsel %vm1516_vm1, %v8556_v24, %v5481_v61  ;;  %v5479_v47 = vpop.permute.xlu0 %5478 }
 0x715   :  { %v5592_v9 = vsel %vm5590_vm6, %v5575_v22, %v5529_v34  ;;  %v5574_v17 = vsel %vm1516_vm1, %v8558_v0, %v5479_v47 }
 0x716   :  { %5608 = vst.msk [vmem:[#allocation8 + $0x8] sm:$0xff] %vm4684_vm5, %v5592_v9  ;;  %v5591_v37 = vsel %vm5590_vm6, %v5574_v17, %v5527_v52 }
 0x717   :  { %5607 = vst.msk [vmem:[#allocation8] sm:$0xff] %vm4684_vm5, %v5591_v37  ;;  %v5485_v25 = vpop.permute.xlu1 %5484 }
 0x718   :  { %v5577_v19 = vsel %vm1516_vm1, %v8562_v49, %v5485_v25  ;;  %v5483_v46 = vpop.permute.xlu0 %5482  ;;  %v8906_v49 = vld [vmem:[#allocation22_spill] sm:$0xff] }
 0x719   :  { %v5594_v30 = vsel %vm5590_vm6, %v5577_v19, %v5533_v18  ;;  %v5576_v24 = vsel %vm1516_vm1, %v8564_v54, %v5483_v46 }
 0x71a   :  { %5610 = vst.msk [vmem:[#allocation8 + $0x18] sm:$0xff] %vm4684_vm5, %v5594_v30  ;;  %v5593_v0 = vsel %vm5590_vm6, %v5576_v24, %v5531_v48  ;;  %v8915_v48 = vld [vmem:[#allocation38_spill] sm:$0xff] }
 0x71b   :  { %5609 = vst.msk [vmem:[#allocation8 + $0x10] sm:$0xff] %vm4684_vm5, %v5593_v0  ;;  %v5489_v15 = vpop.permute.xlu1 %5488 }
 0x71c   :  { %v5579_v3 = vsel %vm1516_vm1, %v8568_v1, %v5489_v15  ;;  %v5487_v39 = vpop.permute.xlu0 %5486  ;;  %v8908_v1 = vld [vmem:[#allocation34_spill] sm:$0xff] }
 0x71d   :  { %v5596_v35 = vsel %vm5590_vm6, %v5579_v3, %v5537_v11  ;;  %v5578_v7 = vsel %vm1516_vm1, %v8906_v49, %v5487_v39 }
 0x71e   :  { %5612 = vst.msk [vmem:[#allocation8 + $0x28] sm:$0xff] %vm4684_vm5, %v5596_v35  ;;  %v5595_v54 = vsel %vm5590_vm6, %v5578_v7, %v5535_v21 }
 0x71f   :  { %5611 = vst.msk [vmem:[#allocation8 + $0x20] sm:$0xff] %vm4684_vm5, %v5595_v54  ;;  %v5493_v43 = vpop.permute.xlu1 %5492 }
 0x720   :  { %v5581_v4 = vsel %vm1516_vm1, %v8907_v53, %v5493_v43  ;;  %v5491_v51 = vpop.permute.xlu0 %5490 }
 0x721   :  { %v5598_v12 = vsel %vm5590_vm6, %v5581_v4, %v5541_v59  ;;  %v5580_v38 = vsel %vm1516_vm1, %v8908_v1, %v5491_v51  ;;  %v8916_v59 = vld [vmem:[#allocation28_spill] sm:$0xff] }
 0x722   :  { %5614 = vst.msk [vmem:[#allocation8 + $0x38] sm:$0xff] %vm4684_vm5, %v5598_v12  ;;  %v5597_v26 = vsel %vm5590_vm6, %v5580_v38, %v5539_v20 }
 0x723   :  { %5613 = vst.msk [vmem:[#allocation8 + $0x30] sm:$0xff] %vm4684_vm5, %v5597_v26  ;;  %v5497_v40 = vpop.permute.xlu1 %5496 }
 0x724   :  { %v5583_v33 = vsel %vm1516_vm1, %v8909_v45, %v5497_v40  ;;  %v5495_v2 = vpop.permute.xlu0 %5494 }
 0x725   :  { %v5600_v8 = vsel %vm5590_vm6, %v5583_v33, %v5545_v41  ;;  %v5582_v16 = vsel %vm1516_vm1, %v8910_v44, %v5495_v2 }
 0x726   :  { %5616 = vst.msk [vmem:[#allocation8 + $0x48] sm:$0xff] %vm4684_vm5, %v5600_v8  ;;  %v5599_v58 = vsel %vm5590_vm6, %v5582_v16, %v5543_v42 }
 0x727   :  { %5615 = vst.msk [vmem:[#allocation8 + $0x40] sm:$0xff] %vm4684_vm5, %v5599_v58  ;;  %v5501_v10 = vpop.permute.xlu1 %5500 }
 0x728   :  { %v5585_v56 = vsel %vm1516_vm1, %v8911_v27, %v5501_v10  ;;  %v5499_v60 = vpop.permute.xlu0 %5498 }
 0x729   :  { %v5602_v55 = vsel %vm5590_vm6, %v5585_v56, %v5549_v5  ;;  %v5584_v57 = vsel %vm1516_vm1, %v8912_v62, %v5499_v60 }
 0x72a   :  { %5618 = vst.msk [vmem:[#allocation8 + $0x58] sm:$0xff] %vm4684_vm5, %v5602_v55  ;;  %v5601_v36 = vsel %vm5590_vm6, %v5584_v57, %v5547_v63 }
 0x72b   :  { %5617 = vst.msk [vmem:[#allocation8 + $0x50] sm:$0xff] %vm4684_vm5, %v5601_v36  ;;  %v5505_v32 = vpop.permute.xlu1 %5504 }
 0x72c   :  { %v5587_v31 = vsel %vm1516_vm1, %v8913_v14, %v5505_v32  ;;  %v5503_v13 = vpop.permute.xlu0 %5502 }
 0x72d   :  { %v5604_v29 = vsel %vm5590_vm6, %v5587_v31, %v5553_v28  ;;  %v5586_v23 = vsel %vm1516_vm1, %v8914_v50, %v5503_v13 }
 0x72e   :  { %5620 = vst.msk [vmem:[#allocation8 + $0x68] sm:$0xff] %vm4684_vm5, %v5604_v29  ;;  %v5603_v34 = vsel %vm5590_vm6, %v5586_v23, %v5551_v6 }
 0x72f   :  { %5619 = vst.msk [vmem:[#allocation8 + $0x60] sm:$0xff] %vm4684_vm5, %v5603_v34 }
 0x731   :  { %v5509_v52 = vpop.permute.xlu1 %5508 }
 0x732   :  { %v5507_v18 = vpop.permute.xlu0 %5506  ;;  %v5589_v11 = vsel %vm1516_vm1, %v8915_v48, %v5509_v52 }
 0x733   :  { %v5588_v20 = vsel %vm1516_vm1, %v8916_v59, %v5507_v18 }
 0x735   :  { %v5557_v21 = vpop.permute.xlu1 %5556 }
 0x736   :  { %v5606_v41 = vsel %vm5590_vm6, %v5589_v11, %v5557_v21  ;;  %v5555_v42 = vpop.permute.xlu0 %5554 }
 0x737   :  { %5622 = vst.msk [vmem:[#allocation8 + $0x78] sm:$0xff] %vm4684_vm5, %v5606_v41  ;;  %v5605_v5 = vsel %vm5590_vm6, %v5588_v20, %v5555_v42 }
 0x738   :  { %5621 = vst.msk [vmem:[#allocation8 + $0x70] sm:$0xff] %vm4684_vm5, %v5605_v5 }
 0x739   :  { %7068 = shalt.err (!%p7065_p0)
}
 0x73a   :  { %s7069_s4 = scalar_lea.hbm %s8811_s11, 2048 }
 0x73b   :  { %p7070_p1 = scmp.ne.s32.totalorder %s8811_s11, %s7069_s4  ;;  %p7073_p2 = scmp.lt.u32.totalorder %s7069_s4, %s8811_s11 }
 0x73d   :  { %p7075_p3 = pnand %p7073_p2, %p7070_p1 }
 0x73f   :  { %7078 = shalt.err (!%p7075_p3)
}
 0x740   :  { %5634 = dma.vmem_to_hbm [thread:$0]  %s5629_s26, 2048, %s8811_s11, [#allocation4], %s7087_s29, %s7087_s29, %s7088_s30  }
 0x741   :  { %7083 = dma.done.wait [#allocation4], 2048  }
 0x742   :  { %7084 = vsyncadd [#allocation4], 4294965248 }
 0x743   :  { %5638 = vsyncpa [#allocation3], 1 }
 0x744   :  { %5639 = vsyncpa [#allocation6], 1 }
 0x745   :  { %5640 = vsyncpa [#allocation4], 1 }

</bundles_post_ra>
